<compile_context>
chip_gen: v7x
topology: tpu7x:2x2x1
jax: 0.10.0
libtpu: 0.0.40
codegen_flags: <defaults>
</compile_context>

<pallas_src>
import jax
import jax.numpy as jnp
from jax.experimental import pallas as pl
from jax.experimental.pallas import tpu as pltpu

EMB_DIM = 32
NUM_LAYER = 4
NUM_TASKS = 3
B = 8                      # graphs in the batch
N_PER = 16                 # nodes per graph
N = B * N_PER              # 128 total node rows (fills a 128-row MXU pass)
K = 3                      # Chebyshev order (fixed inside ChebLayer)
BN_EPS = 1e-5

ATOM_VOCABS = (13, 7, 9)   # simplified AtomEncoder: 3 categorical features
V_TOTAL = sum(ATOM_VOCABS)               # 29
V_PAD = ((V_TOTAL + 7) // 8) * 8         # 32: pad one-hot axis to sublane mult.

D1 = EMB_DIM // 2          # MLPReadout hidden dims: 32 -> 16 -> 8 -> tasks
D2 = EMB_DIM // 4
OUT_PAD = 128              # lane-dense padded output width (sliced outside)
EMAT_W = max(V_PAD, EMB_DIM)
NVEC_ROWS = 2 * NUM_LAYER + 3            # per-layer gamma/beta + 3 readout biases

# bf16 matmul operands at scale (v6e/v7x); f32 here for a tight correctness check.
MATMUL_DTYPE = jnp.float32


# ----------------------------- Pallas kernel -------------------------------

def _gnn_fused_kernel(emat_ref, smat_ref, w_ref, rw_ref, vec_ref, o_ref):
    """Fused: embedding + NUM_LAYER ChebLayers + mean-pool + MLPReadout."""
    f32 = jnp.float32

    s = smat_ref[0:N, :]                         # [N, N]  normalized adjacency
    s2 = smat_ref[N:2 * N, :]                    # [N, N]  S @ S (precomputed)
    pool = smat_ref[2 * N:2 * N + B, :]          # [B, N]  mean-node pooling

    onehot = emat_ref[0:N, 0:V_PAD]              # [N, V_PAD]
    table = emat_ref[N:N + V_PAD, 0:EMB_DIM]     # [V_PAD, D]
    vec = vec_ref[...]                           # [NVEC_ROWS, OUT_PAD], f32

    # AtomEncoder (sum of per-feature lookups) == padded one-hot @ tables.
    h = jnp.dot(onehot, table, preferred_element_type=f32)        # [N, D] f32

    # (1/N)-ones row: BN reductions run on the MXU, not the XLU.
    mean_row = jnp.full((1, N), 1.0 / N, f32)

    for l in range(NUM_LAYER):                                    # static unroll
        x0 = h
        xc = x0.astype(s.dtype)
        # p1 and p2 both depend only on x0 -> independent MXU matmuls.
        p1 = jnp.dot(s, xc, preferred_element_type=f32).astype(s.dtype)
        p2 = jnp.dot(s2, xc, preferred_element_type=f32).astype(s.dtype)

        # Chebyshev Linear with signs/scales folded into W'; the Linear bias is
        # omitted: it cancels exactly in training-mode BatchNorm (z - mean(z)).
        z = jnp.dot(xc, w_ref[l, 0], preferred_element_type=f32)
        z = z + jnp.dot(p1, w_ref[l, 1], preferred_element_type=f32)
        z = z + jnp.dot(p2, w_ref[l, 2], preferred_element_type=f32)

        # BatchNorm1d (training-mode batch stats, biased variance), one pass:
        # two independent MXU reductions instead of centered two-pass.
        m1 = jnp.dot(mean_row, z, preferred_element_type=f32)     # [1, D]
        m2 = jnp.dot(mean_row, z * z, preferred_element_type=f32) # [1, D]
        var = m2 - m1 * m1
        gamma = vec[2 * l:2 * l + 1, 0:EMB_DIM]
        beta = vec[2 * l + 1:2 * l + 2, 0:EMB_DIM]
        zhat = (z - m1) * jax.lax.rsqrt(var + BN_EPS) * gamma + beta

        h = x0 + jnp.maximum(zhat, 0.0)          # ReLU + residual; dropout(0)=id

    # dgl.mean_nodes pooling (as matmul) + MLPReadout (32 -> 16 -> 8 -> tasks).
    base = 2 * NUM_LAYER
    hg = jnp.dot(pool, h.astype(pool.dtype), preferred_element_type=f32)  # [B, D]
    y = jnp.maximum(
        jnp.dot(hg, rw_ref[0:EMB_DIM, 0:D1], preferred_element_type=f32)
        + vec[base:base + 1, 0:D1], 0.0)
    y = jnp.maximum(
        jnp.dot(y, rw_ref[EMB_DIM:EMB_DIM + D1, 0:D2], preferred_element_type=f32)
        + vec[base + 1:base + 2, 0:D2], 0.0)
    # Lane-dense output: write the full padded [B, OUT_PAD] slab.
    o_ref[...] = (jnp.dot(y, rw_ref[EMB_DIM + D1:EMB_DIM + D1 + D2, :],
                          preferred_element_type=f32)
                  + vec[base + 2:base + 3, :])


def gnn_fused_call(emat, smat, w_fold, rw_slab, vecs):
    args = (emat, smat, w_fold, rw_slab, vecs)
    vmem = pltpu.MemorySpace.VMEM
    return pl.pallas_call(
        _gnn_fused_kernel,
        out_shape=jax.ShapeDtypeStruct((B, OUT_PAD), jnp.float32),
        # No grid: single invocation, all (packed) operands resident in VMEM.
        in_specs=[pl.BlockSpec(memory_space=vmem) for _ in args],
        out_specs=pl.BlockSpec(memory_space=vmem),
    )(*args)


# ------------------------------ JAX glue ------------------------------------

def build_atom_onehot(atom_feats):
    """[N, 3] int categorical features -> padded one-hot [N, V_PAD]."""
    parts = [jax.nn.one_hot(atom_feats[:, i], v, dtype=jnp.float32)
             for i, v in enumerate(ATOM_VOCABS)]
    oh = jnp.concatenate(parts, axis=1)                       # [N, V_TOTAL]
    return jnp.pad(oh, ((0, 0), (0, V_PAD - V_TOTAL)))        # [N, V_PAD]


def gnn_forward(s, pool, atom_feats, params):
    # Bond/edge embeddings `e` are pure pass-through in ChebLayer (never used
    # by the prediction head), so they are intentionally not computed here.
    onehot = build_atom_onehot(atom_feats)
    s2 = jnp.dot(s, s)                            # second Chebyshev hop, host side
    # Pack graph operators into one buffer: [S | S^2 | pool] stacked on sublanes.
    smat = jnp.concatenate([s, s2, pool], axis=0).astype(MATMUL_DTYPE)  # [2N+B, N]
    # Pack embedding operands into one buffer: [one-hot | tables].
    emat = jnp.concatenate(
        [jnp.pad(onehot, ((0, 0), (0, EMAT_W - V_PAD))),
         jnp.pad(params["table_pad"], ((0, 0), (0, EMAT_W - EMB_DIM)))],
        axis=0).astype(MATMUL_DTYPE)                          # [N+V_PAD, EMAT_W]
    y_pad = gnn_fused_call(emat, smat,
                           params["w_fold"].astype(MATMUL_DTYPE),
                           params["rw_slab"], params["vecs"])
    return y_pad[:, :NUM_TASKS]


def embed_sum(int_feats, tables):
    """Reference AtomEncoder: sum of per-feature embedding lookups."""
    out = jnp.zeros((int_feats.shape[0], EMB_DIM), jnp.float32)
    for i, tbl in enumerate(tables):
        out = out + tbl[int_feats[:, i]]
    return out


def gnn_forward_reference(s, pool, atom_feats, params):
    """Pure-JAX f32 reference following the original (unfolded) PyTorch math,
    including the Linear bias (mathematically dead under train-mode BN)."""
    h = embed_sum(atom_feats, params["atom_tables"])
    for l in range(NUM_LAYER):
        x0 = h
        x1 = -(s @ x0)
        x2 = -2.0 * (s @ x1) - x0
        z = (x0 @ params["w_raw"][l, 0] + x1 @ params["w_raw"][l, 1]
             + x2 @ params["w_raw"][l, 2] + params["b_lin"][l])
        mu = jnp.mean(z, axis=0, keepdims=True)
        var = jnp.mean((z - mu) ** 2, axis=0, keepdims=True)
        zhat = (z - mu) / jnp.sqrt(var + BN_EPS) * params["gamma"][l] + params["beta"][l]
        h = x0 + jnp.maximum(zhat, 0.0)
    r = params["readout"]
    hg = pool @ h
    y = jnp.maximum(hg @ r["w1"] + r["b1"], 0.0)
    y = jnp.maximum(y @ r["w2"] + r["b2"], 0.0)
    return y @ r["w3"] + r["b3"]


def init_params(key):
    ks = iter(jax.random.split(key, 32))
    atom_tables = [0.1 * jax.random.normal(next(ks), (v, EMB_DIM), jnp.float32)
                   for v in ATOM_VOCABS]
    # Concatenated + padded table for the in-kernel one-hot embedding matmul.
    table_pad = jnp.pad(jnp.concatenate(atom_tables, axis=0),
                        ((0, V_PAD - V_TOTAL), (0, 0)))       # [V_PAD, D]

    # nn.Linear(K*D, D) per layer, stored as per-order blocks w_raw[l, k]:[D, D].
    w_raw = 0.05 * jax.random.normal(
        next(ks), (NUM_LAYER, K, EMB_DIM, EMB_DIM), jnp.float32)
    b_lin = 0.05 * jax.random.normal(next(ks), (NUM_LAYER, 1, EMB_DIM), jnp.float32)
    gamma = jnp.ones((NUM_LAYER, EMB_DIM), jnp.float32)       # BN weight init
    beta = jnp.zeros((NUM_LAYER, EMB_DIM), jnp.float32)       # BN bias init

    # Fold Chebyshev recursion (lambda_max=2 => re_norm=1) into the weights:
    #   X1 = -S@X0 ; X2 = 2*S^2@X0 - X0
    #   => z = X0@(W0-W2) + (S@X0)@(-W1) + (S^2@X0)@(2*W2)   (+ dead bias)
    w_fold = jnp.stack([w_raw[:, 0] - w_raw[:, 2],
                        -w_raw[:, 1],
                        2.0 * w_raw[:, 2]], axis=1)           # [L, 3, D, D]

    r1w = 0.1 * jax.random.normal(next(ks), (EMB_DIM, D1), jnp.float32)
    r1b = 0.1 * jax.random.normal(next(ks), (D1,), jnp.float32)
    r2w = 0.1 * jax.random.normal(next(ks), (D1, D2), jnp.float32)
    r2b = 0.1 * jax.random.normal(next(ks), (D2,), jnp.float32)
    r3w = 0.1 * jax.random.normal(next(ks), (D2, NUM_TASKS), jnp.float32)
    r3b = 0.1 * jax.random.normal(next(ks), (NUM_TASKS,), jnp.float32)

    # MLPReadout weights sublane-stacked into one slab [D + D1 + D2, OUT_PAD].
    rw_slab = jnp.zeros((EMB_DIM + D1 + D2, OUT_PAD), jnp.float32)
    rw_slab = rw_slab.at[0:EMB_DIM, 0:D1].set(r1w)
    rw_slab = rw_slab.at[EMB_DIM:EMB_DIM + D1, 0:D2].set(r2w)
    rw_slab = rw_slab.at[EMB_DIM + D1:EMB_DIM + D1 + D2, 0:NUM_TASKS].set(r3w)

    # All per-channel vectors (BN gamma/beta + readout biases) in one block.
    vecs = jnp.zeros((NVEC_ROWS, OUT_PAD), jnp.float32)
    for l in range(NUM_LAYER):
        vecs = vecs.at[2 * l, 0:EMB_DIM].set(gamma[l])
        vecs = vecs.at[2 * l + 1, 0:EMB_DIM].set(beta[l])
    vecs = vecs.at[2 * NUM_LAYER, 0:D1].set(r1b)
    vecs = vecs.at[2 * NUM_LAYER + 1, 0:D2].set(r2b)
    vecs = vecs.at[2 * NUM_LAYER + 2, 0:NUM_TASKS].set(r3b)

    return dict(atom_tables=atom_tables, table_pad=table_pad,
                w_raw=w_raw, b_lin=b_lin, gamma=gamma, beta=beta,
                w_fold=w_fold, rw_slab=rw_slab, vecs=vecs,
                readout=dict(w1=r1w, b1=r1b, w2=r2w, b2=r2b, w3=r3w, b3=r3b))


if __name__ == "__main__":
    key = jax.random.PRNGKey(0)
    k_adj, k_atom, k_param = jax.random.split(key, 3)

    # Block-diagonal adjacency: B graphs of N_PER nodes, no cross-graph edges.
    adj = jax.random.bernoulli(k_adj, 0.3, (N, N)).astype(jnp.float32)
    block_mask = jnp.kron(jnp.eye(B, dtype=jnp.float32),
                          jnp.ones((N_PER, N_PER), jnp.float32))
    adj = adj * block_mask * (1.0 - jnp.eye(N, dtype=jnp.float32))

    # D^-1/2 with in-degree clamp(min=1); S = D^-1/2 A_in D^-1/2.
    deg = jnp.clip(jnp.sum(adj, axis=1), 1.0, None)
    d_sqrt = deg ** -0.5
    S = d_sqrt[:, None] * adj * d_sqrt[None, :]

    # Mean-node pooling matrix: pool[b, v] = 1/N_PER if node v is in graph b.
    pool = jnp.kron(jnp.eye(B, dtype=jnp.float32),
                    jnp.full((1, N_PER), 1.0 / N_PER, jnp.float32))

    # Categorical node features.
    atom_feats = jnp.stack(
        [jax.random.randint(jax.random.fold_in(k_atom, i), (N,), 0, v)
         for i, v in enumerate(ATOM_VOCABS)], axis=1)

    params = init_params(k_param)

    y = jax.jit(gnn_forward)(S, pool, atom_feats, params)
    y = jax.block_until_ready(y)

    y_ref = gnn_forward_reference(S, pool, atom_feats, params)
    assert y.shape == (B, NUM_TASKS)
    assert jnp.allclose(y, y_ref, atol=2e-3, rtol=2e-3), (y, y_ref)
    print("KERNEL_OK")
</pallas_src>

<mosaic_0001>
module attributes {stable_mosaic.version = 11 : i64} {
  func.func @_gnn_fused_kernel(%arg0: memref<160x32xf32, #tpu.memory_space<vmem>>, %arg1: memref<264x128xf32, #tpu.memory_space<vmem>>, %arg2: memref<4x3x32x32xf32, #tpu.memory_space<vmem>>, %arg3: memref<56x128xf32, #tpu.memory_space<vmem>>, %arg4: memref<11x128xf32, #tpu.memory_space<vmem>>, %arg5: memref<8x128xf32, #tpu.memory_space<vmem>>) attributes {dimension_semantics = [], scalar_prefetch = 0 : i64, scratch_operands = 0 : i64, tpu.core_type = #tpu.core_type<tc>} {
    %c0 = arith.constant 0 : index
    %c0_0 = arith.constant 0 : index
    %0 = vector.load %arg1[%c0, %c0_0] : memref<264x128xf32, #tpu.memory_space<vmem>>, vector<128x128xf32>
    %c128 = arith.constant 128 : index
    %c0_1 = arith.constant 0 : index
    %1 = vector.load %arg1[%c128, %c0_1] : memref<264x128xf32, #tpu.memory_space<vmem>>, vector<128x128xf32>
    %c256 = arith.constant 256 : index
    %c0_2 = arith.constant 0 : index
    %2 = vector.load %arg1[%c256, %c0_2] : memref<264x128xf32, #tpu.memory_space<vmem>>, vector<8x128xf32>
    %c0_3 = arith.constant 0 : index
    %c0_4 = arith.constant 0 : index
    %3 = vector.load %arg0[%c0_3, %c0_4] : memref<160x32xf32, #tpu.memory_space<vmem>>, vector<128x32xf32>
    %c128_5 = arith.constant 128 : index
    %c0_6 = arith.constant 0 : index
    %4 = vector.load %arg0[%c128_5, %c0_6] : memref<160x32xf32, #tpu.memory_space<vmem>>, vector<32x32xf32>
    %c0_7 = arith.constant 0 : index
    %c0_8 = arith.constant 0 : index
    %5 = vector.load %arg4[%c0_7, %c0_8] : memref<11x128xf32, #tpu.memory_space<vmem>>, vector<11x128xf32>
    %cst = arith.constant dense<0.000000e+00> : vector<128x32xf32>
    %6 = tpu.matmul %3, %4, %cst {dimension_numbers = #tpu.dot_dimension_numbers<[1], [0], [0], [1], [0, 0, 1, 1], [], []>} : vector<128x32xf32>, vector<32x32xf32>, vector<128x32xf32> -> vector<128x32xf32>
    %cst_9 = arith.constant 7.812500e-03 : f32
    %7 = vector.broadcast %cst_9 : f32 to vector<1x128xf32>
    %cst_10 = arith.constant dense<0.000000e+00> : vector<128x32xf32>
    %8 = tpu.matmul %0, %6, %cst_10 {dimension_numbers = #tpu.dot_dimension_numbers<[1], [0], [0], [1], [0, 0, 1, 1], [], []>} : vector<128x128xf32>, vector<128x32xf32>, vector<128x32xf32> -> vector<128x32xf32>
    %cst_11 = arith.constant dense<0.000000e+00> : vector<128x32xf32>
    %9 = tpu.matmul %1, %6, %cst_11 {dimension_numbers = #tpu.dot_dimension_numbers<[1], [0], [0], [1], [0, 0, 1, 1], [], []>} : vector<128x128xf32>, vector<128x32xf32>, vector<128x32xf32> -> vector<128x32xf32>
    %c0_12 = arith.constant 0 : index
    %c0_13 = arith.constant 0 : index
    %c0_14 = arith.constant 0 : index
    %c0_15 = arith.constant 0 : index
    %10 = vector.load %arg2[%c0_12, %c0_13, %c0_14, %c0_15] : memref<4x3x32x32xf32, #tpu.memory_space<vmem>>, vector<1x1x32x32xf32>
    %11 = vector.shape_cast %10 : vector<1x1x32x32xf32> to vector<32x32xf32>
    %cst_16 = arith.constant dense<0.000000e+00> : vector<128x32xf32>
    %12 = tpu.matmul %6, %11, %cst_16 {dimension_numbers = #tpu.dot_dimension_numbers<[1], [0], [0], [1], [0, 0, 1, 1], [], []>} : vector<128x32xf32>, vector<32x32xf32>, vector<128x32xf32> -> vector<128x32xf32>
    %c0_17 = arith.constant 0 : index
    %c1 = arith.constant 1 : index
    %c0_18 = arith.constant 0 : index
    %c0_19 = arith.constant 0 : index
    %13 = vector.load %arg2[%c0_17, %c1, %c0_18, %c0_19] : memref<4x3x32x32xf32, #tpu.memory_space<vmem>>, vector<1x1x32x32xf32>
    %14 = vector.shape_cast %13 : vector<1x1x32x32xf32> to vector<32x32xf32>
    %cst_20 = arith.constant dense<0.000000e+00> : vector<128x32xf32>
    %15 = tpu.matmul %8, %14, %cst_20 {dimension_numbers = #tpu.dot_dimension_numbers<[1], [0], [0], [1], [0, 0, 1, 1], [], []>} : vector<128x32xf32>, vector<32x32xf32>, vector<128x32xf32> -> vector<128x32xf32>
    %16 = arith.addf %12, %15 : vector<128x32xf32>
    %c0_21 = arith.constant 0 : index
    %c2 = arith.constant 2 : index
    %c0_22 = arith.constant 0 : index
    %c0_23 = arith.constant 0 : index
    %17 = vector.load %arg2[%c0_21, %c2, %c0_22, %c0_23] : memref<4x3x32x32xf32, #tpu.memory_space<vmem>>, vector<1x1x32x32xf32>
    %18 = vector.shape_cast %17 : vector<1x1x32x32xf32> to vector<32x32xf32>
    %cst_24 = arith.constant dense<0.000000e+00> : vector<128x32xf32>
    %19 = tpu.matmul %9, %18, %cst_24 {dimension_numbers = #tpu.dot_dimension_numbers<[1], [0], [0], [1], [0, 0, 1, 1], [], []>} : vector<128x32xf32>, vector<32x32xf32>, vector<128x32xf32> -> vector<128x32xf32>
    %20 = arith.addf %16, %19 : vector<128x32xf32>
    %cst_25 = arith.constant dense<0.000000e+00> : vector<1x32xf32>
    %21 = tpu.matmul %7, %20, %cst_25 {dimension_numbers = #tpu.dot_dimension_numbers<[1], [0], [0], [1], [0, 0, 1, 1], [], []>} : vector<1x128xf32>, vector<128x32xf32>, vector<1x32xf32> -> vector<1x32xf32>
    %22 = arith.mulf %20, %20 : vector<128x32xf32>
    %cst_26 = arith.constant dense<0.000000e+00> : vector<1x32xf32>
    %23 = tpu.matmul %7, %22, %cst_26 {dimension_numbers = #tpu.dot_dimension_numbers<[1], [0], [0], [1], [0, 0, 1, 1], [], []>} : vector<1x128xf32>, vector<128x32xf32>, vector<1x32xf32> -> vector<1x32xf32>
    %24 = arith.mulf %21, %21 : vector<1x32xf32>
    %25 = arith.subf %23, %24 : vector<1x32xf32>
    %26 = vector.extract_strided_slice %5 {offsets = [0, 0], sizes = [1, 32], strides = [1, 1]} : vector<11x128xf32> to vector<1x32xf32>
    %27 = vector.extract_strided_slice %5 {offsets = [1, 0], sizes = [1, 32], strides = [1, 1]} : vector<11x128xf32> to vector<1x32xf32>
    %28 = vector.broadcast %21 : vector<1x32xf32> to vector<128x32xf32>
    %29 = arith.subf %20, %28 : vector<128x32xf32>
    %cst_27 = arith.constant 9.99999974E-6 : f32
    %30 = vector.broadcast %cst_27 : f32 to vector<1x32xf32>
    %31 = arith.addf %25, %30 : vector<1x32xf32>
    %32 = math.rsqrt %31 : vector<1x32xf32>
    %33 = vector.broadcast %32 : vector<1x32xf32> to vector<128x32xf32>
    %34 = arith.mulf %29, %33 : vector<128x32xf32>
    %35 = vector.broadcast %26 : vector<1x32xf32> to vector<128x32xf32>
    %36 = arith.mulf %34, %35 : vector<128x32xf32>
    %37 = vector.broadcast %27 : vector<1x32xf32> to vector<128x32xf32>
    %38 = arith.addf %36, %37 : vector<128x32xf32>
    %cst_28 = arith.constant 0.000000e+00 : f32
    %39 = vector.broadcast %cst_28 : f32 to vector<128x32xf32>
    %40 = arith.maximumf %38, %39 : vector<128x32xf32>
    %41 = arith.addf %6, %40 : vector<128x32xf32>
    %cst_29 = arith.constant dense<0.000000e+00> : vector<128x32xf32>
    %42 = tpu.matmul %0, %41, %cst_29 {dimension_numbers = #tpu.dot_dimension_numbers<[1], [0], [0], [1], [0, 0, 1, 1], [], []>} : vector<128x128xf32>, vector<128x32xf32>, vector<128x32xf32> -> vector<128x32xf32>
    %cst_30 = arith.constant dense<0.000000e+00> : vector<128x32xf32>
    %43 = tpu.matmul %1, %41, %cst_30 {dimension_numbers = #tpu.dot_dimension_numbers<[1], [0], [0], [1], [0, 0, 1, 1], [], []>} : vector<128x128xf32>, vector<128x32xf32>, vector<128x32xf32> -> vector<128x32xf32>
    %c1_31 = arith.constant 1 : index
    %c0_32 = arith.constant 0 : index
    %c0_33 = arith.constant 0 : index
    %c0_34 = arith.constant 0 : index
    %44 = vector.load %arg2[%c1_31, %c0_32, %c0_33, %c0_34] : memref<4x3x32x32xf32, #tpu.memory_space<vmem>>, vector<1x1x32x32xf32>
    %45 = vector.shape_cast %44 : vector<1x1x32x32xf32> to vector<32x32xf32>
    %cst_35 = arith.constant dense<0.000000e+00> : vector<128x32xf32>
    %46 = tpu.matmul %41, %45, %cst_35 {dimension_numbers = #tpu.dot_dimension_numbers<[1], [0], [0], [1], [0, 0, 1, 1], [], []>} : vector<128x32xf32>, vector<32x32xf32>, vector<128x32xf32> -> vector<128x32xf32>
    %c1_36 = arith.constant 1 : index
    %c1_37 = arith.constant 1 : index
    %c0_38 = arith.constant 0 : index
    %c0_39 = arith.constant 0 : index
    %47 = vector.load %arg2[%c1_36, %c1_37, %c0_38, %c0_39] : memref<4x3x32x32xf32, #tpu.memory_space<vmem>>, vector<1x1x32x32xf32>
    %48 = vector.shape_cast %47 : vector<1x1x32x32xf32> to vector<32x32xf32>
    %cst_40 = arith.constant dense<0.000000e+00> : vector<128x32xf32>
    %49 = tpu.matmul %42, %48, %cst_40 {dimension_numbers = #tpu.dot_dimension_numbers<[1], [0], [0], [1], [0, 0, 1, 1], [], []>} : vector<128x32xf32>, vector<32x32xf32>, vector<128x32xf32> -> vector<128x32xf32>
    %50 = arith.addf %46, %49 : vector<128x32xf32>
    %c1_41 = arith.constant 1 : index
    %c2_42 = arith.constant 2 : index
    %c0_43 = arith.constant 0 : index
    %c0_44 = arith.constant 0 : index
    %51 = vector.load %arg2[%c1_41, %c2_42, %c0_43, %c0_44] : memref<4x3x32x32xf32, #tpu.memory_space<vmem>>, vector<1x1x32x32xf32>
    %52 = vector.shape_cast %51 : vector<1x1x32x32xf32> to vector<32x32xf32>
    %cst_45 = arith.constant dense<0.000000e+00> : vector<128x32xf32>
    %53 = tpu.matmul %43, %52, %cst_45 {dimension_numbers = #tpu.dot_dimension_numbers<[1], [0], [0], [1], [0, 0, 1, 1], [], []>} : vector<128x32xf32>, vector<32x32xf32>, vector<128x32xf32> -> vector<128x32xf32>
    %54 = arith.addf %50, %53 : vector<128x32xf32>
    %cst_46 = arith.constant dense<0.000000e+00> : vector<1x32xf32>
    %55 = tpu.matmul %7, %54, %cst_46 {dimension_numbers = #tpu.dot_dimension_numbers<[1], [0], [0], [1], [0, 0, 1, 1], [], []>} : vector<1x128xf32>, vector<128x32xf32>, vector<1x32xf32> -> vector<1x32xf32>
    %56 = arith.mulf %54, %54 : vector<128x32xf32>
    %cst_47 = arith.constant dense<0.000000e+00> : vector<1x32xf32>
    %57 = tpu.matmul %7, %56, %cst_47 {dimension_numbers = #tpu.dot_dimension_numbers<[1], [0], [0], [1], [0, 0, 1, 1], [], []>} : vector<1x128xf32>, vector<128x32xf32>, vector<1x32xf32> -> vector<1x32xf32>
    %58 = arith.mulf %55, %55 : vector<1x32xf32>
    %59 = arith.subf %57, %58 : vector<1x32xf32>
    %60 = vector.extract_strided_slice %5 {offsets = [2, 0], sizes = [1, 32], strides = [1, 1]} : vector<11x128xf32> to vector<1x32xf32>
    %61 = vector.extract_strided_slice %5 {offsets = [3, 0], sizes = [1, 32], strides = [1, 1]} : vector<11x128xf32> to vector<1x32xf32>
    %62 = vector.broadcast %55 : vector<1x32xf32> to vector<128x32xf32>
    %63 = arith.subf %54, %62 : vector<128x32xf32>
    %cst_48 = arith.constant 9.99999974E-6 : f32
    %64 = vector.broadcast %cst_48 : f32 to vector<1x32xf32>
    %65 = arith.addf %59, %64 : vector<1x32xf32>
    %66 = math.rsqrt %65 : vector<1x32xf32>
    %67 = vector.broadcast %66 : vector<1x32xf32> to vector<128x32xf32>
    %68 = arith.mulf %63, %67 : vector<128x32xf32>
    %69 = vector.broadcast %60 : vector<1x32xf32> to vector<128x32xf32>
    %70 = arith.mulf %68, %69 : vector<128x32xf32>
    %71 = vector.broadcast %61 : vector<1x32xf32> to vector<128x32xf32>
    %72 = arith.addf %70, %71 : vector<128x32xf32>
    %cst_49 = arith.constant 0.000000e+00 : f32
    %73 = vector.broadcast %cst_49 : f32 to vector<128x32xf32>
    %74 = arith.maximumf %72, %73 : vector<128x32xf32>
    %75 = arith.addf %41, %74 : vector<128x32xf32>
    %cst_50 = arith.constant dense<0.000000e+00> : vector<128x32xf32>
    %76 = tpu.matmul %0, %75, %cst_50 {dimension_numbers = #tpu.dot_dimension_numbers<[1], [0], [0], [1], [0, 0, 1, 1], [], []>} : vector<128x128xf32>, vector<128x32xf32>, vector<128x32xf32> -> vector<128x32xf32>
    %cst_51 = arith.constant dense<0.000000e+00> : vector<128x32xf32>
    %77 = tpu.matmul %1, %75, %cst_51 {dimension_numbers = #tpu.dot_dimension_numbers<[1], [0], [0], [1], [0, 0, 1, 1], [], []>} : vector<128x128xf32>, vector<128x32xf32>, vector<128x32xf32> -> vector<128x32xf32>
    %c2_52 = arith.constant 2 : index
    %c0_53 = arith.constant 0 : index
    %c0_54 = arith.constant 0 : index
    %c0_55 = arith.constant 0 : index
    %78 = vector.load %arg2[%c2_52, %c0_53, %c0_54, %c0_55] : memref<4x3x32x32xf32, #tpu.memory_space<vmem>>, vector<1x1x32x32xf32>
    %79 = vector.shape_cast %78 : vector<1x1x32x32xf32> to vector<32x32xf32>
    %cst_56 = arith.constant dense<0.000000e+00> : vector<128x32xf32>
    %80 = tpu.matmul %75, %79, %cst_56 {dimension_numbers = #tpu.dot_dimension_numbers<[1], [0], [0], [1], [0, 0, 1, 1], [], []>} : vector<128x32xf32>, vector<32x32xf32>, vector<128x32xf32> -> vector<128x32xf32>
    %c2_57 = arith.constant 2 : index
    %c1_58 = arith.constant 1 : index
    %c0_59 = arith.constant 0 : index
    %c0_60 = arith.constant 0 : index
    %81 = vector.load %arg2[%c2_57, %c1_58, %c0_59, %c0_60] : memref<4x3x32x32xf32, #tpu.memory_space<vmem>>, vector<1x1x32x32xf32>
    %82 = vector.shape_cast %81 : vector<1x1x32x32xf32> to vector<32x32xf32>
    %cst_61 = arith.constant dense<0.000000e+00> : vector<128x32xf32>
    %83 = tpu.matmul %76, %82, %cst_61 {dimension_numbers = #tpu.dot_dimension_numbers<[1], [0], [0], [1], [0, 0, 1, 1], [], []>} : vector<128x32xf32>, vector<32x32xf32>, vector<128x32xf32> -> vector<128x32xf32>
    %84 = arith.addf %80, %83 : vector<128x32xf32>
    %c2_62 = arith.constant 2 : index
    %c2_63 = arith.constant 2 : index
    %c0_64 = arith.constant 0 : index
    %c0_65 = arith.constant 0 : index
    %85 = vector.load %arg2[%c2_62, %c2_63, %c0_64, %c0_65] : memref<4x3x32x32xf32, #tpu.memory_space<vmem>>, vector<1x1x32x32xf32>
    %86 = vector.shape_cast %85 : vector<1x1x32x32xf32> to vector<32x32xf32>
    %cst_66 = arith.constant dense<0.000000e+00> : vector<128x32xf32>
    %87 = tpu.matmul %77, %86, %cst_66 {dimension_numbers = #tpu.dot_dimension_numbers<[1], [0], [0], [1], [0, 0, 1, 1], [], []>} : vector<128x32xf32>, vector<32x32xf32>, vector<128x32xf32> -> vector<128x32xf32>
    %88 = arith.addf %84, %87 : vector<128x32xf32>
    %cst_67 = arith.constant dense<0.000000e+00> : vector<1x32xf32>
    %89 = tpu.matmul %7, %88, %cst_67 {dimension_numbers = #tpu.dot_dimension_numbers<[1], [0], [0], [1], [0, 0, 1, 1], [], []>} : vector<1x128xf32>, vector<128x32xf32>, vector<1x32xf32> -> vector<1x32xf32>
    %90 = arith.mulf %88, %88 : vector<128x32xf32>
    %cst_68 = arith.constant dense<0.000000e+00> : vector<1x32xf32>
    %91 = tpu.matmul %7, %90, %cst_68 {dimension_numbers = #tpu.dot_dimension_numbers<[1], [0], [0], [1], [0, 0, 1, 1], [], []>} : vector<1x128xf32>, vector<128x32xf32>, vector<1x32xf32> -> vector<1x32xf32>
    %92 = arith.mulf %89, %89 : vector<1x32xf32>
    %93 = arith.subf %91, %92 : vector<1x32xf32>
    %94 = vector.extract_strided_slice %5 {offsets = [4, 0], sizes = [1, 32], strides = [1, 1]} : vector<11x128xf32> to vector<1x32xf32>
    %95 = vector.extract_strided_slice %5 {offsets = [5, 0], sizes = [1, 32], strides = [1, 1]} : vector<11x128xf32> to vector<1x32xf32>
    %96 = vector.broadcast %89 : vector<1x32xf32> to vector<128x32xf32>
    %97 = arith.subf %88, %96 : vector<128x32xf32>
    %cst_69 = arith.constant 9.99999974E-6 : f32
    %98 = vector.broadcast %cst_69 : f32 to vector<1x32xf32>
    %99 = arith.addf %93, %98 : vector<1x32xf32>
    %100 = math.rsqrt %99 : vector<1x32xf32>
    %101 = vector.broadcast %100 : vector<1x32xf32> to vector<128x32xf32>
    %102 = arith.mulf %97, %101 : vector<128x32xf32>
    %103 = vector.broadcast %94 : vector<1x32xf32> to vector<128x32xf32>
    %104 = arith.mulf %102, %103 : vector<128x32xf32>
    %105 = vector.broadcast %95 : vector<1x32xf32> to vector<128x32xf32>
    %106 = arith.addf %104, %105 : vector<128x32xf32>
    %cst_70 = arith.constant 0.000000e+00 : f32
    %107 = vector.broadcast %cst_70 : f32 to vector<128x32xf32>
    %108 = arith.maximumf %106, %107 : vector<128x32xf32>
    %109 = arith.addf %75, %108 : vector<128x32xf32>
    %cst_71 = arith.constant dense<0.000000e+00> : vector<128x32xf32>
    %110 = tpu.matmul %0, %109, %cst_71 {dimension_numbers = #tpu.dot_dimension_numbers<[1], [0], [0], [1], [0, 0, 1, 1], [], []>} : vector<128x128xf32>, vector<128x32xf32>, vector<128x32xf32> -> vector<128x32xf32>
    %cst_72 = arith.constant dense<0.000000e+00> : vector<128x32xf32>
    %111 = tpu.matmul %1, %109, %cst_72 {dimension_numbers = #tpu.dot_dimension_numbers<[1], [0], [0], [1], [0, 0, 1, 1], [], []>} : vector<128x128xf32>, vector<128x32xf32>, vector<128x32xf32> -> vector<128x32xf32>
    %c3 = arith.constant 3 : index
    %c0_73 = arith.constant 0 : index
    %c0_74 = arith.constant 0 : index
    %c0_75 = arith.constant 0 : index
    %112 = vector.load %arg2[%c3, %c0_73, %c0_74, %c0_75] : memref<4x3x32x32xf32, #tpu.memory_space<vmem>>, vector<1x1x32x32xf32>
    %113 = vector.shape_cast %112 : vector<1x1x32x32xf32> to vector<32x32xf32>
    %cst_76 = arith.constant dense<0.000000e+00> : vector<128x32xf32>
    %114 = tpu.matmul %109, %113, %cst_76 {dimension_numbers = #tpu.dot_dimension_numbers<[1], [0], [0], [1], [0, 0, 1, 1], [], []>} : vector<128x32xf32>, vector<32x32xf32>, vector<128x32xf32> -> vector<128x32xf32>
    %c3_77 = arith.constant 3 : index
    %c1_78 = arith.constant 1 : index
    %c0_79 = arith.constant 0 : index
    %c0_80 = arith.constant 0 : index
    %115 = vector.load %arg2[%c3_77, %c1_78, %c0_79, %c0_80] : memref<4x3x32x32xf32, #tpu.memory_space<vmem>>, vector<1x1x32x32xf32>
    %116 = vector.shape_cast %115 : vector<1x1x32x32xf32> to vector<32x32xf32>
    %cst_81 = arith.constant dense<0.000000e+00> : vector<128x32xf32>
    %117 = tpu.matmul %110, %116, %cst_81 {dimension_numbers = #tpu.dot_dimension_numbers<[1], [0], [0], [1], [0, 0, 1, 1], [], []>} : vector<128x32xf32>, vector<32x32xf32>, vector<128x32xf32> -> vector<128x32xf32>
    %118 = arith.addf %114, %117 : vector<128x32xf32>
    %c3_82 = arith.constant 3 : index
    %c2_83 = arith.constant 2 : index
    %c0_84 = arith.constant 0 : index
    %c0_85 = arith.constant 0 : index
    %119 = vector.load %arg2[%c3_82, %c2_83, %c0_84, %c0_85] : memref<4x3x32x32xf32, #tpu.memory_space<vmem>>, vector<1x1x32x32xf32>
    %120 = vector.shape_cast %119 : vector<1x1x32x32xf32> to vector<32x32xf32>
    %cst_86 = arith.constant dense<0.000000e+00> : vector<128x32xf32>
    %121 = tpu.matmul %111, %120, %cst_86 {dimension_numbers = #tpu.dot_dimension_numbers<[1], [0], [0], [1], [0, 0, 1, 1], [], []>} : vector<128x32xf32>, vector<32x32xf32>, vector<128x32xf32> -> vector<128x32xf32>
    %122 = arith.addf %118, %121 : vector<128x32xf32>
    %cst_87 = arith.constant dense<0.000000e+00> : vector<1x32xf32>
    %123 = tpu.matmul %7, %122, %cst_87 {dimension_numbers = #tpu.dot_dimension_numbers<[1], [0], [0], [1], [0, 0, 1, 1], [], []>} : vector<1x128xf32>, vector<128x32xf32>, vector<1x32xf32> -> vector<1x32xf32>
    %124 = arith.mulf %122, %122 : vector<128x32xf32>
    %cst_88 = arith.constant dense<0.000000e+00> : vector<1x32xf32>
    %125 = tpu.matmul %7, %124, %cst_88 {dimension_numbers = #tpu.dot_dimension_numbers<[1], [0], [0], [1], [0, 0, 1, 1], [], []>} : vector<1x128xf32>, vector<128x32xf32>, vector<1x32xf32> -> vector<1x32xf32>
    %126 = arith.mulf %123, %123 : vector<1x32xf32>
    %127 = arith.subf %125, %126 : vector<1x32xf32>
    %128 = vector.extract_strided_slice %5 {offsets = [6, 0], sizes = [1, 32], strides = [1, 1]} : vector<11x128xf32> to vector<1x32xf32>
    %129 = vector.extract_strided_slice %5 {offsets = [7, 0], sizes = [1, 32], strides = [1, 1]} : vector<11x128xf32> to vector<1x32xf32>
    %130 = vector.broadcast %123 : vector<1x32xf32> to vector<128x32xf32>
    %131 = arith.subf %122, %130 : vector<128x32xf32>
    %cst_89 = arith.constant 9.99999974E-6 : f32
    %132 = vector.broadcast %cst_89 : f32 to vector<1x32xf32>
    %133 = arith.addf %127, %132 : vector<1x32xf32>
    %134 = math.rsqrt %133 : vector<1x32xf32>
    %135 = vector.broadcast %134 : vector<1x32xf32> to vector<128x32xf32>
    %136 = arith.mulf %131, %135 : vector<128x32xf32>
    %137 = vector.broadcast %128 : vector<1x32xf32> to vector<128x32xf32>
    %138 = arith.mulf %136, %137 : vector<128x32xf32>
    %139 = vector.broadcast %129 : vector<1x32xf32> to vector<128x32xf32>
    %140 = arith.addf %138, %139 : vector<128x32xf32>
    %cst_90 = arith.constant 0.000000e+00 : f32
    %141 = vector.broadcast %cst_90 : f32 to vector<128x32xf32>
    %142 = arith.maximumf %140, %141 : vector<128x32xf32>
    %143 = arith.addf %109, %142 : vector<128x32xf32>
    %cst_91 = arith.constant dense<0.000000e+00> : vector<8x32xf32>
    %144 = tpu.matmul %2, %143, %cst_91 {dimension_numbers = #tpu.dot_dimension_numbers<[1], [0], [0], [1], [0, 0, 1, 1], [], []>} : vector<8x128xf32>, vector<128x32xf32>, vector<8x32xf32> -> vector<8x32xf32>
    %c0_92 = arith.constant 0 : index
    %c0_93 = arith.constant 0 : index
    %145 = vector.load %arg3[%c0_92, %c0_93] : memref<56x128xf32, #tpu.memory_space<vmem>>, vector<32x16xf32>
    %cst_94 = arith.constant dense<0.000000e+00> : vector<8x16xf32>
    %146 = tpu.matmul %144, %145, %cst_94 {dimension_numbers = #tpu.dot_dimension_numbers<[1], [0], [0], [1], [0, 0, 1, 1], [], []>} : vector<8x32xf32>, vector<32x16xf32>, vector<8x16xf32> -> vector<8x16xf32>
    %147 = vector.extract_strided_slice %5 {offsets = [8, 0], sizes = [1, 16], strides = [1, 1]} : vector<11x128xf32> to vector<1x16xf32>
    %148 = vector.broadcast %147 : vector<1x16xf32> to vector<8x16xf32>
    %149 = arith.addf %146, %148 : vector<8x16xf32>
    %cst_95 = arith.constant 0.000000e+00 : f32
    %150 = vector.broadcast %cst_95 : f32 to vector<8x16xf32>
    %151 = arith.maximumf %149, %150 : vector<8x16xf32>
    %c32 = arith.constant 32 : index
    %c0_96 = arith.constant 0 : index
    %152 = vector.load %arg3[%c32, %c0_96] : memref<56x128xf32, #tpu.memory_space<vmem>>, vector<16x8xf32>
    %cst_97 = arith.constant dense<0.000000e+00> : vector<8x8xf32>
    %153 = tpu.matmul %151, %152, %cst_97 {dimension_numbers = #tpu.dot_dimension_numbers<[1], [0], [0], [1], [0, 0, 1, 1], [], []>} : vector<8x16xf32>, vector<16x8xf32>, vector<8x8xf32> -> vector<8x8xf32>
    %154 = vector.extract_strided_slice %5 {offsets = [9, 0], sizes = [1, 8], strides = [1, 1]} : vector<11x128xf32> to vector<1x8xf32>
    %155 = vector.broadcast %154 : vector<1x8xf32> to vector<8x8xf32>
    %156 = arith.addf %153, %155 : vector<8x8xf32>
    %cst_98 = arith.constant 0.000000e+00 : f32
    %157 = vector.broadcast %cst_98 : f32 to vector<8x8xf32>
    %158 = arith.maximumf %156, %157 : vector<8x8xf32>
    %c48 = arith.constant 48 : index
    %c0_99 = arith.constant 0 : index
    %159 = vector.load %arg3[%c48, %c0_99] : memref<56x128xf32, #tpu.memory_space<vmem>>, vector<8x128xf32>
    %cst_100 = arith.constant dense<0.000000e+00> : vector<8x128xf32>
    %160 = tpu.matmul %158, %159, %cst_100 {dimension_numbers = #tpu.dot_dimension_numbers<[1], [0], [0], [1], [0, 0, 1, 1], [], []>} : vector<8x8xf32>, vector<8x128xf32>, vector<8x128xf32> -> vector<8x128xf32>
    %161 = vector.extract_strided_slice %5 {offsets = [10, 0], sizes = [1, 128], strides = [1, 1]} : vector<11x128xf32> to vector<1x128xf32>
    %162 = vector.broadcast %161 : vector<1x128xf32> to vector<8x128xf32>
    %163 = arith.addf %160, %162 : vector<8x128xf32>
    %c0_101 = arith.constant 0 : index
    %c0_102 = arith.constant 0 : index
    %164 = vector.load %arg5[%c0_101, %c0_102] : memref<8x128xf32, #tpu.memory_space<vmem>>, vector<8x128xf32>
    tpu.vector_store %arg5[%c0_101, %c0_102], %163 {strides = array<i32>} : memref<8x128xf32, #tpu.memory_space<vmem>>, vector<8x128xf32>,
    return
  }
}

</mosaic_0001>

<bundles_post_ra>
// kernel: gnn_forward.1
= control target key start
LH: loop header
LB: loop body
LE: loop exit
PB: predicated region body
PF: predicated region fallthrough
CT: control target
= control target key end

     0   :  { %vm75_vm0 = vcmask 261120   ;;  %vm8167_vm1 = vmmov 0   ;;  %vm5114_vm2 = vcmask 130048   ;;  %vm5194_vm3 = vcmask 64512   ;;  %s10336_s0 = inlined_call_operand.vmem [shape: f32[160,32], index: 0, kind: input, shape index: {}]   ;;  %s10337_s1 = inlined_call_operand.vmem [shape: f32[264,128], index: 1, kind: input, shape index: {}]   ;;  %s10338_s2 = inlined_call_operand.vmem [shape: f32[4,3,32,32], index: 2, kind: input, shape index: {}]   ;;  %s10339_s4 = inlined_call_operand.vmem [shape: f32[11,128], index: 4, kind: input, shape index: {}]   ;;  %s10340_s3 = inlined_call_operand.vmem [shape: f32[56,128], index: 3, kind: input, shape index: {}]   ;;  %s10341_s5 = inlined_call_operand.vmem [shape: f32[8,128], index: 5, kind: output, shape index: {}]  }
   0x1   :  { %v69_v0 = vld [vmem:[%s10336_s0 + $0x80] sm:$0xff]  ;;  %v70_v1 = vld [vmem:[%s10336_s0 + $0x88] sm:$0xff]  ;;  %v71_v2 = vld [vmem:[%s10336_s0 + $0x90] sm:$0xff] }
   0x2   :  { %v7409_v3 = vpack.c.bf16 %v70_v1, %v69_v0  ;;  %v72_v4 = vld [vmem:[%s10336_s0 + $0x98] sm:$0xff]  ;;  %v53_v5 = vld [vmem:[%s10336_s0] sm:$0xff]  ;;  %v54_v7 = vld [vmem:[%s10336_s0 + $0x8] sm:$0xff] }
   0x3   :  { %v7413_v6 = vpack.c.bf16 %v72_v4, %v71_v2  ;;  %6215 = vmatprep.mubr.msk.f32.mxu0 %vm75_vm0, %v53_v5  ;;  %v55_v8 = vld [vmem:[%s10336_s0 + $0x10] sm:$0xff]  ;;  %v56_v9 = vld [vmem:[%s10336_s0 + $0x18] sm:$0xff]  ;;  %v57_v10 = vld [vmem:[%s10336_s0 + $0x20] sm:$0xff] }
   0x4   :  { %7410 = vmatprep.subr.bf16.mxu0 %v7409_v3  ;;  %v58_v11 = vld [vmem:[%s10336_s0 + $0x28] sm:$0xff]  ;;  %v59_v12 = vld [vmem:[%s10336_s0 + $0x30] sm:$0xff]  ;;  %v60_v13 = vld [vmem:[%s10336_s0 + $0x38] sm:$0xff] }
   0x5   :  { %7412 = vmatpush3.bf16.msra.mxu0 %v7409_v3  ;;  %v61_v14 = vld [vmem:[%s10336_s0 + $0x40] sm:$0xff]  ;;  %v62_v15 = vld [vmem:[%s10336_s0 + $0x48] sm:$0xff]  ;;  %v63_v16 = vld [vmem:[%s10336_s0 + $0x50] sm:$0xff] }
   0x6   :  { %7414 = vmatprep.subr.bf16.mxu0 %v7413_v6  ;;  %v64_v17 = vld [vmem:[%s10336_s0 + $0x58] sm:$0xff]  ;;  %v65_v18 = vld [vmem:[%s10336_s0 + $0x60] sm:$0xff]  ;;  %v66_v19 = vld [vmem:[%s10336_s0 + $0x68] sm:$0xff] }
   0x7   :  { %v67_v20 = vld [vmem:[%s10336_s0 + $0x70] sm:$0xff]  ;;  %v68_v21 = vld [vmem:[%s10336_s0 + $0x78] sm:$0xff]  ;;  %v8279_v22 = vld [vmem:[%s10337_s1] sm:$0xff] }
   0x8   :  { %6271 = vmatprep.mubr.f32.mxu1 %v8279_v22  ;;  %v8285_v23 = vld [vmem:[%s10337_s1 + $0x80] sm:$0xff]  ;;  %v5290_v46 = vld [vmem:[%s10338_s2 + $0x28] sm:$0xff]  ;;  %v5291_v51 = vld [vmem:[%s10338_s2 + $0x30] sm:$0xff] }
   0x9   :  { %7416 = vmatpush3.bf16.msra.mxu0 %v7413_v6  ;;  %v5289_v45 = vld [vmem:[%s10338_s2 + $0x20] sm:$0xff]  ;;  %v5292_v52 = vld [vmem:[%s10338_s2 + $0x38] sm:$0xff]  ;;  %v8351_v53 = vld [vmem:[%s10337_s1 + $0x8] sm:$0xff] }
   0xa   :  { %v7481_v50 = vpack.c.bf16 %v5290_v46, %v5289_v45  ;;  %v8356_v54 = vld [vmem:[%s10337_s1 + $0x88] sm:$0xff]  ;;  %v8361_v55 = vld [vmem:[%s10337_s1 + $0x10] sm:$0xff]  ;;  %v7485_v57 = vpack.c.bf16 %v5292_v52, %v5291_v51  ;;  %v8374_v58 = vld [vmem:[%s10337_s1 + $0x18] sm:$0xff] }
   0xb   :  { %v8366_v56 = vld [vmem:[%s10337_s1 + $0x90] sm:$0xff]  ;;  %v8380_v59 = vld [vmem:[%s10337_s1 + $0x98] sm:$0xff]  ;;  %v8385_v60 = vld [vmem:[%s10337_s1 + $0x20] sm:$0xff] }
   0xc   :  { %6216 = vmatmul.mubr.msk.f32.vlgmr.msra.gmra.mrb[0].mxu0 %vm75_vm0, %v54_v7  ;;  %v8390_v61 = vld [vmem:[%s10337_s1 + $0xa0] sm:$0xff]  ;;  %v8398_v62 = vld [vmem:[%s10337_s1 + $0x28] sm:$0xff]  ;;  %v8409_v0 = vld [vmem:[%s10337_s1 + $0x30] sm:$0xff] }
   0xd   :  { %6218 = vmatprep.mubr.msk.f32.mxu0 %vm75_vm0, %v55_v8  ;;  %v8404_v63 = vld [vmem:[%s10337_s1 + $0xa8] sm:$0xff]  ;;  %v8414_v1 = vld [vmem:[%s10337_s1 + $0xb0] sm:$0xff]  ;;  %v8422_v2 = vld [vmem:[%s10337_s1 + $0x38] sm:$0xff] }
   0xe   :  { %v8428_v3 = vld [vmem:[%s10337_s1 + $0xb8] sm:$0xff]  ;;  %v8433_v4 = vld [vmem:[%s10337_s1 + $0x40] sm:$0xff]  ;;  %v8446_v6 = vld [vmem:[%s10337_s1 + $0x48] sm:$0xff] }
   0xf   :  { %10397 = vst [vmem:[#allocation2_spill] sm:$0xff] %v8433_v4  ;;  %v8438_v5 = vld [vmem:[%s10337_s1 + $0xc0] sm:$0xff]  ;;  %10399 = vst [vmem:[#allocation4_spill] sm:$0xff] %v8446_v6  ;;  %v8452_v7 = vld [vmem:[%s10337_s1 + $0xc8] sm:$0xff] }
  0x10   :  { %6219 = vmatmul.mubr.msk.f32.gmra.mrb[2].mxu0 %vm75_vm0, %v56_v9  ;;  %10398 = vst [vmem:[#allocation3_spill] sm:$0xff] %v8438_v5  ;;  %10400 = vst [vmem:[#allocation5_spill] sm:$0xff] %v8452_v7  ;;  %v8457_v8 = vld [vmem:[%s10337_s1 + $0x50] sm:$0xff]  ;;  %v5325_v46 = vld [vmem:[%s10338_s2 + $0x40] sm:$0xff] }
  0x11   :  { %6221 = vmatprep.mubr.msk.f32.mxu0 %vm75_vm0, %v57_v10  ;;  %10401 = vst [vmem:[#allocation6_spill] sm:$0xff] %v8457_v8  ;;  %v8462_v9 = vld [vmem:[%s10337_s1 + $0xd0] sm:$0xff]  ;;  %v8470_v10 = vld [vmem:[%s10337_s1 + $0x58] sm:$0xff] }
  0x12   :  { %10402 = vst [vmem:[#allocation7_spill] sm:$0xff] %v8462_v9  ;;  %10403 = vst [vmem:[#allocation8_spill] sm:$0xff] %v8470_v10 }
  0x14   :  { %6222 = vmatmul.mubr.msk.f32.gmra.mrb[4].mxu0 %vm75_vm0, %v58_v11  ;;  %v8476_v11 = vld [vmem:[%s10337_s1 + $0xd8] sm:$0xff] }
  0x15   :  { %6224 = vmatprep.mubr.msk.f32.mxu0 %vm75_vm0, %v59_v12  ;;  %10404 = vst [vmem:[#allocation9_spill] sm:$0xff] %v8476_v11  ;;  %v8481_v12 = vld [vmem:[%s10337_s1 + $0x60] sm:$0xff] }
  0x16   :  { %10405 = vst [vmem:[#allocation10_spill] sm:$0xff] %v8481_v12 }
  0x18   :  { %6225 = vmatmul.mubr.msk.f32.gmra.mrb[6].mxu0 %vm75_vm0, %v60_v13  ;;  %v8486_v13 = vld [vmem:[%s10337_s1 + $0xe0] sm:$0xff] }
  0x19   :  { %6227 = vmatprep.mubr.msk.f32.mxu0 %vm75_vm0, %v61_v14  ;;  %10406 = vst [vmem:[#allocation11_spill] sm:$0xff] %v8486_v13  ;;  %v8494_v14 = vld [vmem:[%s10337_s1 + $0x68] sm:$0xff] }
  0x1a   :  { %10407 = vst [vmem:[#allocation12_spill] sm:$0xff] %v8494_v14 }
  0x1c   :  { %6228 = vmatmul.mubr.msk.f32.gmra.mrb[8].mxu0 %vm75_vm0, %v62_v15  ;;  %v8500_v15 = vld [vmem:[%s10337_s1 + $0xe8] sm:$0xff] }
  0x1d   :  { %6230 = vmatprep.mubr.msk.f32.mxu0 %vm75_vm0, %v63_v16  ;;  %10408 = vst [vmem:[#allocation13_spill] sm:$0xff] %v8500_v15  ;;  %v8505_v16 = vld [vmem:[%s10337_s1 + $0x70] sm:$0xff] }
  0x1e   :  { %10409 = vst [vmem:[#allocation14_spill] sm:$0xff] %v8505_v16 }
  0x20   :  { %6231 = vmatmul.mubr.msk.f32.gmra.mrb[10].mxu0 %vm75_vm0, %v64_v17  ;;  %v8510_v17 = vld [vmem:[%s10337_s1 + $0xf0] sm:$0xff] }
  0x21   :  { %6233 = vmatprep.mubr.msk.f32.mxu0 %vm75_vm0, %v65_v18  ;;  %10410 = vst [vmem:[#allocation15_spill] sm:$0xff] %v8510_v17  ;;  %v8518_v18 = vld [vmem:[%s10337_s1 + $0x78] sm:$0xff] }
  0x22   :  { %10411 = vst [vmem:[#allocation16_spill] sm:$0xff] %v8518_v18 }
  0x24   :  { %6234 = vmatmul.mubr.msk.f32.gmra.mrb[12].mxu0 %vm75_vm0, %v66_v19  ;;  %v8524_v19 = vld [vmem:[%s10337_s1 + $0xf8] sm:$0xff] }
  0x25   :  { %6236 = vmatprep.mubr.msk.f32.mxu0 %vm75_vm0, %v67_v20  ;;  %10412 = vst [vmem:[#allocation17_spill] sm:$0xff] %v8524_v19  ;;  %v559_v20 = vld [vmem:[%s10338_s2] sm:$0xff] }
  0x28   :  { %6237 = vmatmul.mubr.msk.f32.gmra.mrb[14].mxu0 %vm75_vm0, %v68_v21  ;;  %v560_v21 = vld [vmem:[%s10338_s2 + $0x8] sm:$0xff] }
  0x29   :  { %6327 = vmatprep.mubr.f32.mxu0 %v8285_v23 }
  0xdf   :  { %v8288_v24 = vpop.f32.mrb[0].mxu0 }
  0xe0   :  { %v8290_v25 = vpop.f32.mrb[1].mxu0 }
  0xe1   :  { %v7417_v26 = vpack.c.bf16 %v8288_v24, %v8290_v25 }
  0xe3   :  { %v8294_v27 = vpop.f32.mrb[2].mxu0  ;;  %7418 = vmatprep.subr.bf16.mxu1 %v7417_v26  ;;  %7450 = vmatprep.subr.bf16.mxu0 %v7417_v26 }
  0xe4   :  { %v8296_v28 = vpop.f32.mrb[3].mxu0  ;;  %7420 = vmatpush3.bf16.msra.mxu1 %v7417_v26  ;;  %7452 = vmatpush3.bf16.msra.mxu0 %v7417_v26  ;;  %v7489_v26 = vpack.c.bf16 %v560_v21, %v559_v20 }
  0xe5   :  { %v7421_v29 = vpack.c.bf16 %v8294_v27, %v8296_v28 }
  0xe7   :  { %v8300_v30 = vpop.f32.mrb[4].mxu0  ;;  %7422 = vmatprep.subr.bf16.mxu1 %v7421_v29  ;;  %7454 = vmatprep.subr.bf16.mxu0 %v7421_v29 }
  0xe8   :  { %v8302_v31 = vpop.f32.mrb[5].mxu0  ;;  %7424 = vmatpush3.bf16.msra.mxu1 %v7421_v29  ;;  %7456 = vmatpush3.bf16.msra.mxu0 %v7421_v29  ;;  %v561_v29 = vld [vmem:[%s10338_s2 + $0x10] sm:$0xff] }
  0xe9   :  { %v7425_v32 = vpack.c.bf16 %v8300_v30, %v8302_v31 }
  0xeb   :  { %v8306_v33 = vpop.f32.mrb[6].mxu0  ;;  %7426 = vmatprep.subr.bf16.mxu1 %v7425_v32  ;;  %7458 = vmatprep.subr.bf16.mxu0 %v7425_v32 }
  0xec   :  { %v8308_v34 = vpop.f32.mrb[7].mxu0  ;;  %7428 = vmatpush3.bf16.msra.mxu1 %v7425_v32  ;;  %7460 = vmatpush3.bf16.msra.mxu0 %v7425_v32  ;;  %v562_v32 = vld [vmem:[%s10338_s2 + $0x18] sm:$0xff] }
  0xed   :  { %v7429_v35 = vpack.c.bf16 %v8306_v33, %v8308_v34 }
  0xef   :  { %v8312_v36 = vpop.f32.mrb[8].mxu0  ;;  %7430 = vmatprep.subr.bf16.mxu1 %v7429_v35  ;;  %7462 = vmatprep.subr.bf16.mxu0 %v7429_v35 }
  0xf0   :  { %v8314_v37 = vpop.f32.mrb[9].mxu0  ;;  %7432 = vmatpush3.bf16.msra.mxu1 %v7429_v35  ;;  %7464 = vmatpush3.bf16.msra.mxu0 %v7429_v35 }
  0xf1   :  { %v7433_v38 = vpack.c.bf16 %v8312_v36, %v8314_v37 }
  0xf3   :  { %v8318_v39 = vpop.f32.mrb[10].mxu0  ;;  %7434 = vmatprep.subr.bf16.mxu1 %v7433_v38  ;;  %7466 = vmatprep.subr.bf16.mxu0 %v7433_v38 }
  0xf4   :  { %v8320_v40 = vpop.f32.mrb[11].mxu0  ;;  %7436 = vmatpush3.bf16.msra.mxu1 %v7433_v38  ;;  %7468 = vmatpush3.bf16.msra.mxu0 %v7433_v38 }
  0xf5   :  { %v7437_v41 = vpack.c.bf16 %v8318_v39, %v8320_v40 }
  0xf7   :  { %v8324_v42 = vpop.f32.mrb[12].mxu0  ;;  %7438 = vmatprep.subr.bf16.mxu1 %v7437_v41  ;;  %7470 = vmatprep.subr.bf16.mxu0 %v7437_v41 }
  0xf8   :  { %v8326_v43 = vpop.f32.mrb[13].mxu0  ;;  %7440 = vmatpush3.bf16.msra.mxu1 %v7437_v41  ;;  %7472 = vmatpush3.bf16.msra.mxu0 %v7437_v41 }
  0xf9   :  { %v7441_v44 = vpack.c.bf16 %v8324_v42, %v8326_v43 }
  0xfb   :  { %v8336_v47 = vpop.f32.mrb[14].mxu0  ;;  %7442 = vmatprep.subr.bf16.mxu1 %v7441_v44  ;;  %7474 = vmatprep.subr.bf16.mxu0 %v7441_v44 }
  0xfc   :  { %v8338_v48 = vpop.f32.mrb[15].mxu0  ;;  %7444 = vmatpush3.bf16.msra.mxu1 %v7441_v44  ;;  %7476 = vmatpush3.bf16.msra.mxu0 %v7441_v44  ;;  %v7493_v44 = vpack.c.bf16 %v562_v32, %v561_v29 }
  0xfd   :  { %v7445_v49 = vpack.c.bf16 %v8336_v47, %v8338_v48 }
  0xff   :  { %7446 = vmatprep.subr.bf16.mxu1 %v7445_v49  ;;  %7478 = vmatprep.subr.bf16.mxu0 %v7445_v49 }
 0x100   :  { %7448 = vmatpush3.bf16.msra.mxu1 %v7445_v49  ;;  %7480 = vmatpush3.bf16.msra.mxu0 %v7445_v49  ;;  %v5326_v49 = vld [vmem:[%s10338_s2 + $0x48] sm:$0xff] }
 0x101   :  { %7482 = vmatprep.subr.bf16.mxu1 %v7481_v50 }
 0x103   :  { %6272 = vmatmul.mubr.f32.vlgmr.msra.gmra.mrb[0].mxu1 %v8351_v53  ;;  %6328 = vmatmul.mubr.f32.vlgmr.msra.gmra.mrb[16].mxu0 %v8356_v54 }
 0x104   :  { %6274 = vmatprep.mubr.f32.mxu1 %v8361_v55  ;;  %6330 = vmatprep.mubr.f32.mxu0 %v8366_v56 }
 0x105   :  { %7484 = vmatpush3.bf16.msra.mxu1 %v7481_v50 }
 0x106   :  { %7486 = vmatprep.subr.bf16.mxu1 %v7485_v57 }
 0x107   :  { %6275 = vmatmul.mubr.f32.gmra.mrb[2].mxu1 %v8374_v58  ;;  %6331 = vmatmul.mubr.f32.gmra.mrb[18].mxu0 %v8380_v59 }
 0x108   :  { %6277 = vmatprep.mubr.f32.mxu1 %v8385_v60  ;;  %6333 = vmatprep.mubr.f32.mxu0 %v8390_v61 }
 0x109   :  { %7488 = vmatpush3.bf16.msra.mxu1 %v7485_v57  ;;  %v7497_v57 = vpack.c.bf16 %v5326_v49, %v5325_v46 }
 0x10a   :  { %7490 = vmatprep.subr.bf16.mxu1 %v7489_v26 }
 0x10b   :  { %6278 = vmatmul.mubr.f32.gmra.mrb[4].mxu1 %v8398_v62  ;;  %6334 = vmatmul.mubr.f32.gmra.mrb[20].mxu0 %v8404_v63 }
 0x10c   :  { %6280 = vmatprep.mubr.f32.mxu1 %v8409_v0  ;;  %6336 = vmatprep.mubr.f32.mxu0 %v8414_v1 }
 0x10f   :  { %6281 = vmatmul.mubr.f32.gmra.mrb[6].mxu1 %v8422_v2  ;;  %6337 = vmatmul.mubr.f32.gmra.mrb[22].mxu0 %v8428_v3 }
 0x110   :  { %6283 = vmatprep.mubr.f32.mxu1 %v8433_v4  ;;  %6339 = vmatprep.mubr.f32.mxu0 %v8438_v5 }
 0x113   :  { %6284 = vmatmul.mubr.f32.gmra.mrb[8].mxu1 %v8446_v6  ;;  %6340 = vmatmul.mubr.f32.gmra.mrb[24].mxu0 %v8452_v7 }
 0x114   :  { %6286 = vmatprep.mubr.f32.mxu1 %v8457_v8  ;;  %6342 = vmatprep.mubr.f32.mxu0 %v8462_v9 }
 0x117   :  { %6287 = vmatmul.mubr.f32.gmra.mrb[10].mxu1 %v8470_v10  ;;  %6343 = vmatmul.mubr.f32.gmra.mrb[26].mxu0 %v8476_v11 }
 0x118   :  { %6289 = vmatprep.mubr.f32.mxu1 %v8481_v12  ;;  %6345 = vmatprep.mubr.f32.mxu0 %v8486_v13 }
 0x11b   :  { %6290 = vmatmul.mubr.f32.gmra.mrb[12].mxu1 %v8494_v14  ;;  %6346 = vmatmul.mubr.f32.gmra.mrb[28].mxu0 %v8500_v15 }
 0x11c   :  { %6292 = vmatprep.mubr.f32.mxu1 %v8505_v16  ;;  %6348 = vmatprep.mubr.f32.mxu0 %v8510_v17 }
 0x11f   :  { %6293 = vmatmul.mubr.f32.gmra.mrb[14].mxu1 %v8518_v18  ;;  %6349 = vmatmul.mubr.f32.gmra.mrb[30].mxu0 %v8524_v19 }
 0x1d6   :  { %v6273_v35 = vpop.f32.mrb[0].mxu1  ;;  %v8540_v38 = vpop.f32.mrb[16].mxu0 }
 0x1d7   :  { %v335_v41 = vpop.f32.mrb[1].mxu1  ;;  %v8542_v45 = vpop.f32.mrb[17].mxu0 }
 0x1d8   :  { %6359 = vmatprep.mubr.msk.f32.mxu1 %vm75_vm0, %v335_v41 }
 0x1d9   :  { %6360 = vmatmul.mubr.msk.f32.vlgmr.msra.gmra.mrb[16].mxu1 %vm75_vm0, %v6273_v35 }
 0x1da   :  { %7492 = vmatpush3.bf16.msra.mxu1 %v7489_v26  ;;  %v6276_v50 = vpop.f32.mrb[2].mxu1  ;;  %v8552_v51 = vpop.f32.mrb[18].mxu0 }
 0x1db   :  { %v345_v52 = vpop.f32.mrb[3].mxu1  ;;  %7494 = vmatprep.subr.bf16.mxu1 %v7493_v44  ;;  %v8554_v20 = vpop.f32.mrb[19].mxu0 }
 0x1dc   :  { %6362 = vmatprep.mubr.msk.f32.mxu1 %vm75_vm0, %v345_v52 }
 0x1dd   :  { %6363 = vmatmul.mubr.msk.f32.gmra.mrb[18].mxu1 %vm75_vm0, %v6276_v50 }
 0x1de   :  { %v6279_v21 = vpop.f32.mrb[4].mxu1  ;;  %7496 = vmatpush3.bf16.msra.mxu1 %v7493_v44  ;;  %v8558_v29 = vpop.f32.mrb[20].mxu0 }
 0x1df   :  { %v355_v32 = vpop.f32.mrb[5].mxu1  ;;  %7498 = vmatprep.subr.bf16.mxu1 %v7497_v57  ;;  %v500_v35 = vpop.f32.mrb[21].mxu0 }
 0x1e0   :  { %6365 = vmatprep.mubr.msk.f32.mxu1 %vm75_vm0, %v355_v32 }
 0x1e1   :  { %6366 = vmatmul.mubr.msk.f32.gmra.mrb[20].mxu1 %vm75_vm0, %v6279_v21 }
 0x1e2   :  { %v6282_v26 = vpop.f32.mrb[6].mxu1  ;;  %v6338_v41 = vpop.f32.mrb[22].mxu0 }
 0x1e3   :  { %v365_v46 = vpop.f32.mrb[7].mxu1  ;;  %v510_v49 = vpop.f32.mrb[23].mxu0 }
 0x1e4   :  { %6368 = vmatprep.mubr.msk.f32.mxu1 %vm75_vm0, %v365_v46 }
 0x1e5   :  { %6369 = vmatmul.mubr.msk.f32.gmra.mrb[22].mxu1 %vm75_vm0, %v6282_v26 }
 0x1e6   :  { %v6285_v50 = vpop.f32.mrb[8].mxu1  ;;  %v6341_v52 = vpop.f32.mrb[24].mxu0 }
 0x1e7   :  { %v375_v44 = vpop.f32.mrb[9].mxu1  ;;  %v520_v19 = vpop.f32.mrb[25].mxu0 }
 0x1e8   :  { %6371 = vmatprep.mubr.msk.f32.mxu1 %vm75_vm0, %v375_v44 }
 0x1e9   :  { %6372 = vmatmul.mubr.msk.f32.gmra.mrb[24].mxu1 %vm75_vm0, %v6285_v50 }
 0x1ea   :  { %v6288_v18 = vpop.f32.mrb[10].mxu1  ;;  %v6344_v32 = vpop.f32.mrb[26].mxu0 }
 0x1eb   :  { %v385_v17 = vpop.f32.mrb[11].mxu1  ;;  %v530_v21 = vpop.f32.mrb[27].mxu0 }
 0x1ec   :  { %6374 = vmatprep.mubr.msk.f32.mxu1 %vm75_vm0, %v385_v17  ;;  %v5327_v17 = vld [vmem:[%s10338_s2 + $0x50] sm:$0xff] }
 0x1ed   :  { %6375 = vmatmul.mubr.msk.f32.gmra.mrb[26].mxu1 %vm75_vm0, %v6288_v18  ;;  %v5328_v18 = vld [vmem:[%s10338_s2 + $0x58] sm:$0xff] }
 0x1ee   :  { %v6291_v16 = vpop.f32.mrb[12].mxu1  ;;  %v6347_v46 = vpop.f32.mrb[28].mxu0 }
 0x1ef   :  { %v395_v15 = vpop.f32.mrb[13].mxu1  ;;  %v540_v26 = vpop.f32.mrb[29].mxu0 }
 0x1f0   :  { %6377 = vmatprep.mubr.msk.f32.mxu1 %vm75_vm0, %v395_v15  ;;  %v7501_v15 = vpack.c.bf16 %v5328_v18, %v5327_v17 }
 0x1f1   :  { %6378 = vmatmul.mubr.msk.f32.gmra.mrb[28].mxu1 %vm75_vm0, %v6291_v16 }
 0x1f2   :  { %v6294_v14 = vpop.f32.mrb[14].mxu1  ;;  %v6350_v44 = vpop.f32.mrb[30].mxu0 }
 0x1f3   :  { %v405_v13 = vpop.f32.mrb[15].mxu1  ;;  %v550_v50 = vpop.f32.mrb[31].mxu0 }
 0x1f4   :  { %6380 = vmatprep.mubr.msk.f32.mxu1 %vm75_vm0, %v405_v13  ;;  %v10360_v13 = vmov 0.0|0.0  }
 0x1f5   :  { %6381 = vmatmul.mubr.msk.f32.gmra.mrb[30].mxu1 %vm75_vm0, %v6294_v14  ;;  %7505 = vmatprep.subr.bf16.mxu0 %v10360_v13  ;;  %v10349_v14 = vmov 0.0  }
 0x1f6   :  { %6391 = vmatprep.mubr.msk.f32.mxu1 %vm75_vm0, %v8290_v25  ;;  %6479 = vmatprep.mubr.msk.f32.mxu0 %vm8167_vm1, %v10349_v14 }
 0x1f9   :  { %6392 = vmatmul.mubr.msk.f32.vlgmr.msra.gmra.mrb[16].mxu1 %vm75_vm0, %v8288_v24 }
 0x1fa   :  { %7500 = vmatpush3.bf16.msra.mxu1 %v7497_v57  ;;  %6394 = vmatprep.mubr.msk.f32.mxu1 %vm75_vm0, %v8296_v28 }
 0x1fb   :  { %7502 = vmatprep.subr.bf16.mxu1 %v7501_v15 }
 0x1fd   :  { %6395 = vmatmul.mubr.msk.f32.gmra.mrb[18].mxu1 %vm75_vm0, %v8294_v27 }
 0x1fe   :  { %6397 = vmatprep.mubr.msk.f32.mxu1 %vm75_vm0, %v8302_v31  ;;  %7504 = vmatpush3.bf16.msra.mxu1 %v7501_v15 }
 0x201   :  { %6398 = vmatmul.mubr.msk.f32.gmra.mrb[20].mxu1 %vm75_vm0, %v8300_v30 }
 0x202   :  { %6400 = vmatprep.mubr.msk.f32.mxu1 %vm75_vm0, %v8308_v34 }
 0x205   :  { %6401 = vmatmul.mubr.msk.f32.gmra.mrb[22].mxu1 %vm75_vm0, %v8306_v33 }
 0x206   :  { %6403 = vmatprep.mubr.msk.f32.mxu1 %vm75_vm0, %v8314_v37 }
 0x209   :  { %6404 = vmatmul.mubr.msk.f32.gmra.mrb[24].mxu1 %vm75_vm0, %v8312_v36 }
 0x20a   :  { %6406 = vmatprep.mubr.msk.f32.mxu1 %vm75_vm0, %v8320_v40 }
 0x20d   :  { %6407 = vmatmul.mubr.msk.f32.gmra.mrb[26].mxu1 %vm75_vm0, %v8318_v39 }
 0x20e   :  { %6409 = vmatprep.mubr.msk.f32.mxu1 %vm75_vm0, %v8326_v43 }
 0x211   :  { %6410 = vmatmul.mubr.msk.f32.gmra.mrb[28].mxu1 %vm75_vm0, %v8324_v42 }
 0x212   :  { %6412 = vmatprep.mubr.msk.f32.mxu1 %vm75_vm0, %v8338_v48 }
 0x215   :  { %6413 = vmatmul.mubr.msk.f32.gmra.mrb[30].mxu1 %vm75_vm0, %v8336_v47 }
 0x216   :  { %6423 = vmatprep.mubr.msk.f32.mxu1 %vm75_vm0, %v8542_v45 }
 0x219   :  { %6424 = vmatmul.mubr.msk.f32.vlgmr.msra.gmra.mrb[16].mxu1 %vm75_vm0, %v8540_v38 }
 0x21a   :  { %6426 = vmatprep.mubr.msk.f32.mxu1 %vm75_vm0, %v8554_v20 }
 0x21d   :  { %6427 = vmatmul.mubr.msk.f32.gmra.mrb[18].mxu1 %vm75_vm0, %v8552_v51 }
 0x21e   :  { %6429 = vmatprep.mubr.msk.f32.mxu1 %vm75_vm0, %v500_v35 }
 0x221   :  { %6430 = vmatmul.mubr.msk.f32.gmra.mrb[20].mxu1 %vm75_vm0, %v8558_v29 }
 0x222   :  { %6432 = vmatprep.mubr.msk.f32.mxu1 %vm75_vm0, %v510_v49 }
 0x225   :  { %6433 = vmatmul.mubr.msk.f32.gmra.mrb[22].mxu1 %vm75_vm0, %v6338_v41 }
 0x226   :  { %6435 = vmatprep.mubr.msk.f32.mxu1 %vm75_vm0, %v520_v19 }
 0x229   :  { %6436 = vmatmul.mubr.msk.f32.gmra.mrb[24].mxu1 %vm75_vm0, %v6341_v52 }
 0x22a   :  { %6438 = vmatprep.mubr.msk.f32.mxu1 %vm75_vm0, %v530_v21 }
 0x22d   :  { %6439 = vmatmul.mubr.msk.f32.gmra.mrb[26].mxu1 %vm75_vm0, %v6344_v32 }
 0x22e   :  { %6441 = vmatprep.mubr.msk.f32.mxu1 %vm75_vm0, %v540_v26 }
 0x231   :  { %6442 = vmatmul.mubr.msk.f32.gmra.mrb[28].mxu1 %vm75_vm0, %v6347_v46 }
 0x232   :  { %6444 = vmatprep.mubr.msk.f32.mxu1 %vm75_vm0, %v550_v50 }
 0x235   :  { %6445 = vmatmul.mubr.msk.f32.gmra.mrb[30].mxu1 %vm75_vm0, %v6350_v44 }
 0x236   :  { %6605 = vmatprep.mubr.f32.mxu1 %v8285_v23 }
 0x2ec   :  { %v8635_v16 = vpop.f32.mrb[16].mxu1 }
 0x2ed   :  { %v8639_v19 = vmul.f32 %v8635_v16, %v8635_v16  ;;  %v8641_v38 = vpop.f32.mrb[17].mxu1 }
 0x2ee   :  { %v7506_v45 = vpack.c.bf16 %v8635_v16, %v8641_v38  ;;  %v1238_v23 = vmul.f32 %v8641_v38, %v8641_v38 }
 0x2f0   :  { %v7530_v51 = vpack.c.bf16 %v8639_v19, %v1238_v23  ;;  %v8648_v57 = vpop.f32.mrb[18].mxu1  ;;  %7507 = vmatpush3.bf16.msra.mxu0 %v7506_v45 }
 0x2f1   :  { %v1241_v20 = vmul.f32 %v8648_v57, %v8648_v57  ;;  %v8652_v29 = vpop.f32.mrb[19].mxu1  ;;  %7508 = vmatprep.subr.bf16.mxu0 %v10360_v13 }
 0x2f2   :  { %v7509_v35 = vpack.c.bf16 %v8648_v57, %v8652_v29  ;;  %v1240_v41 = vmul.f32 %v8652_v29, %v8652_v29 }
 0x2f4   :  { %v7533_v49 = vpack.c.bf16 %v1241_v20, %v1240_v41  ;;  %v8659_v52 = vpop.f32.mrb[20].mxu1  ;;  %7510 = vmatpush3.bf16.msra.mxu0 %v7509_v35 }
 0x2f5   :  { %v1243_v32 = vmul.f32 %v8659_v52, %v8659_v52  ;;  %v8663_v21 = vpop.f32.mrb[21].mxu1  ;;  %7511 = vmatprep.subr.bf16.mxu0 %v10360_v13 }
 0x2f6   :  { %v7512_v46 = vpack.c.bf16 %v8659_v52, %v8663_v21  ;;  %v1242_v26 = vmul.f32 %v8663_v21, %v8663_v21 }
 0x2f8   :  { %v7536_v44 = vpack.c.bf16 %v1243_v32, %v1242_v26  ;;  %v8670_v50 = vpop.f32.mrb[22].mxu1  ;;  %7513 = vmatpush3.bf16.msra.mxu0 %v7512_v46 }
 0x2f9   :  { %v1245_v17 = vmul.f32 %v8670_v50, %v8670_v50  ;;  %v8674_v18 = vpop.f32.mrb[23].mxu1  ;;  %7514 = vmatprep.subr.bf16.mxu0 %v10360_v13 }
 0x2fa   :  { %v7515_v15 = vpack.c.bf16 %v8670_v50, %v8674_v18  ;;  %v1244_v19 = vmul.f32 %v8674_v18, %v8674_v18 }
 0x2fc   :  { %v7539_v45 = vpack.c.bf16 %v1245_v17, %v1244_v19  ;;  %v8681_v23 = vpop.f32.mrb[24].mxu1  ;;  %7516 = vmatpush3.bf16.msra.mxu0 %v7515_v15 }
 0x2fd   :  { %v1247_v20 = vmul.f32 %v8681_v23, %v8681_v23  ;;  %v8685_v35 = vpop.f32.mrb[25].mxu1  ;;  %7517 = vmatprep.subr.bf16.mxu0 %v10360_v13 }
 0x2fe   :  { %v7518_v41 = vpack.c.bf16 %v8681_v23, %v8685_v35  ;;  %v1246_v32 = vmul.f32 %v8685_v35, %v8685_v35 }
 0x300   :  { %v7542_v46 = vpack.c.bf16 %v1247_v20, %v1246_v32  ;;  %v8692_v26 = vpop.f32.mrb[26].mxu1  ;;  %7519 = vmatpush3.bf16.msra.mxu0 %v7518_v41 }
 0x301   :  { %v1249_v17 = vmul.f32 %v8692_v26, %v8692_v26  ;;  %v8696_v15 = vpop.f32.mrb[27].mxu1  ;;  %7520 = vmatprep.subr.bf16.mxu0 %v10360_v13 }
 0x302   :  { %v7521_v19 = vpack.c.bf16 %v8692_v26, %v8696_v15  ;;  %v1248_v14 = vmul.f32 %v8696_v15, %v8696_v15 }
 0x304   :  { %v7545_v12 = vpack.c.bf16 %v1249_v17, %v1248_v14  ;;  %v8703_v11 = vpop.f32.mrb[28].mxu1  ;;  %7522 = vmatpush3.bf16.msra.mxu0 %v7521_v19 }
 0x305   :  { %v1251_v20 = vmul.f32 %v8703_v11, %v8703_v11  ;;  %v8707_v41 = vpop.f32.mrb[29].mxu1  ;;  %7523 = vmatprep.subr.bf16.mxu0 %v10360_v13 }
 0x306   :  { %v7524_v32 = vpack.c.bf16 %v8703_v11, %v8707_v41  ;;  %v1250_v10 = vmul.f32 %v8707_v41, %v8707_v41 }
 0x308   :  { %v7548_v9 = vpack.c.bf16 %v1251_v20, %v1250_v10  ;;  %v8714_v8 = vpop.f32.mrb[30].mxu1  ;;  %7525 = vmatpush3.bf16.msra.mxu0 %v7524_v32  ;;  %v10358_v10 = vmov 0.0078125   ;;  %v10413_v20 = vmov 0.0  }
 0x309   :  { %v1253_v14 = vmul.f32 %v8714_v8, %v8714_v8  ;;  %v8718_v17 = vpop.f32.mrb[31].mxu1  ;;  %7526 = vmatprep.subr.bf16.mxu0 %v10360_v13 }
 0x30a   :  { %v7527_v19 = vpack.c.bf16 %v8714_v8, %v8718_v17  ;;  %v1252_v7 = vmul.f32 %v8718_v17, %v8718_v17 }
 0x30c   :  { %v7551_v6 = vpack.c.bf16 %v1253_v14, %v1252_v7  ;;  %7528 = vmatpush3.bf16.msra.mxu0 %v7527_v19  ;;  %v1326_v7 = vlaneseq }
 0x30d   :  { %7529 = vmatprep.subr.bf16.mxu0 %v10360_v13 }
 0x30f   :  { %6480 = vmatmul.mubr.f32.vlgmr.msra.gmra.mrb[32].mxu0 %v10358_v10 }
 0x310   :  { %7531 = vmatpush3.bf16.msra.mxu0 %v7530_v51  ;;  %6514 = vmatprep.mubr.msk.f32.mxu0 %vm8167_vm1, %v10413_v20  ;;  %v8738_v51 = vshrl.u32 %v1326_v7, 7 }
 0x311   :  { %7532 = vmatprep.subr.bf16.mxu0 %v10360_v13 }
 0x312   :  { %10414 = vst [vmem:[#allocation18_spill] sm:$0xff] %v8738_v51  ;;  %v8766_v7 = vsub.s32 0, %v8738_v51 }
 0x314   :  { %7534 = vmatpush3.bf16.msra.mxu0 %v7533_v49  ;;  %v2562_v49 = vsub.s32 3, %v8738_v51  ;;  %10421 = vst [vmem:[#allocation25_spill] sm:$0xff] %v8766_v7 }
 0x315   :  { %7535 = vmatprep.subr.bf16.mxu0 %v10360_v13 }
 0x318   :  { %7537 = vmatpush3.bf16.msra.mxu0 %v7536_v44  ;;  %v8744_v44 = vld [vmem:[%s10339_s4] sm:$0xff] }
 0x319   :  { %7538 = vmatprep.subr.bf16.mxu0 %v10360_v13  ;;  %10415 = vst [vmem:[#allocation19_spill] sm:$0xff] %v8744_v44 }
 0x31c   :  { %7540 = vmatpush3.bf16.msra.mxu0 %v7539_v45  ;;  %v4906_v45 = vsub.s32 7, %v8738_v51 }
 0x31d   :  { %7541 = vmatprep.subr.bf16.mxu0 %v10360_v13 }
 0x31e   :  { %v8763_v19 = vrot.slane %v8744_v44, %v4906_v45 }
 0x320   :  { %7543 = vmatpush3.bf16.msra.mxu0 %v7542_v46  ;;  %10420 = vst [vmem:[#allocation24_spill] sm:$0xff] %v8763_v19 }
 0x321   :  { %7544 = vmatprep.subr.bf16.mxu0 %v10360_v13 }
 0x324   :  { %7546 = vmatpush3.bf16.msra.mxu0 %v7545_v12  ;;  %v3714_v12 = vsub.s32 4, %v8738_v51 }
 0x325   :  { %7547 = vmatprep.subr.bf16.mxu0 %v10360_v13 }
 0x326   :  { %v8754_v46 = vrot.slane %v8744_v44, %v3714_v12 }
 0x328   :  { %7549 = vmatpush3.bf16.msra.mxu0 %v7548_v9  ;;  %v3734_v9 = vsub.s32 5, %v8738_v51  ;;  %10417 = vst [vmem:[#allocation21_spill] sm:$0xff] %v8754_v46 }
 0x329   :  { %7550 = vmatprep.subr.bf16.mxu0 %v10360_v13 }
 0x32a   :  { %v8757_v32 = vrot.slane %v8744_v44, %v3734_v9 }
 0x32c   :  { %7552 = vmatpush3.bf16.msra.mxu0 %v7551_v6  ;;  %v4886_v6 = vsub.s32 6, %v8738_v51  ;;  %10418 = vst [vmem:[#allocation22_spill] sm:$0xff] %v8757_v32 }
 0x32e   :  { %v8760_v14 = vrot.slane %v8744_v44, %v4886_v6 }
 0x32f   :  { %6515 = vmatmul.mubr.f32.vlgmr.msra.gmra.mrb[34].mxu0 %v10358_v10 }
 0x330   :  { %6549 = vmatprep.mubr.f32.mxu0 %v8279_v22  ;;  %v8751_v22 = vrot.slane %v8744_v44, %v2562_v49  ;;  %10419 = vst [vmem:[#allocation23_spill] sm:$0xff] %v8760_v14 }
 0x332   :  { %10416 = vst [vmem:[#allocation20_spill] sm:$0xff] %v8751_v22 }
 0x3e2   :  { %v1234_v10 = vpop.f32.mrb[32].mxu0 }
 0x3e3   :  { %v8769_v13 = vrot.slane %v1234_v10, %v8766_v7  ;;  %v6481_v49 = vpop.f32.mrb[33].mxu0  ;;  %v1324_v32 = vmul.f32 %v1234_v10, %v1234_v10 }
 0x3e5   :  { %v1330_v12 = vsub.f32 %v8641_v38, %v8769_v13  ;;  %v1331_v9 = vsub.f32 %v8635_v16, %v8769_v13  ;;  %v1332_v6 = vsub.f32 %v8652_v29, %v8769_v13  ;;  %v1333_v45 = vsub.f32 %v8648_v57, %v8769_v13 }
 0x3e6   :  { %v1334_v19 = vsub.f32 %v8663_v21, %v8769_v13  ;;  %v1335_v14 = vsub.f32 %v8659_v52, %v8769_v13  ;;  %v1336_v49 = vsub.f32 %v8674_v18, %v8769_v13  ;;  %v1337_v38 = vsub.f32 %v8670_v50, %v8769_v13 }
 0x3e7   :  { %v1338_v16 = vsub.f32 %v8685_v35, %v8769_v13  ;;  %v1339_v29 = vsub.f32 %v8681_v23, %v8769_v13  ;;  %v1340_v57 = vsub.f32 %v8696_v15, %v8769_v13  ;;  %v1341_v21 = vsub.f32 %v8692_v26, %v8769_v13 }
 0x3e8   :  { %v10369_v26 = vsub.s32 1, %v8738_v51  ;;  %v8806_v52 = vrot.slane %v8744_v44, %v8766_v7 }
 0x3ea   :  { %v8814_v35 = vrot.slane %v8744_v44, %v10369_v26 }
 0x402   :  { %v1320_v23 = vpop.f32.mrb[34].mxu0 }
 0x403   :  { %v1325_v46 = vsub.f32 %v1320_v23, %v1324_v32  ;;  %v6516_v22 = vpop.f32.mrb[35].mxu0 }
 0x405   :  { %v1346_v15 = vadd.f32 1e-05, %v1325_v46 }
 0x407   :  { %8126 = vrsqrt.f32 %v1346_v15 }
 0x411   :  { %v8127_v20 = vpop.eup %8126 }
 0x412   :  { %v8809_v18 = vrot.slane %v8127_v20, %v8766_v7 }
 0x414   :  { %v1352_v10 = vmul.f32 %v8809_v18, %v1330_v12  ;;  %v1353_v22 = vmul.f32 %v8809_v18, %v1331_v9  ;;  %v1354_v46 = vmul.f32 %v8809_v18, %v1332_v6  ;;  %v1355_v32 = vmul.f32 %v8809_v18, %v1333_v45 }
 0x415   :  { %v1356_v23 = vmul.f32 %v8809_v18, %v1334_v19  ;;  %v1357_v15 = vmul.f32 %v8809_v18, %v1335_v14  ;;  %v1358_v20 = vmul.f32 %v8809_v18, %v1336_v49  ;;  %v1359_v50 = vmul.f32 %v8809_v18, %v1337_v38 }
 0x416   :  { %v1372_v51 = vmul.f32 %v8806_v52, %v1352_v10  ;;  %v1373_v26 = vmul.f32 %v8806_v52, %v1353_v22  ;;  %v1374_v12 = vmul.f32 %v8806_v52, %v1354_v46  ;;  %v1375_v9 = vmul.f32 %v8806_v52, %v1355_v32 }
 0x417   :  { %v1376_v6 = vmul.f32 %v8806_v52, %v1356_v23  ;;  %v1377_v45 = vmul.f32 %v8806_v52, %v1357_v15  ;;  %v1378_v19 = vmul.f32 %v8806_v52, %v1358_v20  ;;  %v1379_v14 = vmul.f32 %v8806_v52, %v1359_v50 }
 0x418   :  { %v1392_v49 = vadd.f32 %v8814_v35, %v1372_v51  ;;  %v1393_v38 = vadd.f32 %v8814_v35, %v1373_v26  ;;  %v1394_v10 = vadd.f32 %v8814_v35, %v1374_v12  ;;  %v1395_v22 = vadd.f32 %v8814_v35, %v1375_v9 }
 0x419   :  { %v1396_v46 = vadd.f32 %v8814_v35, %v1376_v6  ;;  %v1397_v32 = vadd.f32 %v8814_v35, %v1377_v45  ;;  %v1398_v23 = vadd.f32 %v8814_v35, %v1378_v19  ;;  %v1399_v15 = vadd.f32 %v8814_v35, %v1379_v14 }
 0x41a   :  { %v1408_v44 = vmax.f32 %v1392_v49, 0.0  ;;  %v1409_v20 = vmax.f32 %v1393_v38, 0.0  ;;  %v1410_v7 = vmax.f32 %v1394_v10, 0.0  ;;  %v1411_v50 = vmax.f32 %v1395_v22, 0.0 }
 0x41b   :  { %v1412_v5 = vmax.f32 %v1396_v46, 0.0  ;;  %v1413_v51 = vmax.f32 %v1397_v32, 0.0  ;;  %v1414_v4 = vmax.f32 %v1398_v23, 0.0  ;;  %v1415_v26 = vmax.f32 %v1399_v15, 0.0 }
 0x41c   :  { %v8841_v12 = vadd.f32 %v1408_v44, %v8290_v25  ;;  %v8844_v9 = vadd.f32 %v8288_v24, %v1409_v20  ;;  %v8847_v6 = vadd.f32 %v1410_v7, %v8296_v28  ;;  %v8850_v45 = vadd.f32 %v8294_v27, %v1411_v50 }
 0x41d   :  { %v8853_v19 = vadd.f32 %v1412_v5, %v8302_v31  ;;  %v8856_v14 = vadd.f32 %v8300_v30, %v1413_v51  ;;  %v8859_v49 = vadd.f32 %v1414_v4, %v8308_v34  ;;  %v8862_v25 = vadd.f32 %v8306_v33, %v1415_v26 }
 0x41e   :  { %v7553_v24 = vpack.c.bf16 %v8844_v9, %v8841_v12  ;;  %v1360_v28 = vmul.f32 %v8809_v18, %v1338_v16  ;;  %v1361_v27 = vmul.f32 %v8809_v18, %v1339_v29  ;;  %v7557_v31 = vpack.c.bf16 %v8850_v45, %v8847_v6 }
 0x41f   :  { %v7561_v30 = vpack.c.bf16 %v8856_v14, %v8853_v19  ;;  %v1362_v5 = vmul.f32 %v8809_v18, %v1340_v57  ;;  %v1363_v34 = vmul.f32 %v8809_v18, %v1341_v21  ;;  %v10422_v44 = vsub.f32 %v8707_v41, %v8769_v13 }
 0x420   :  { %7554 = vmatprep.subr.bf16.mxu0 %v7553_v24  ;;  %7586 = vmatprep.subr.bf16.mxu1 %v7553_v24  ;;  %v1380_v33 = vmul.f32 %v8806_v52, %v1360_v28  ;;  %v1381_v4 = vmul.f32 %v8806_v52, %v1361_v27  ;;  %v10423_v57 = vsub.f32 %v8703_v11, %v8769_v13 }
 0x421   :  { %v1364_v7 = vmul.f32 %v8809_v18, %v10422_v44  ;;  %7556 = vmatpush3.bf16.msra.mxu0 %v7553_v24  ;;  %7588 = vmatpush3.bf16.msra.mxu1 %v7553_v24  ;;  %v1382_v16 = vmul.f32 %v8806_v52, %v1362_v5  ;;  %v1383_v29 = vmul.f32 %v8806_v52, %v1363_v34 }
 0x422   :  { %v1365_v21 = vmul.f32 %v8809_v18, %v10423_v57  ;;  %7558 = vmatprep.subr.bf16.mxu0 %v7557_v31  ;;  %7590 = vmatprep.subr.bf16.mxu1 %v7557_v31  ;;  %v1400_v38 = vadd.f32 %v8814_v35, %v1380_v33  ;;  %v1401_v10 = vadd.f32 %v8814_v35, %v1381_v4  ;;  %v5351_v57 = vld [vmem:[%s10338_s2 + $0x90] sm:$0xff] }
 0x423   :  { %v1384_v41 = vmul.f32 %v8806_v52, %v1364_v7  ;;  %v1402_v22 = vadd.f32 %v8814_v35, %v1382_v16  ;;  %v1403_v46 = vadd.f32 %v8814_v35, %v1383_v29  ;;  %v10424_v23 = vsub.f32 %v8718_v17, %v8769_v13 }
 0x424   :  { %v1385_v32 = vmul.f32 %v8806_v52, %v1365_v21  ;;  %v1416_v15 = vmax.f32 %v1400_v38, 0.0  ;;  %v1417_v20 = vmax.f32 %v1401_v10, 0.0  ;;  %v10425_v51 = vsub.f32 %v8714_v8, %v8769_v13  ;;  %v5352_v21 = vld [vmem:[%s10338_s2 + $0x98] sm:$0xff] }
 0x425   :  { %v1366_v11 = vmul.f32 %v8809_v18, %v10424_v23  ;;  %v1404_v50 = vadd.f32 %v8814_v35, %v1384_v41  ;;  %7560 = vmatpush3.bf16.msra.mxu0 %v7557_v31  ;;  %7592 = vmatpush3.bf16.msra.mxu1 %v7557_v31  ;;  %v1418_v24 = vmax.f32 %v1402_v22, 0.0  ;;  %v1419_v28 = vmax.f32 %v1403_v46, 0.0  ;;  %v10441_v41 = vld [vmem:[#allocation16_spill] sm:$0xff]  ;;  %v10442_v22 = vld [vmem:[#allocation17_spill] sm:$0xff]  ;;  %v5346_v23 = vld [vmem:[%s10338_s2 + $0x68] sm:$0xff] }
 0x426   :  { %v1367_v26 = vmul.f32 %v8809_v18, %v10425_v51  ;;  %v1405_v27 = vadd.f32 %v8814_v35, %v1385_v32  ;;  %7562 = vmatprep.subr.bf16.mxu0 %v7561_v30  ;;  %7594 = vmatprep.subr.bf16.mxu1 %v7561_v30  ;;  %v8904_v17 = vadd.f32 %v1416_v15, %v8314_v37  ;;  %v10426_v38 = vmov 0.0|0.0   ;;  %v5345_v32 = vld [vmem:[%s10338_s2 + $0x60] sm:$0xff]  ;;  %v5347_v15 = vld [vmem:[%s10338_s2 + $0x70] sm:$0xff] }
 0x427   :  { %v1386_v5 = vmul.f32 %v8806_v52, %v1366_v11  ;;  %v8907_v34 = vadd.f32 %v8312_v36, %v1417_v20  ;;  %v1420_v33 = vmax.f32 %v1404_v50, 0.0  ;;  %v8911_v13 = vadd.f32 %v1418_v24, %v8320_v40  ;;  %v5348_v20 = vld [vmem:[%s10338_s2 + $0x78] sm:$0xff] }
 0x428   :  { %v1387_v8 = vmul.f32 %v8806_v52, %v1367_v26  ;;  %v8914_v18 = vadd.f32 %v8318_v39, %v1419_v28  ;;  %v1421_v31 = vmax.f32 %v1405_v27, 0.0  ;;  %v7565_v44 = vpack.c.bf16 %v8862_v25, %v8859_v49  ;;  %v5385_v27 = vld [vmem:[%s10338_s2 + $0xa0] sm:$0xff] }
 0x429   :  { %v1406_v4 = vadd.f32 %v8814_v35, %v1386_v5  ;;  %v8920_v37 = vadd.f32 %v1420_v33, %v8326_v43  ;;  %7564 = vmatpush3.bf16.msra.mxu0 %v7561_v30  ;;  %7596 = vmatpush3.bf16.msra.mxu1 %v7561_v30  ;;  %v7569_v16 = vpack.c.bf16 %v8907_v34, %v8904_v17  ;;  %v10443_v46 = vmov 0.0   ;;  %v5386_v5 = vld [vmem:[%s10338_s2 + $0xa8] sm:$0xff] }
 0x42a   :  { %v1407_v36 = vadd.f32 %v8814_v35, %v1387_v8  ;;  %v8924_v52 = vadd.f32 %v8324_v42, %v1421_v31  ;;  %7566 = vmatprep.subr.bf16.mxu0 %v7565_v44  ;;  %7598 = vmatprep.subr.bf16.mxu1 %v7565_v44  ;;  %v7573_v42 = vpack.c.bf16 %v8914_v18, %v8911_v13  ;;  %v5350_v35 = vld [vmem:[%s10338_s2 + $0x88] sm:$0xff] }
 0x42b   :  { %v1422_v40 = vmax.f32 %v1406_v4, 0.0  ;;  %v7621_v10 = vpack.c.bf16 %v5352_v21, %v5351_v57  ;;  %v7625_v11 = vpack.c.bf16 %v5346_v23, %v5345_v32  ;;  %v7629_v24 = vpack.c.bf16 %v5348_v20, %v5347_v15 }
 0x42c   :  { %v1423_v39 = vmax.f32 %v1407_v36, 0.0  ;;  %v7633_v4 = vpack.c.bf16 %v5386_v5, %v5385_v27 }
 0x42d   :  { %v8927_v7 = vadd.f32 %v1422_v40, %v8338_v48  ;;  %7568 = vmatpush3.bf16.msra.mxu0 %v7565_v44  ;;  %7600 = vmatpush3.bf16.msra.mxu1 %v7565_v44  ;;  %v7577_v48 = vpack.c.bf16 %v8924_v52, %v8920_v37 }
 0x42e   :  { %v8932_v43 = vadd.f32 %v8336_v47, %v1423_v39  ;;  %7570 = vmatprep.subr.bf16.mxu0 %v7569_v16  ;;  %7602 = vmatprep.subr.bf16.mxu1 %v7569_v16  ;;  %v5349_v47 = vld [vmem:[%s10338_s2 + $0x80] sm:$0xff] }
 0x42f   :  { %v7617_v29 = vpack.c.bf16 %v5350_v35, %v5349_v47 }
 0x430   :  { %v7581_v30 = vpack.c.bf16 %v8932_v43, %v8927_v7 }
 0x431   :  { %7572 = vmatpush3.bf16.msra.mxu0 %v7569_v16  ;;  %7604 = vmatpush3.bf16.msra.mxu1 %v7569_v16 }
 0x432   :  { %7574 = vmatprep.subr.bf16.mxu0 %v7573_v42  ;;  %7606 = vmatprep.subr.bf16.mxu1 %v7573_v42 }
 0x435   :  { %7576 = vmatpush3.bf16.msra.mxu0 %v7573_v42  ;;  %7608 = vmatpush3.bf16.msra.mxu1 %v7573_v42 }
 0x436   :  { %7578 = vmatprep.subr.bf16.mxu0 %v7577_v48  ;;  %7610 = vmatprep.subr.bf16.mxu1 %v7577_v48 }
 0x439   :  { %7580 = vmatpush3.bf16.msra.mxu0 %v7577_v48  ;;  %7612 = vmatpush3.bf16.msra.mxu1 %v7577_v48 }
 0x43a   :  { %7582 = vmatprep.subr.bf16.mxu0 %v7581_v30  ;;  %7614 = vmatprep.subr.bf16.mxu1 %v7581_v30 }
 0x43d   :  { %7584 = vmatpush3.bf16.msra.mxu0 %v7581_v30  ;;  %7616 = vmatpush3.bf16.msra.mxu1 %v7581_v30 }
 0x43e   :  { %7618 = vmatprep.subr.bf16.mxu0 %v7617_v29  ;;  %7641 = vmatprep.subr.bf16.mxu1 %v10426_v38 }
 0x440   :  { %6550 = vmatmul.mubr.f32.vlgmr.msra.gmra.mrb[36].mxu0 %v8351_v53  ;;  %6606 = vmatmul.mubr.f32.vlgmr.msra.gmra.mrb[32].mxu1 %v8356_v54  ;;  %v10427_v53 = vld [vmem:[#allocation2_spill] sm:$0xff]  ;;  %v10428_v54 = vld [vmem:[#allocation3_spill] sm:$0xff] }
 0x441   :  { %6552 = vmatprep.mubr.f32.mxu0 %v8361_v55  ;;  %6608 = vmatprep.mubr.f32.mxu1 %v8366_v56  ;;  %v10429_v55 = vld [vmem:[#allocation4_spill] sm:$0xff]  ;;  %v10430_v56 = vld [vmem:[#allocation5_spill] sm:$0xff] }
 0x442   :  { %7620 = vmatpush3.bf16.msra.mxu0 %v7617_v29 }
 0x443   :  { %7622 = vmatprep.subr.bf16.mxu0 %v7621_v10 }
 0x444   :  { %6553 = vmatmul.mubr.f32.gmra.mrb[38].mxu0 %v8374_v58  ;;  %6609 = vmatmul.mubr.f32.gmra.mrb[34].mxu1 %v8380_v59  ;;  %v10431_v58 = vld [vmem:[#allocation6_spill] sm:$0xff]  ;;  %v10432_v59 = vld [vmem:[#allocation7_spill] sm:$0xff] }
 0x445   :  { %6555 = vmatprep.mubr.f32.mxu0 %v8385_v60  ;;  %6611 = vmatprep.mubr.f32.mxu1 %v8390_v61  ;;  %v10433_v60 = vld [vmem:[#allocation8_spill] sm:$0xff]  ;;  %v10434_v61 = vld [vmem:[#allocation9_spill] sm:$0xff] }
 0x446   :  { %7624 = vmatpush3.bf16.msra.mxu0 %v7621_v10 }
 0x447   :  { %7626 = vmatprep.subr.bf16.mxu0 %v7625_v11 }
 0x448   :  { %6556 = vmatmul.mubr.f32.gmra.mrb[40].mxu0 %v8398_v62  ;;  %6612 = vmatmul.mubr.f32.gmra.mrb[36].mxu1 %v8404_v63  ;;  %v10435_v62 = vld [vmem:[#allocation10_spill] sm:$0xff]  ;;  %v10436_v63 = vld [vmem:[#allocation11_spill] sm:$0xff] }
 0x449   :  { %6558 = vmatprep.mubr.f32.mxu0 %v8409_v0  ;;  %6614 = vmatprep.mubr.f32.mxu1 %v8414_v1  ;;  %v10437_v0 = vld [vmem:[#allocation12_spill] sm:$0xff]  ;;  %v10438_v1 = vld [vmem:[#allocation13_spill] sm:$0xff] }
 0x44c   :  { %6559 = vmatmul.mubr.f32.gmra.mrb[42].mxu0 %v8422_v2  ;;  %6615 = vmatmul.mubr.f32.gmra.mrb[38].mxu1 %v8428_v3  ;;  %v10439_v2 = vld [vmem:[#allocation14_spill] sm:$0xff]  ;;  %v10440_v3 = vld [vmem:[#allocation15_spill] sm:$0xff] }
 0x44d   :  { %6561 = vmatprep.mubr.f32.mxu0 %v10427_v53  ;;  %6617 = vmatprep.mubr.f32.mxu1 %v10428_v54 }
 0x450   :  { %6562 = vmatmul.mubr.f32.gmra.mrb[44].mxu0 %v10429_v55  ;;  %6618 = vmatmul.mubr.f32.gmra.mrb[40].mxu1 %v10430_v56 }
 0x451   :  { %6564 = vmatprep.mubr.f32.mxu0 %v10431_v58  ;;  %6620 = vmatprep.mubr.f32.mxu1 %v10432_v59 }
 0x454   :  { %6565 = vmatmul.mubr.f32.gmra.mrb[46].mxu0 %v10433_v60  ;;  %6621 = vmatmul.mubr.f32.gmra.mrb[42].mxu1 %v10434_v61 }
 0x455   :  { %6567 = vmatprep.mubr.f32.mxu0 %v10435_v62  ;;  %6623 = vmatprep.mubr.f32.mxu1 %v10436_v63 }
 0x458   :  { %6568 = vmatmul.mubr.f32.gmra.mrb[48].mxu0 %v10437_v0  ;;  %6624 = vmatmul.mubr.f32.gmra.mrb[44].mxu1 %v10438_v1  ;;  %v5387_v1 = vld [vmem:[%s10338_s2 + $0xb0] sm:$0xff] }
 0x459   :  { %6570 = vmatprep.mubr.f32.mxu0 %v10439_v2  ;;  %6626 = vmatprep.mubr.f32.mxu1 %v10440_v3  ;;  %v5388_v2 = vld [vmem:[%s10338_s2 + $0xb8] sm:$0xff] }
 0x45a   :  { %v7637_v3 = vpack.c.bf16 %v5388_v2, %v5387_v1 }
 0x45c   :  { %6571 = vmatmul.mubr.f32.gmra.mrb[50].mxu0 %v10441_v41  ;;  %6627 = vmatmul.mubr.f32.gmra.mrb[46].mxu1 %v10442_v22  ;;  %v9091_v41 = vld [vmem:[%s10337_s1 + $0x80] sm:$0xff] }
 0x45d   :  { %6757 = vmatprep.mubr.msk.f32.mxu1 %vm8167_vm1, %v10443_v46 }
 0x513   :  { %v6551_v50 = vpop.f32.mrb[36].mxu0  ;;  %v8997_v51 = vpop.f32.mrb[32].mxu1 }
 0x514   :  { %v1506_v26 = vpop.f32.mrb[37].mxu0  ;;  %v8999_v28 = vpop.f32.mrb[33].mxu1 }
 0x515   :  { %6637 = vmatprep.mubr.msk.f32.mxu0 %vm75_vm0, %v1506_v26 }
 0x516   :  { %6638 = vmatmul.mubr.msk.f32.vlgmr.msra.gmra.mrb[52].mxu0 %vm75_vm0, %v6551_v50 }
 0x517   :  { %7628 = vmatpush3.bf16.msra.mxu0 %v7625_v11  ;;  %v6554_v33 = vpop.f32.mrb[38].mxu0  ;;  %v9009_v8 = vpop.f32.mrb[34].mxu1 }
 0x518   :  { %v1516_v31 = vpop.f32.mrb[39].mxu0  ;;  %7630 = vmatprep.subr.bf16.mxu0 %v7629_v24  ;;  %v9011_v44 = vpop.f32.mrb[35].mxu1 }
 0x519   :  { %6640 = vmatprep.mubr.msk.f32.mxu0 %vm75_vm0, %v1516_v31 }
 0x51a   :  { %6641 = vmatmul.mubr.msk.f32.gmra.mrb[54].mxu0 %vm75_vm0, %v6554_v33 }
 0x51b   :  { %v6557_v36 = vpop.f32.mrb[40].mxu0  ;;  %7632 = vmatpush3.bf16.msra.mxu0 %v7629_v24  ;;  %v9015_v40 = vpop.f32.mrb[36].mxu1 }
 0x51c   :  { %v1526_v39 = vpop.f32.mrb[41].mxu0  ;;  %7634 = vmatprep.subr.bf16.mxu0 %v7633_v4  ;;  %v1671_v16 = vpop.f32.mrb[37].mxu1 }
 0x51d   :  { %6643 = vmatprep.mubr.msk.f32.mxu0 %vm75_vm0, %v1526_v39 }
 0x51e   :  { %6644 = vmatmul.mubr.msk.f32.gmra.mrb[56].mxu0 %vm75_vm0, %v6557_v36 }
 0x51f   :  { %v6560_v42 = vpop.f32.mrb[42].mxu0  ;;  %v6616_v48 = vpop.f32.mrb[38].mxu1 }
 0x520   :  { %v1536_v47 = vpop.f32.mrb[43].mxu0  ;;  %v1681_v35 = vpop.f32.mrb[39].mxu1 }
 0x521   :  { %6646 = vmatprep.mubr.msk.f32.mxu0 %vm75_vm0, %v1536_v47 }
 0x522   :  { %6647 = vmatmul.mubr.msk.f32.gmra.mrb[58].mxu0 %vm75_vm0, %v6560_v42 }
 0x523   :  { %v6563_v30 = vpop.f32.mrb[44].mxu0  ;;  %v6619_v29 = vpop.f32.mrb[40].mxu1 }
 0x524   :  { %v1546_v57 = vpop.f32.mrb[45].mxu0  ;;  %v1691_v21 = vpop.f32.mrb[41].mxu1 }
 0x525   :  { %6649 = vmatprep.mubr.msk.f32.mxu0 %vm75_vm0, %v1546_v57 }
 0x526   :  { %6650 = vmatmul.mubr.msk.f32.gmra.mrb[60].mxu0 %vm75_vm0, %v6563_v30 }
 0x527   :  { %v6566_v10 = vpop.f32.mrb[46].mxu0  ;;  %v6622_v53 = vpop.f32.mrb[42].mxu1 }
 0x528   :  { %v1556_v54 = vpop.f32.mrb[47].mxu0  ;;  %v1701_v55 = vpop.f32.mrb[43].mxu1 }
 0x529   :  { %6652 = vmatprep.mubr.msk.f32.mxu0 %vm75_vm0, %v1556_v54 }
 0x52a   :  { %6653 = vmatmul.mubr.msk.f32.gmra.mrb[62].mxu0 %vm75_vm0, %v6566_v10 }
 0x52b   :  { %v6569_v56 = vpop.f32.mrb[48].mxu0  ;;  %v6625_v58 = vpop.f32.mrb[44].mxu1 }
 0x52c   :  { %v1566_v59 = vpop.f32.mrb[49].mxu0  ;;  %v1711_v60 = vpop.f32.mrb[45].mxu1 }
 0x52d   :  { %6655 = vmatprep.mubr.msk.f32.mxu0 %vm75_vm0, %v1566_v59 }
 0x52e   :  { %6656 = vmatmul.mubr.msk.f32.gmra.mrb[64].mxu0 %vm75_vm0, %v6569_v56 }
 0x52f   :  { %v6572_v61 = vpop.f32.mrb[50].mxu0  ;;  %v6628_v62 = vpop.f32.mrb[46].mxu1 }
 0x530   :  { %v1576_v63 = vpop.f32.mrb[51].mxu0  ;;  %v1721_v0 = vpop.f32.mrb[47].mxu1 }
 0x531   :  { %6658 = vmatprep.mubr.msk.f32.mxu0 %vm75_vm0, %v1576_v63 }
 0x532   :  { %6659 = vmatmul.mubr.msk.f32.gmra.mrb[66].mxu0 %vm75_vm0, %v6572_v61 }
 0x533   :  { %6669 = vmatprep.mubr.msk.f32.mxu0 %vm75_vm0, %v8841_v12 }
 0x536   :  { %6670 = vmatmul.mubr.msk.f32.vlgmr.msra.gmra.mrb[52].mxu0 %vm75_vm0, %v8844_v9 }
 0x537   :  { %7636 = vmatpush3.bf16.msra.mxu0 %v7633_v4  ;;  %6672 = vmatprep.mubr.msk.f32.mxu0 %vm75_vm0, %v8847_v6 }
 0x538   :  { %7638 = vmatprep.subr.bf16.mxu0 %v7637_v3 }
 0x53a   :  { %6673 = vmatmul.mubr.msk.f32.gmra.mrb[54].mxu0 %vm75_vm0, %v8850_v45 }
 0x53b   :  { %6675 = vmatprep.mubr.msk.f32.mxu0 %vm75_vm0, %v8853_v19  ;;  %7640 = vmatpush3.bf16.msra.mxu0 %v7637_v3 }
 0x53e   :  { %6676 = vmatmul.mubr.msk.f32.gmra.mrb[56].mxu0 %vm75_vm0, %v8856_v14 }
 0x53f   :  { %6678 = vmatprep.mubr.msk.f32.mxu0 %vm75_vm0, %v8859_v49 }
 0x542   :  { %6679 = vmatmul.mubr.msk.f32.gmra.mrb[58].mxu0 %vm75_vm0, %v8862_v25 }
 0x543   :  { %6681 = vmatprep.mubr.msk.f32.mxu0 %vm75_vm0, %v8904_v17 }
 0x546   :  { %6682 = vmatmul.mubr.msk.f32.gmra.mrb[60].mxu0 %vm75_vm0, %v8907_v34 }
 0x547   :  { %6684 = vmatprep.mubr.msk.f32.mxu0 %vm75_vm0, %v8911_v13 }
 0x54a   :  { %6685 = vmatmul.mubr.msk.f32.gmra.mrb[62].mxu0 %vm75_vm0, %v8914_v18 }
 0x54b   :  { %6687 = vmatprep.mubr.msk.f32.mxu0 %vm75_vm0, %v8920_v37 }
 0x54e   :  { %6688 = vmatmul.mubr.msk.f32.gmra.mrb[64].mxu0 %vm75_vm0, %v8924_v52 }
 0x54f   :  { %6690 = vmatprep.mubr.msk.f32.mxu0 %vm75_vm0, %v8927_v7 }
 0x552   :  { %6691 = vmatmul.mubr.msk.f32.gmra.mrb[66].mxu0 %vm75_vm0, %v8932_v43 }
 0x553   :  { %6701 = vmatprep.mubr.msk.f32.mxu0 %vm75_vm0, %v8999_v28 }
 0x556   :  { %6702 = vmatmul.mubr.msk.f32.vlgmr.msra.gmra.mrb[52].mxu0 %vm75_vm0, %v8997_v51 }
 0x557   :  { %6704 = vmatprep.mubr.msk.f32.mxu0 %vm75_vm0, %v9011_v44 }
 0x55a   :  { %6705 = vmatmul.mubr.msk.f32.gmra.mrb[54].mxu0 %vm75_vm0, %v9009_v8 }
 0x55b   :  { %6707 = vmatprep.mubr.msk.f32.mxu0 %vm75_vm0, %v1671_v16 }
 0x55e   :  { %6708 = vmatmul.mubr.msk.f32.gmra.mrb[56].mxu0 %vm75_vm0, %v9015_v40 }
 0x55f   :  { %6710 = vmatprep.mubr.msk.f32.mxu0 %vm75_vm0, %v1681_v35 }
 0x562   :  { %6711 = vmatmul.mubr.msk.f32.gmra.mrb[58].mxu0 %vm75_vm0, %v6616_v48 }
 0x563   :  { %6713 = vmatprep.mubr.msk.f32.mxu0 %vm75_vm0, %v1691_v21 }
 0x566   :  { %6714 = vmatmul.mubr.msk.f32.gmra.mrb[60].mxu0 %vm75_vm0, %v6619_v29 }
 0x567   :  { %6716 = vmatprep.mubr.msk.f32.mxu0 %vm75_vm0, %v1701_v55 }
 0x56a   :  { %6717 = vmatmul.mubr.msk.f32.gmra.mrb[62].mxu0 %vm75_vm0, %v6622_v53 }
 0x56b   :  { %6719 = vmatprep.mubr.msk.f32.mxu0 %vm75_vm0, %v1711_v60 }
 0x56e   :  { %6720 = vmatmul.mubr.msk.f32.gmra.mrb[64].mxu0 %vm75_vm0, %v6625_v58 }
 0x56f   :  { %6722 = vmatprep.mubr.msk.f32.mxu0 %vm75_vm0, %v1721_v0 }
 0x572   :  { %6723 = vmatmul.mubr.msk.f32.gmra.mrb[66].mxu0 %vm75_vm0, %v6628_v62 }
 0x573   :  { %6883 = vmatprep.mubr.f32.mxu0 %v9091_v41 }
 0x629   :  { %v9094_v22 = vpop.f32.mrb[52].mxu0 }
 0x62a   :  { %v9098_v32 = vmul.f32 %v9094_v22, %v9094_v22  ;;  %v9100_v23 = vpop.f32.mrb[53].mxu0 }
 0x62b   :  { %v7642_v11 = vpack.c.bf16 %v9094_v22, %v9100_v23  ;;  %v2410_v15 = vmul.f32 %v9100_v23, %v9100_v23 }
 0x62d   :  { %v7666_v20 = vpack.c.bf16 %v9098_v32, %v2410_v15  ;;  %v9107_v50 = vpop.f32.mrb[54].mxu0  ;;  %7643 = vmatpush3.bf16.msra.mxu1 %v7642_v11 }
 0x62e   :  { %v2413_v51 = vmul.f32 %v9107_v50, %v9107_v50  ;;  %v9111_v26 = vpop.f32.mrb[55].mxu0  ;;  %7644 = vmatprep.subr.bf16.mxu1 %v10426_v38 }
 0x62f   :  { %v7645_v24 = vpack.c.bf16 %v9107_v50, %v9111_v26  ;;  %v2412_v28 = vmul.f32 %v9111_v26, %v9111_v26 }
 0x631   :  { %v7669_v27 = vpack.c.bf16 %v2413_v51, %v2412_v28  ;;  %v9118_v5 = vpop.f32.mrb[56].mxu0  ;;  %7646 = vmatpush3.bf16.msra.mxu1 %v7645_v24  ;;  %v10444_v51 = vmov 0.0078125   ;;  %v10445_v28 = vld [vmem:[#allocation25_spill] sm:$0xff] }
 0x632   :  { %v2415_v33 = vmul.f32 %v9118_v5, %v9118_v5  ;;  %v9122_v8 = vpop.f32.mrb[57].mxu0  ;;  %7647 = vmatprep.subr.bf16.mxu1 %v10426_v38 }
 0x633   :  { %v7648_v31 = vpack.c.bf16 %v9118_v5, %v9122_v8  ;;  %v2414_v4 = vmul.f32 %v9122_v8, %v9122_v8 }
 0x635   :  { %v7672_v44 = vpack.c.bf16 %v2415_v33, %v2414_v4  ;;  %v9129_v36 = vpop.f32.mrb[58].mxu0  ;;  %7649 = vmatpush3.bf16.msra.mxu1 %v7648_v31 }
 0x636   :  { %v2417_v40 = vmul.f32 %v9129_v36, %v9129_v36  ;;  %v9133_v39 = vpop.f32.mrb[59].mxu0  ;;  %7650 = vmatprep.subr.bf16.mxu1 %v10426_v38 }
 0x637   :  { %v7651_v16 = vpack.c.bf16 %v9129_v36, %v9133_v39  ;;  %v2416_v42 = vmul.f32 %v9133_v39, %v9133_v39 }
 0x639   :  { %v7675_v48 = vpack.c.bf16 %v2417_v40, %v2416_v42  ;;  %v9140_v47 = vpop.f32.mrb[60].mxu0  ;;  %7652 = vmatpush3.bf16.msra.mxu1 %v7651_v16 }
 0x63a   :  { %v2419_v35 = vmul.f32 %v9140_v47, %v9140_v47  ;;  %v9144_v30 = vpop.f32.mrb[61].mxu0  ;;  %7653 = vmatprep.subr.bf16.mxu1 %v10426_v38 }
 0x63b   :  { %v7654_v29 = vpack.c.bf16 %v9140_v47, %v9144_v30  ;;  %v2418_v57 = vmul.f32 %v9144_v30, %v9144_v30 }
 0x63d   :  { %v7678_v21 = vpack.c.bf16 %v2419_v35, %v2418_v57  ;;  %v9151_v10 = vpop.f32.mrb[62].mxu0  ;;  %7655 = vmatpush3.bf16.msra.mxu1 %v7654_v29 }
 0x63e   :  { %v2421_v53 = vmul.f32 %v9151_v10, %v9151_v10  ;;  %v9155_v54 = vpop.f32.mrb[63].mxu0  ;;  %7656 = vmatprep.subr.bf16.mxu1 %v10426_v38 }
 0x63f   :  { %v7657_v55 = vpack.c.bf16 %v9151_v10, %v9155_v54  ;;  %v2420_v56 = vmul.f32 %v9155_v54, %v9155_v54 }
 0x641   :  { %v7681_v58 = vpack.c.bf16 %v2421_v53, %v2420_v56  ;;  %v9162_v59 = vpop.f32.mrb[64].mxu0  ;;  %7658 = vmatpush3.bf16.msra.mxu1 %v7657_v55  ;;  %v10446_v53 = vld [vmem:[#allocation18_spill] sm:$0xff]  ;;  %v10447_v55 = vld [vmem:[#allocation19_spill] sm:$0xff] }
 0x642   :  { %v2423_v60 = vmul.f32 %v9162_v59, %v9162_v59  ;;  %v9166_v61 = vpop.f32.mrb[65].mxu0  ;;  %7659 = vmatprep.subr.bf16.mxu1 %v10426_v38 }
 0x643   :  { %v7660_v62 = vpack.c.bf16 %v9162_v59, %v9166_v61  ;;  %v2422_v63 = vmul.f32 %v9166_v61, %v9166_v61 }
 0x645   :  { %v7684_v0 = vpack.c.bf16 %v2423_v60, %v2422_v63  ;;  %v9173_v1 = vpop.f32.mrb[66].mxu0  ;;  %7661 = vmatpush3.bf16.msra.mxu1 %v7660_v62 }
 0x646   :  { %v2425_v2 = vmul.f32 %v9173_v1, %v9173_v1  ;;  %v9177_v3 = vpop.f32.mrb[67].mxu0  ;;  %7662 = vmatprep.subr.bf16.mxu1 %v10426_v38 }
 0x647   :  { %v7663_v32 = vpack.c.bf16 %v9173_v1, %v9177_v3  ;;  %v2424_v11 = vmul.f32 %v9177_v3, %v9177_v3 }
 0x649   :  { %v7687_v15 = vpack.c.bf16 %v2425_v2, %v2424_v11  ;;  %7664 = vmatpush3.bf16.msra.mxu1 %v7663_v32 }
 0x64a   :  { %7665 = vmatprep.subr.bf16.mxu1 %v10426_v38 }
 0x64c   :  { %6758 = vmatmul.mubr.f32.vlgmr.msra.gmra.mrb[48].mxu1 %v10444_v51 }
 0x64d   :  { %7667 = vmatpush3.bf16.msra.mxu1 %v7666_v20  ;;  %6792 = vmatprep.mubr.msk.f32.mxu1 %vm8167_vm1, %v10443_v46  ;;  %v9199_v20 = vld [vmem:[%s10337_s1] sm:$0xff] }
 0x64e   :  { %7668 = vmatprep.subr.bf16.mxu1 %v10426_v38 }
 0x651   :  { %7670 = vmatpush3.bf16.msra.mxu1 %v7669_v27 }
 0x652   :  { %7671 = vmatprep.subr.bf16.mxu1 %v10426_v38 }
 0x655   :  { %7673 = vmatpush3.bf16.msra.mxu1 %v7672_v44 }
 0x656   :  { %7674 = vmatprep.subr.bf16.mxu1 %v10426_v38 }
 0x659   :  { %7676 = vmatpush3.bf16.msra.mxu1 %v7675_v48 }
 0x65a   :  { %7677 = vmatprep.subr.bf16.mxu1 %v10426_v38 }
 0x65d   :  { %7679 = vmatpush3.bf16.msra.mxu1 %v7678_v21 }
 0x65e   :  { %7680 = vmatprep.subr.bf16.mxu1 %v10426_v38 }
 0x661   :  { %7682 = vmatpush3.bf16.msra.mxu1 %v7681_v58 }
 0x662   :  { %7683 = vmatprep.subr.bf16.mxu1 %v10426_v38 }
 0x665   :  { %7685 = vmatpush3.bf16.msra.mxu1 %v7684_v0 }
 0x666   :  { %7686 = vmatprep.subr.bf16.mxu1 %v10426_v38 }
 0x669   :  { %7688 = vmatpush3.bf16.msra.mxu1 %v7687_v15 }
 0x66c   :  { %6793 = vmatmul.mubr.f32.vlgmr.msra.gmra.mrb[50].mxu1 %v10444_v51 }
 0x66d   :  { %6827 = vmatprep.mubr.f32.mxu1 %v9199_v20 }
 0x71f   :  { %v2406_v24 = vpop.f32.mrb[48].mxu1 }
 0x720   :  { %v9203_v27 = vrot.slane %v2406_v24, %v10445_v28  ;;  %v6759_v33 = vpop.f32.mrb[49].mxu1 }
 0x722   :  { %v2502_v31 = vsub.f32 %v9100_v23, %v9203_v27  ;;  %v2503_v4 = vsub.f32 %v9094_v22, %v9203_v27  ;;  %v2504_v44 = vsub.f32 %v9111_v26, %v9203_v27  ;;  %v2505_v40 = vsub.f32 %v9107_v50, %v9203_v27 }
 0x723   :  { %v2506_v16 = vsub.f32 %v9122_v8, %v9203_v27  ;;  %v2507_v42 = vsub.f32 %v9118_v5, %v9203_v27  ;;  %v2508_v48 = vsub.f32 %v9133_v39, %v9203_v27  ;;  %v2509_v23 = vsub.f32 %v9129_v36, %v9203_v27 }
 0x724   :  { %v2510_v22 = vsub.f32 %v9144_v30, %v9203_v27  ;;  %v2511_v26 = vsub.f32 %v9140_v47, %v9203_v27  ;;  %v2512_v50 = vsub.f32 %v9155_v54, %v9203_v27  ;;  %v2513_v8 = vsub.f32 %v9151_v10, %v9203_v27 }
 0x725   :  { %v2514_v5 = vsub.f32 %v9166_v61, %v9203_v27  ;;  %v2515_v39 = vsub.f32 %v9162_v59, %v9203_v27  ;;  %v2516_v36 = vsub.f32 %v9177_v3, %v9203_v27  ;;  %v2517_v35 = vsub.f32 %v9173_v1, %v9203_v27 }
 0x726   :  { %v2496_v30 = vmul.f32 %v2406_v24, %v2406_v24  ;;  %v10375_v10 = vsub.s32 2, %v10446_v53 }
 0x728   :  { %v9241_v56 = vrot.slane %v10447_v55, %v10375_v10 }
 0x73f   :  { %v2492_v47 = vpop.f32.mrb[50].mxu1 }
 0x740   :  { %v2497_v29 = vsub.f32 %v2492_v47, %v2496_v30  ;;  %v6794_v57 = vpop.f32.mrb[51].mxu1  ;;  %v10448_v30 = vld [vmem:[#allocation20_spill] sm:$0xff] }
 0x742   :  { %v2518_v21 = vadd.f32 1e-05, %v2497_v29 }
 0x744   :  { %8128 = vrsqrt.f32 %v2518_v21 }
 0x74e   :  { %v8129_v54 = vpop.eup %8128 }
 0x74f   :  { %v9244_v58 = vrot.slane %v8129_v54, %v10445_v28 }
 0x751   :  { %v2524_v60 = vmul.f32 %v9244_v58, %v2502_v31  ;;  %v2525_v62 = vmul.f32 %v9244_v58, %v2503_v4  ;;  %v2526_v63 = vmul.f32 %v9244_v58, %v2504_v44  ;;  %v2527_v0 = vmul.f32 %v9244_v58, %v2505_v40 }
 0x752   :  { %v2528_v2 = vmul.f32 %v9244_v58, %v2506_v16  ;;  %v2529_v32 = vmul.f32 %v9244_v58, %v2507_v42  ;;  %v2530_v11 = vmul.f32 %v9244_v58, %v2508_v48  ;;  %v2531_v15 = vmul.f32 %v9244_v58, %v2509_v23 }
 0x753   :  { %v2544_v24 = vmul.f32 %v9241_v56, %v2524_v60  ;;  %v2545_v33 = vmul.f32 %v9241_v56, %v2525_v62  ;;  %v2546_v31 = vmul.f32 %v9241_v56, %v2526_v63  ;;  %v2547_v4 = vmul.f32 %v9241_v56, %v2527_v0 }
 0x754   :  { %v2548_v44 = vmul.f32 %v9241_v56, %v2528_v2  ;;  %v2549_v40 = vmul.f32 %v9241_v56, %v2529_v32  ;;  %v2550_v16 = vmul.f32 %v9241_v56, %v2530_v11  ;;  %v2551_v42 = vmul.f32 %v9241_v56, %v2531_v15 }
 0x755   :  { %v2564_v48 = vadd.f32 %v10448_v30, %v2544_v24  ;;  %v2565_v23 = vadd.f32 %v10448_v30, %v2545_v33  ;;  %v2566_v47 = vadd.f32 %v10448_v30, %v2546_v31  ;;  %v2567_v29 = vadd.f32 %v10448_v30, %v2547_v4 }
 0x756   :  { %v2568_v57 = vadd.f32 %v10448_v30, %v2548_v44  ;;  %v2569_v21 = vadd.f32 %v10448_v30, %v2549_v40  ;;  %v2570_v54 = vadd.f32 %v10448_v30, %v2550_v16  ;;  %v2571_v55 = vadd.f32 %v10448_v30, %v2551_v42 }
 0x757   :  { %v2580_v60 = vmax.f32 %v2564_v48, 0.0  ;;  %v2581_v62 = vmax.f32 %v2565_v23, 0.0  ;;  %v2582_v63 = vmax.f32 %v2566_v47, 0.0  ;;  %v2583_v0 = vmax.f32 %v2567_v29, 0.0 }
 0x758   :  { %v2584_v2 = vmax.f32 %v2568_v57, 0.0  ;;  %v2585_v32 = vmax.f32 %v2569_v21, 0.0  ;;  %v2586_v11 = vmax.f32 %v2570_v54, 0.0  ;;  %v2587_v15 = vmax.f32 %v2571_v55, 0.0 }
 0x759   :  { %v9271_v24 = vadd.f32 %v2580_v60, %v8841_v12  ;;  %v9274_v33 = vadd.f32 %v2581_v62, %v8844_v9  ;;  %v9277_v31 = vadd.f32 %v2582_v63, %v8847_v6  ;;  %v9280_v4 = vadd.f32 %v2583_v0, %v8850_v45 }
 0x75a   :  { %v9283_v44 = vadd.f32 %v2584_v2, %v8853_v19  ;;  %v9286_v40 = vadd.f32 %v2585_v32, %v8856_v14  ;;  %v9289_v16 = vadd.f32 %v2586_v11, %v8859_v49  ;;  %v9294_v9 = vadd.f32 %v2587_v15, %v8862_v25 }
 0x75b   :  { %v7689_v12 = vpack.c.bf16 %v9274_v33, %v9271_v24  ;;  %v2532_v6 = vmul.f32 %v9244_v58, %v2510_v22  ;;  %v2533_v45 = vmul.f32 %v9244_v58, %v2511_v26  ;;  %v7693_v19 = vpack.c.bf16 %v9280_v4, %v9277_v31 }
 0x75c   :  { %v7697_v14 = vpack.c.bf16 %v9286_v40, %v9283_v44  ;;  %v2534_v42 = vmul.f32 %v9244_v58, %v2512_v50  ;;  %v2535_v49 = vmul.f32 %v9244_v58, %v2513_v8  ;;  %v2536_v22 = vmul.f32 %v9244_v58, %v2514_v5 }
 0x75d   :  { %7690 = vmatprep.subr.bf16.mxu1 %v7689_v12  ;;  %7722 = vmatprep.subr.bf16.mxu0 %v7689_v12  ;;  %v2552_v48 = vmul.f32 %v9241_v56, %v2532_v6  ;;  %v2553_v25 = vmul.f32 %v9241_v56, %v2533_v45  ;;  %v2537_v50 = vmul.f32 %v9244_v58, %v2515_v39  ;;  %v5410_v45 = vld [vmem:[%s10338_s2 + $0xe8] sm:$0xff] }
 0x75e   :  { %7692 = vmatpush3.bf16.msra.mxu1 %v7689_v12  ;;  %7724 = vmatpush3.bf16.msra.mxu0 %v7689_v12  ;;  %v2554_v26 = vmul.f32 %v9241_v56, %v2534_v42  ;;  %v2555_v23 = vmul.f32 %v9241_v56, %v2535_v49  ;;  %v2556_v61 = vmul.f32 %v9241_v56, %v2536_v22  ;;  %v9386_v49 = vld [vmem:[%s10337_s1 + $0x8] sm:$0xff]  ;;  %v9404_v22 = vld [vmem:[%s10337_s1 + $0x90] sm:$0xff] }
 0x75f   :  { %7694 = vmatprep.subr.bf16.mxu1 %v7693_v19  ;;  %7726 = vmatprep.subr.bf16.mxu0 %v7693_v19  ;;  %v2572_v8 = vadd.f32 %v10448_v30, %v2552_v48  ;;  %v2573_v47 = vadd.f32 %v10448_v30, %v2553_v25  ;;  %v2557_v57 = vmul.f32 %v9241_v56, %v2537_v50  ;;  %v9392_v48 = vld [vmem:[%s10337_s1 + $0x88] sm:$0xff]  ;;  %v9398_v25 = vld [vmem:[%s10337_s1 + $0x10] sm:$0xff]  ;;  %v9422_v50 = vld [vmem:[%s10337_s1 + $0x20] sm:$0xff] }
 0x760   :  { %v2574_v5 = vadd.f32 %v10448_v30, %v2554_v26  ;;  %v2575_v29 = vadd.f32 %v10448_v30, %v2555_v23  ;;  %v2538_v59 = vmul.f32 %v9244_v58, %v2516_v36  ;;  %v2576_v54 = vadd.f32 %v10448_v30, %v2556_v61  ;;  %v9410_v26 = vld [vmem:[%s10337_s1 + $0x18] sm:$0xff]  ;;  %v9440_v61 = vld [vmem:[%s10337_s1 + $0xa8] sm:$0xff] }
 0x761   :  { %v2588_v39 = vmax.f32 %v2572_v8, 0.0  ;;  %v2589_v21 = vmax.f32 %v2573_v47, 0.0  ;;  %v2539_v55 = vmul.f32 %v9244_v58, %v2517_v35  ;;  %v2577_v60 = vadd.f32 %v10448_v30, %v2557_v57  ;;  %v9416_v23 = vld [vmem:[%s10337_s1 + $0x98] sm:$0xff]  ;;  %v9428_v8 = vld [vmem:[%s10337_s1 + $0xa0] sm:$0xff]  ;;  %v9434_v47 = vld [vmem:[%s10337_s1 + $0x28] sm:$0xff] }
 0x762   :  { %7696 = vmatpush3.bf16.msra.mxu1 %v7693_v19  ;;  %7728 = vmatpush3.bf16.msra.mxu0 %v7693_v19  ;;  %v2558_v62 = vmul.f32 %v9241_v56, %v2538_v59  ;;  %v7701_v36 = vpack.c.bf16 %v9294_v9, %v9289_v16  ;;  %v2590_v63 = vmax.f32 %v2574_v5, 0.0  ;;  %v2591_v35 = vmax.f32 %v2575_v29, 0.0  ;;  %v9446_v5 = vld [vmem:[%s10337_s1 + $0x30] sm:$0xff]  ;;  %v9458_v57 = vld [vmem:[%s10337_s1 + $0x38] sm:$0xff] }
 0x763   :  { %7698 = vmatprep.subr.bf16.mxu1 %v7697_v14  ;;  %7730 = vmatprep.subr.bf16.mxu0 %v7697_v14  ;;  %v2559_v3 = vmul.f32 %v9241_v56, %v2539_v55  ;;  %v9338_v1 = vadd.f32 %v2588_v39, %v8904_v17  ;;  %v9341_v27 = vadd.f32 %v2589_v21, %v8907_v34  ;;  %v2592_v56 = vmax.f32 %v2576_v54, 0.0  ;;  %v9452_v29 = vld [vmem:[%s10337_s1 + $0xb0] sm:$0xff]  ;;  %v9464_v59 = vld [vmem:[%s10337_s1 + $0xb8] sm:$0xff]  ;;  %v9470_v39 = vld [vmem:[%s10337_s1 + $0x40] sm:$0xff] }
 0x764   :  { %v2578_v0 = vadd.f32 %v10448_v30, %v2558_v62  ;;  %v9347_v32 = vadd.f32 %v2590_v63, %v8911_v13  ;;  %v9350_v17 = vadd.f32 %v2591_v35, %v8914_v18  ;;  %v2593_v11 = vmax.f32 %v2577_v60, 0.0  ;;  %10449 = vst [vmem:[#allocation2_spill] sm:$0xff] %v9464_v59  ;;  %10450 = vst [vmem:[#allocation3_spill] sm:$0xff] %v9470_v39  ;;  %v9476_v21 = vld [vmem:[%s10337_s1 + $0xc0] sm:$0xff]  ;;  %v9482_v54 = vld [vmem:[%s10337_s1 + $0x48] sm:$0xff] }
 0x765   :  { %v2579_v58 = vadd.f32 %v10448_v30, %v2559_v3  ;;  %v7705_v2 = vpack.c.bf16 %v9341_v27, %v9338_v1  ;;  %v9353_v34 = vadd.f32 %v2592_v56, %v8920_v37  ;;  %10451 = vst [vmem:[#allocation4_spill] sm:$0xff] %v9476_v21  ;;  %10452 = vst [vmem:[#allocation5_spill] sm:$0xff] %v9482_v54  ;;  %v9488_v55 = vld [vmem:[%s10337_s1 + $0xc8] sm:$0xff]  ;;  %v9494_v60 = vld [vmem:[%s10337_s1 + $0x50] sm:$0xff] }
 0x766   :  { %7700 = vmatpush3.bf16.msra.mxu1 %v7697_v14  ;;  %7732 = vmatpush3.bf16.msra.mxu0 %v7697_v14  ;;  %v7709_v30 = vpack.c.bf16 %v9350_v17, %v9347_v32  ;;  %v9358_v15 = vadd.f32 %v2593_v11, %v8924_v52  ;;  %v2594_v12 = vmax.f32 %v2578_v0, 0.0  ;;  %v5409_v52 = vld [vmem:[%s10338_s2 + $0xe0] sm:$0xff]  ;;  %v5412_v14 = vld [vmem:[%s10338_s2 + $0xf8] sm:$0xff]  ;;  %10453 = vst [vmem:[#allocation6_spill] sm:$0xff] %v9488_v55  ;;  %10454 = vst [vmem:[#allocation7_spill] sm:$0xff] %v9494_v60 }
 0x767   :  { %7702 = vmatprep.subr.bf16.mxu1 %v7701_v36  ;;  %7734 = vmatprep.subr.bf16.mxu0 %v7701_v36  ;;  %v2595_v13 = vmax.f32 %v2579_v58, 0.0  ;;  %v9500_v62 = vld [vmem:[%s10337_s1 + $0xd0] sm:$0xff]  ;;  %v9506_v3 = vld [vmem:[%s10337_s1 + $0x58] sm:$0xff]  ;;  %v9518_v63 = vld [vmem:[%s10337_s1 + $0x60] sm:$0xff] }
 0x768   :  { %v7713_v18 = vpack.c.bf16 %v9358_v15, %v9353_v34  ;;  %v9363_v6 = vadd.f32 %v2594_v12, %v8927_v7  ;;  %v7753_v7 = vpack.c.bf16 %v5410_v45, %v5409_v52  ;;  %10455 = vst [vmem:[#allocation8_spill] sm:$0xff] %v9500_v62  ;;  %10456 = vst [vmem:[#allocation9_spill] sm:$0xff] %v9506_v3  ;;  %v9524_v0 = vld [vmem:[%s10337_s1 + $0xe0] sm:$0xff]  ;;  %v9530_v35 = vld [vmem:[%s10337_s1 + $0x68] sm:$0xff] }
 0x769   :  { %v9366_v37 = vadd.f32 %v2595_v13, %v8932_v43  ;;  %v5411_v43 = vld [vmem:[%s10338_s2 + $0xf0] sm:$0xff]  ;;  %10458 = vst [vmem:[#allocation11_spill] sm:$0xff] %v9518_v63  ;;  %10459 = vst [vmem:[#allocation12_spill] sm:$0xff] %v9524_v0  ;;  %v9536_v58 = vld [vmem:[%s10337_s1 + $0xe8] sm:$0xff] }
 0x76a   :  { %7704 = vmatpush3.bf16.msra.mxu1 %v7701_v36  ;;  %7736 = vmatpush3.bf16.msra.mxu0 %v7701_v36  ;;  %v7757_v42 = vpack.c.bf16 %v5412_v14, %v5411_v43  ;;  %v9512_v36 = vld [vmem:[%s10337_s1 + $0xd8] sm:$0xff]  ;;  %10460 = vst [vmem:[#allocation13_spill] sm:$0xff] %v9530_v35  ;;  %10461 = vst [vmem:[#allocation14_spill] sm:$0xff] %v9536_v58  ;;  %v9542_v56 = vld [vmem:[%s10337_s1 + $0x70] sm:$0xff] }
 0x76b   :  { %7706 = vmatprep.subr.bf16.mxu1 %v7705_v2  ;;  %7738 = vmatprep.subr.bf16.mxu0 %v7705_v2  ;;  %v7717_v19 = vpack.c.bf16 %v9366_v37, %v9363_v6  ;;  %10457 = vst [vmem:[#allocation10_spill] sm:$0xff] %v9512_v36  ;;  %10462 = vst [vmem:[#allocation15_spill] sm:$0xff] %v9542_v56  ;;  %v9554_v11 = vld [vmem:[%s10337_s1 + $0x78] sm:$0xff]  ;;  %v5405_v12 = vld [vmem:[%s10338_s2 + $0xc0] sm:$0xff] }
 0x76c   :  { %10464 = vst [vmem:[#allocation17_spill] sm:$0xff] %v9554_v11  ;;  %v5406_v13 = vld [vmem:[%s10338_s2 + $0xc8] sm:$0xff]  ;;  %v5407_v52 = vld [vmem:[%s10338_s2 + $0xd0] sm:$0xff]  ;;  %v5408_v45 = vld [vmem:[%s10338_s2 + $0xd8] sm:$0xff] }
 0x76d   :  { %v7765_v14 = vpack.c.bf16 %v5408_v45, %v5407_v52 }
 0x76e   :  { %7708 = vmatpush3.bf16.msra.mxu1 %v7705_v2  ;;  %7740 = vmatpush3.bf16.msra.mxu0 %v7705_v2  ;;  %v9548_v2 = vld [vmem:[%s10337_s1 + $0xf0] sm:$0xff] }
 0x76f   :  { %7710 = vmatprep.subr.bf16.mxu1 %v7709_v30  ;;  %7742 = vmatprep.subr.bf16.mxu0 %v7709_v30  ;;  %10463 = vst [vmem:[#allocation16_spill] sm:$0xff] %v9548_v2 }
 0x772   :  { %7712 = vmatpush3.bf16.msra.mxu1 %v7709_v30  ;;  %7744 = vmatpush3.bf16.msra.mxu0 %v7709_v30  ;;  %v9560_v30 = vld [vmem:[%s10337_s1 + $0xf8] sm:$0xff] }
 0x773   :  { %7714 = vmatprep.subr.bf16.mxu1 %v7713_v18  ;;  %7746 = vmatprep.subr.bf16.mxu0 %v7713_v18  ;;  %10465 = vst [vmem:[#allocation19_spill] sm:$0xff] %v9560_v30 }
 0x776   :  { %7716 = vmatpush3.bf16.msra.mxu1 %v7713_v18  ;;  %7748 = vmatpush3.bf16.msra.mxu0 %v7713_v18  ;;  %v7761_v18 = vpack.c.bf16 %v5406_v13, %v5405_v12  ;;  %v5445_v12 = vld [vmem:[%s10338_s2 + $0x100] sm:$0xff]  ;;  %v5446_v13 = vld [vmem:[%s10338_s2 + $0x108] sm:$0xff] }
 0x777   :  { %7718 = vmatprep.subr.bf16.mxu1 %v7717_v19  ;;  %7750 = vmatprep.subr.bf16.mxu0 %v7717_v19  ;;  %v7769_v52 = vpack.c.bf16 %v5446_v13, %v5445_v12 }
 0x77a   :  { %7720 = vmatpush3.bf16.msra.mxu1 %v7717_v19  ;;  %7752 = vmatpush3.bf16.msra.mxu0 %v7717_v19 }
 0x77b   :  { %7754 = vmatprep.subr.bf16.mxu1 %v7753_v7  ;;  %7777 = vmatprep.subr.bf16.mxu0 %v10426_v38 }
 0x77d   :  { %6828 = vmatmul.mubr.f32.vlgmr.msra.gmra.mrb[52].mxu1 %v9386_v49  ;;  %6884 = vmatmul.mubr.f32.vlgmr.msra.gmra.mrb[68].mxu0 %v9392_v48 }
 0x77e   :  { %6830 = vmatprep.mubr.f32.mxu1 %v9398_v25  ;;  %6886 = vmatprep.mubr.f32.mxu0 %v9404_v22 }
 0x77f   :  { %7756 = vmatpush3.bf16.msra.mxu1 %v7753_v7 }
 0x780   :  { %7758 = vmatprep.subr.bf16.mxu1 %v7757_v42 }
 0x781   :  { %6831 = vmatmul.mubr.f32.gmra.mrb[54].mxu1 %v9410_v26  ;;  %6887 = vmatmul.mubr.f32.gmra.mrb[70].mxu0 %v9416_v23 }
 0x782   :  { %6833 = vmatprep.mubr.f32.mxu1 %v9422_v50  ;;  %6889 = vmatprep.mubr.f32.mxu0 %v9428_v8 }
 0x783   :  { %7760 = vmatpush3.bf16.msra.mxu1 %v7757_v42 }
 0x784   :  { %7762 = vmatprep.subr.bf16.mxu1 %v7761_v18 }
 0x785   :  { %6834 = vmatmul.mubr.f32.gmra.mrb[56].mxu1 %v9434_v47  ;;  %6890 = vmatmul.mubr.f32.gmra.mrb[72].mxu0 %v9440_v61 }
 0x786   :  { %6836 = vmatprep.mubr.f32.mxu1 %v9446_v5  ;;  %6892 = vmatprep.mubr.f32.mxu0 %v9452_v29 }
 0x789   :  { %6837 = vmatmul.mubr.f32.gmra.mrb[58].mxu1 %v9458_v57  ;;  %6893 = vmatmul.mubr.f32.gmra.mrb[74].mxu0 %v9464_v59 }
 0x78a   :  { %6839 = vmatprep.mubr.f32.mxu1 %v9470_v39  ;;  %6895 = vmatprep.mubr.f32.mxu0 %v9476_v21 }
 0x78d   :  { %6840 = vmatmul.mubr.f32.gmra.mrb[60].mxu1 %v9482_v54  ;;  %6896 = vmatmul.mubr.f32.gmra.mrb[76].mxu0 %v9488_v55 }
 0x78e   :  { %6842 = vmatprep.mubr.f32.mxu1 %v9494_v60  ;;  %6898 = vmatprep.mubr.f32.mxu0 %v9500_v62 }
 0x791   :  { %6843 = vmatmul.mubr.f32.gmra.mrb[62].mxu1 %v9506_v3  ;;  %6899 = vmatmul.mubr.f32.gmra.mrb[78].mxu0 %v9512_v36 }
 0x792   :  { %6845 = vmatprep.mubr.f32.mxu1 %v9518_v63  ;;  %6901 = vmatprep.mubr.f32.mxu0 %v9524_v0 }
 0x795   :  { %6846 = vmatmul.mubr.f32.gmra.mrb[64].mxu1 %v9530_v35  ;;  %6902 = vmatmul.mubr.f32.gmra.mrb[80].mxu0 %v9536_v58 }
 0x796   :  { %6848 = vmatprep.mubr.f32.mxu1 %v9542_v56  ;;  %6904 = vmatprep.mubr.f32.mxu0 %v9548_v2 }
 0x799   :  { %6849 = vmatmul.mubr.f32.gmra.mrb[66].mxu1 %v9554_v11  ;;  %6905 = vmatmul.mubr.f32.gmra.mrb[82].mxu0 %v9560_v30 }
 0x79a   :  { %7035 = vmatprep.mubr.msk.f32.mxu0 %vm8167_vm1, %v10443_v46 }
 0x850   :  { %v6829_v19 = vpop.f32.mrb[52].mxu1  ;;  %v9577_v7 = vpop.f32.mrb[68].mxu0 }
 0x851   :  { %v2678_v43 = vpop.f32.mrb[53].mxu1  ;;  %v9579_v42 = vpop.f32.mrb[69].mxu0 }
 0x852   :  { %6915 = vmatprep.mubr.msk.f32.mxu1 %vm75_vm0, %v2678_v43 }
 0x853   :  { %6916 = vmatmul.mubr.msk.f32.vlgmr.msra.gmra.mrb[68].mxu1 %vm75_vm0, %v6829_v19 }
 0x854   :  { %7764 = vmatpush3.bf16.msra.mxu1 %v7761_v18  ;;  %v6832_v10 = vpop.f32.mrb[54].mxu1  ;;  %v9589_v53 = vpop.f32.mrb[70].mxu0 }
 0x855   :  { %v2688_v30 = vpop.f32.mrb[55].mxu1  ;;  %7766 = vmatprep.subr.bf16.mxu1 %v7765_v14  ;;  %v9591_v45 = vpop.f32.mrb[71].mxu0 }
 0x856   :  { %6918 = vmatprep.mubr.msk.f32.mxu1 %vm75_vm0, %v2688_v30 }
 0x857   :  { %6919 = vmatmul.mubr.msk.f32.gmra.mrb[70].mxu1 %vm75_vm0, %v6832_v10 }
 0x858   :  { %v6835_v43 = vpop.f32.mrb[56].mxu1  ;;  %7768 = vmatpush3.bf16.msra.mxu1 %v7765_v14  ;;  %v9595_v11 = vpop.f32.mrb[72].mxu0 }
 0x859   :  { %v2698_v2 = vpop.f32.mrb[57].mxu1  ;;  %7770 = vmatprep.subr.bf16.mxu1 %v7769_v52  ;;  %v2843_v19 = vpop.f32.mrb[73].mxu0 }
 0x85a   :  { %6921 = vmatprep.mubr.msk.f32.mxu1 %vm75_vm0, %v2698_v2 }
 0x85b   :  { %6922 = vmatmul.mubr.msk.f32.gmra.mrb[72].mxu1 %vm75_vm0, %v6835_v43 }
 0x85c   :  { %v6838_v18 = vpop.f32.mrb[58].mxu1  ;;  %v6894_v56 = vpop.f32.mrb[74].mxu0 }
 0x85d   :  { %v2708_v12 = vpop.f32.mrb[59].mxu1  ;;  %v2853_v13 = vpop.f32.mrb[75].mxu0 }
 0x85e   :  { %6924 = vmatprep.mubr.msk.f32.mxu1 %vm75_vm0, %v2708_v12 }
 0x85f   :  { %6925 = vmatmul.mubr.msk.f32.gmra.mrb[74].mxu1 %vm75_vm0, %v6838_v18 }
 0x860   :  { %v6841_v10 = vpop.f32.mrb[60].mxu1  ;;  %v6897_v30 = vpop.f32.mrb[76].mxu0 }
 0x861   :  { %v2718_v14 = vpop.f32.mrb[61].mxu1  ;;  %v2863_v58 = vpop.f32.mrb[77].mxu0 }
 0x862   :  { %6927 = vmatprep.mubr.msk.f32.mxu1 %vm75_vm0, %v2718_v14 }
 0x863   :  { %6928 = vmatmul.mubr.msk.f32.gmra.mrb[76].mxu1 %vm75_vm0, %v6841_v10 }
 0x864   :  { %v6844_v35 = vpop.f32.mrb[62].mxu1  ;;  %v6900_v2 = vpop.f32.mrb[78].mxu0 }
 0x865   :  { %v2728_v0 = vpop.f32.mrb[63].mxu1  ;;  %v2873_v43 = vpop.f32.mrb[79].mxu0 }
 0x866   :  { %6930 = vmatprep.mubr.msk.f32.mxu1 %vm75_vm0, %v2728_v0  ;;  %v5447_v0 = vld [vmem:[%s10338_s2 + $0x110] sm:$0xff] }
 0x867   :  { %6931 = vmatmul.mubr.msk.f32.gmra.mrb[78].mxu1 %vm75_vm0, %v6844_v35  ;;  %v5448_v35 = vld [vmem:[%s10338_s2 + $0x118] sm:$0xff] }
 0x868   :  { %v6847_v63 = vpop.f32.mrb[64].mxu1  ;;  %v6903_v12 = vpop.f32.mrb[80].mxu0 }
 0x869   :  { %v2738_v36 = vpop.f32.mrb[65].mxu1  ;;  %v2883_v18 = vpop.f32.mrb[81].mxu0 }
 0x86a   :  { %6933 = vmatprep.mubr.msk.f32.mxu1 %vm75_vm0, %v2738_v36  ;;  %v7773_v36 = vpack.c.bf16 %v5448_v35, %v5447_v0 }
 0x86b   :  { %6934 = vmatmul.mubr.msk.f32.gmra.mrb[80].mxu1 %vm75_vm0, %v6847_v63 }
 0x86c   :  { %v6850_v3 = vpop.f32.mrb[66].mxu1  ;;  %v6906_v14 = vpop.f32.mrb[82].mxu0 }
 0x86d   :  { %v2748_v62 = vpop.f32.mrb[67].mxu1  ;;  %v2893_v10 = vpop.f32.mrb[83].mxu0 }
 0x86e   :  { %6936 = vmatprep.mubr.msk.f32.mxu1 %vm75_vm0, %v2748_v62 }
 0x86f   :  { %6937 = vmatmul.mubr.msk.f32.gmra.mrb[82].mxu1 %vm75_vm0, %v6850_v3 }
 0x870   :  { %6947 = vmatprep.mubr.msk.f32.mxu1 %vm75_vm0, %v9271_v24 }
 0x873   :  { %6948 = vmatmul.mubr.msk.f32.vlgmr.msra.gmra.mrb[68].mxu1 %vm75_vm0, %v9274_v33 }
 0x874   :  { %7772 = vmatpush3.bf16.msra.mxu1 %v7769_v52  ;;  %6950 = vmatprep.mubr.msk.f32.mxu1 %vm75_vm0, %v9277_v31 }
 0x875   :  { %7774 = vmatprep.subr.bf16.mxu1 %v7773_v36 }
 0x877   :  { %6951 = vmatmul.mubr.msk.f32.gmra.mrb[70].mxu1 %vm75_vm0, %v9280_v4 }
 0x878   :  { %6953 = vmatprep.mubr.msk.f32.mxu1 %vm75_vm0, %v9283_v44  ;;  %7776 = vmatpush3.bf16.msra.mxu1 %v7773_v36 }
 0x87b   :  { %6954 = vmatmul.mubr.msk.f32.gmra.mrb[72].mxu1 %vm75_vm0, %v9286_v40 }
 0x87c   :  { %6956 = vmatprep.mubr.msk.f32.mxu1 %vm75_vm0, %v9289_v16 }
 0x87f   :  { %6957 = vmatmul.mubr.msk.f32.gmra.mrb[74].mxu1 %vm75_vm0, %v9294_v9 }
 0x880   :  { %6959 = vmatprep.mubr.msk.f32.mxu1 %vm75_vm0, %v9338_v1 }
 0x883   :  { %6960 = vmatmul.mubr.msk.f32.gmra.mrb[76].mxu1 %vm75_vm0, %v9341_v27 }
 0x884   :  { %6962 = vmatprep.mubr.msk.f32.mxu1 %vm75_vm0, %v9347_v32 }
 0x887   :  { %6963 = vmatmul.mubr.msk.f32.gmra.mrb[78].mxu1 %vm75_vm0, %v9350_v17 }
 0x888   :  { %6965 = vmatprep.mubr.msk.f32.mxu1 %vm75_vm0, %v9353_v34 }
 0x88b   :  { %6966 = vmatmul.mubr.msk.f32.gmra.mrb[80].mxu1 %vm75_vm0, %v9358_v15 }
 0x88c   :  { %6968 = vmatprep.mubr.msk.f32.mxu1 %vm75_vm0, %v9363_v6 }
 0x88f   :  { %6969 = vmatmul.mubr.msk.f32.gmra.mrb[82].mxu1 %vm75_vm0, %v9366_v37 }
 0x890   :  { %6979 = vmatprep.mubr.msk.f32.mxu1 %vm75_vm0, %v9579_v42 }
 0x893   :  { %6980 = vmatmul.mubr.msk.f32.vlgmr.msra.gmra.mrb[68].mxu1 %vm75_vm0, %v9577_v7 }
 0x894   :  { %6982 = vmatprep.mubr.msk.f32.mxu1 %vm75_vm0, %v9591_v45 }
 0x897   :  { %6983 = vmatmul.mubr.msk.f32.gmra.mrb[70].mxu1 %vm75_vm0, %v9589_v53 }
 0x898   :  { %6985 = vmatprep.mubr.msk.f32.mxu1 %vm75_vm0, %v2843_v19 }
 0x89b   :  { %6986 = vmatmul.mubr.msk.f32.gmra.mrb[72].mxu1 %vm75_vm0, %v9595_v11 }
 0x89c   :  { %6988 = vmatprep.mubr.msk.f32.mxu1 %vm75_vm0, %v2853_v13 }
 0x89f   :  { %6989 = vmatmul.mubr.msk.f32.gmra.mrb[74].mxu1 %vm75_vm0, %v6894_v56 }
 0x8a0   :  { %6991 = vmatprep.mubr.msk.f32.mxu1 %vm75_vm0, %v2863_v58 }
 0x8a3   :  { %6992 = vmatmul.mubr.msk.f32.gmra.mrb[76].mxu1 %vm75_vm0, %v6897_v30 }
 0x8a4   :  { %6994 = vmatprep.mubr.msk.f32.mxu1 %vm75_vm0, %v2873_v43 }
 0x8a7   :  { %6995 = vmatmul.mubr.msk.f32.gmra.mrb[78].mxu1 %vm75_vm0, %v6900_v2 }
 0x8a8   :  { %6997 = vmatprep.mubr.msk.f32.mxu1 %vm75_vm0, %v2883_v18 }
 0x8ab   :  { %6998 = vmatmul.mubr.msk.f32.gmra.mrb[80].mxu1 %vm75_vm0, %v6903_v12 }
 0x8ac   :  { %7000 = vmatprep.mubr.msk.f32.mxu1 %vm75_vm0, %v2893_v10 }
 0x8af   :  { %7001 = vmatmul.mubr.msk.f32.gmra.mrb[82].mxu1 %vm75_vm0, %v6906_v14 }
 0x8b0   :  { %7161 = vmatprep.mubr.f32.mxu1 %v9091_v41 }
 0x966   :  { %v9669_v53 = vpop.f32.mrb[68].mxu1 }
 0x967   :  { %v9673_v62 = vmul.f32 %v9669_v53, %v9669_v53  ;;  %v9675_v3 = vpop.f32.mrb[69].mxu1 }
 0x968   :  { %v7778_v63 = vpack.c.bf16 %v9669_v53, %v9675_v3  ;;  %v3582_v58 = vmul.f32 %v9675_v3, %v9675_v3 }
 0x96a   :  { %v7802_v56 = vpack.c.bf16 %v9673_v62, %v3582_v58  ;;  %v9682_v11 = vpop.f32.mrb[70].mxu1  ;;  %7779 = vmatpush3.bf16.msra.mxu0 %v7778_v63 }
 0x96b   :  { %v3585_v41 = vmul.f32 %v9682_v11, %v9682_v11  ;;  %v9686_v7 = vpop.f32.mrb[71].mxu1  ;;  %7780 = vmatprep.subr.bf16.mxu0 %v10426_v38 }
 0x96c   :  { %v7781_v42 = vpack.c.bf16 %v9682_v11, %v9686_v7  ;;  %v3584_v52 = vmul.f32 %v9686_v7, %v9686_v7 }
 0x96e   :  { %v7805_v45 = vpack.c.bf16 %v3585_v41, %v3584_v52  ;;  %v9693_v19 = vpop.f32.mrb[72].mxu1  ;;  %7782 = vmatpush3.bf16.msra.mxu0 %v7781_v42 }
 0x96f   :  { %v3587_v13 = vmul.f32 %v9693_v19, %v9693_v19  ;;  %v9697_v30 = vpop.f32.mrb[73].mxu1  ;;  %7783 = vmatprep.subr.bf16.mxu0 %v10426_v38 }
 0x970   :  { %v7784_v2 = vpack.c.bf16 %v9693_v19, %v9697_v30  ;;  %v3586_v43 = vmul.f32 %v9697_v30, %v9697_v30 }
 0x972   :  { %v7808_v12 = vpack.c.bf16 %v3587_v13, %v3586_v43  ;;  %v9704_v18 = vpop.f32.mrb[74].mxu1  ;;  %7785 = vmatpush3.bf16.msra.mxu0 %v7784_v2 }
 0x973   :  { %v3589_v14 = vmul.f32 %v9704_v18, %v9704_v18  ;;  %v9708_v10 = vpop.f32.mrb[75].mxu1  ;;  %7786 = vmatprep.subr.bf16.mxu0 %v10426_v38 }
 0x974   :  { %v7787_v0 = vpack.c.bf16 %v9704_v18, %v9708_v10  ;;  %v3588_v35 = vmul.f32 %v9708_v10, %v9708_v10 }
 0x976   :  { %v7811_v36 = vpack.c.bf16 %v3589_v14, %v3588_v35  ;;  %v9715_v62 = vpop.f32.mrb[76].mxu1  ;;  %7788 = vmatpush3.bf16.msra.mxu0 %v7787_v0 }
 0x977   :  { %v3591_v63 = vmul.f32 %v9715_v62, %v9715_v62  ;;  %v9719_v58 = vpop.f32.mrb[77].mxu1  ;;  %7789 = vmatprep.subr.bf16.mxu0 %v10426_v38 }
 0x978   :  { %v7790_v41 = vpack.c.bf16 %v9715_v62, %v9719_v58  ;;  %v3590_v42 = vmul.f32 %v9719_v58, %v9719_v58 }
 0x97a   :  { %v7814_v52 = vpack.c.bf16 %v3591_v63, %v3590_v42  ;;  %v9726_v13 = vpop.f32.mrb[78].mxu1  ;;  %7791 = vmatpush3.bf16.msra.mxu0 %v7790_v41 }
 0x97b   :  { %v3593_v2 = vmul.f32 %v9726_v13, %v9726_v13  ;;  %v9730_v43 = vpop.f32.mrb[79].mxu1  ;;  %7792 = vmatprep.subr.bf16.mxu0 %v10426_v38 }
 0x97c   :  { %v7793_v14 = vpack.c.bf16 %v9726_v13, %v9730_v43  ;;  %v3592_v0 = vmul.f32 %v9730_v43, %v9730_v43 }
 0x97e   :  { %v7817_v35 = vpack.c.bf16 %v3593_v2, %v3592_v0  ;;  %v9737_v60 = vpop.f32.mrb[80].mxu1  ;;  %7794 = vmatpush3.bf16.msra.mxu0 %v7793_v14 }
 0x97f   :  { %v3595_v63 = vmul.f32 %v9737_v60, %v9737_v60  ;;  %v9741_v41 = vpop.f32.mrb[81].mxu1  ;;  %7795 = vmatprep.subr.bf16.mxu0 %v10426_v38 }
 0x980   :  { %v7796_v42 = vpack.c.bf16 %v9737_v60, %v9741_v41  ;;  %v3594_v55 = vmul.f32 %v9741_v41, %v9741_v41 }
 0x982   :  { %v7820_v54 = vpack.c.bf16 %v3595_v63, %v3594_v55  ;;  %v9748_v21 = vpop.f32.mrb[82].mxu1  ;;  %7797 = vmatpush3.bf16.msra.mxu0 %v7796_v42 }
 0x983   :  { %v3597_v2 = vmul.f32 %v9748_v21, %v9748_v21  ;;  %v9752_v14 = vpop.f32.mrb[83].mxu1  ;;  %7798 = vmatprep.subr.bf16.mxu0 %v10426_v38 }
 0x984   :  { %v7799_v0 = vpack.c.bf16 %v9748_v21, %v9752_v14  ;;  %v3596_v39 = vmul.f32 %v9752_v14, %v9752_v14 }
 0x986   :  { %v7823_v59 = vpack.c.bf16 %v3597_v2, %v3596_v39  ;;  %7800 = vmatpush3.bf16.msra.mxu0 %v7799_v0 }
 0x987   :  { %7801 = vmatprep.subr.bf16.mxu0 %v10426_v38 }
 0x989   :  { %7036 = vmatmul.mubr.f32.vlgmr.msra.gmra.mrb[84].mxu0 %v10444_v51 }
 0x98a   :  { %7803 = vmatpush3.bf16.msra.mxu0 %v7802_v56  ;;  %7070 = vmatprep.mubr.msk.f32.mxu0 %vm8167_vm1, %v10443_v46 }
 0x98b   :  { %7804 = vmatprep.subr.bf16.mxu0 %v10426_v38 }
 0x98e   :  { %7806 = vmatpush3.bf16.msra.mxu0 %v7805_v45 }
 0x98f   :  { %7807 = vmatprep.subr.bf16.mxu0 %v10426_v38 }
 0x992   :  { %7809 = vmatpush3.bf16.msra.mxu0 %v7808_v12 }
 0x993   :  { %7810 = vmatprep.subr.bf16.mxu0 %v10426_v38 }
 0x996   :  { %7812 = vmatpush3.bf16.msra.mxu0 %v7811_v36 }
 0x997   :  { %7813 = vmatprep.subr.bf16.mxu0 %v10426_v38 }
 0x99a   :  { %7815 = vmatpush3.bf16.msra.mxu0 %v7814_v52 }
 0x99b   :  { %7816 = vmatprep.subr.bf16.mxu0 %v10426_v38 }
 0x99e   :  { %7818 = vmatpush3.bf16.msra.mxu0 %v7817_v35 }
 0x99f   :  { %7819 = vmatprep.subr.bf16.mxu0 %v10426_v38 }
 0x9a2   :  { %7821 = vmatpush3.bf16.msra.mxu0 %v7820_v54 }
 0x9a3   :  { %7822 = vmatprep.subr.bf16.mxu0 %v10426_v38 }
 0x9a6   :  { %7824 = vmatpush3.bf16.msra.mxu0 %v7823_v59 }
 0x9a9   :  { %7071 = vmatmul.mubr.f32.vlgmr.msra.gmra.mrb[86].mxu0 %v10444_v51 }
 0x9aa   :  { %7105 = vmatprep.mubr.f32.mxu0 %v9199_v20 }
 0xa5c   :  { %v3578_v39 = vpop.f32.mrb[84].mxu0 }
 0xa5d   :  { %v9773_v55 = vrot.slane %v3578_v39, %v10445_v28  ;;  %v7037_v56 = vpop.f32.mrb[85].mxu0  ;;  %v3668_v35 = vmul.f32 %v3578_v39, %v3578_v39 }
 0xa5f   :  { %v3674_v45 = vsub.f32 %v9675_v3, %v9773_v55  ;;  %v3675_v12 = vsub.f32 %v9669_v53, %v9773_v55  ;;  %v3676_v54 = vsub.f32 %v9686_v7, %v9773_v55  ;;  %v3677_v59 = vsub.f32 %v9682_v11, %v9773_v55 }
 0xa60   :  { %v3678_v20 = vsub.f32 %v9697_v30, %v9773_v55  ;;  %v3679_v36 = vsub.f32 %v9693_v19, %v9773_v55  ;;  %v3680_v52 = vsub.f32 %v9708_v10, %v9773_v55  ;;  %v3681_v3 = vsub.f32 %v9704_v18, %v9773_v55 }
 0xa61   :  { %v3682_v53 = vsub.f32 %v9719_v58, %v9773_v55  ;;  %v3683_v7 = vsub.f32 %v9715_v62, %v9773_v55  ;;  %v3684_v11 = vsub.f32 %v9730_v43, %v9773_v55  ;;  %v3685_v30 = vsub.f32 %v9726_v13, %v9773_v55 }
 0xa7c   :  { %v3664_v62 = vpop.f32.mrb[86].mxu0 }
 0xa7d   :  { %v3669_v63 = vsub.f32 %v3664_v62, %v3668_v35  ;;  %v7072_v42 = vpop.f32.mrb[87].mxu0 }
 0xa7f   :  { %v3690_v43 = vadd.f32 1e-05, %v3669_v63  ;;  %v10466_v63 = vld [vmem:[#allocation21_spill] sm:$0xff] }
 0xa81   :  { %8130 = vrsqrt.f32 %v3690_v43 }
 0xa8b   :  { %v8131_v2 = vpop.eup %8130 }
 0xa8c   :  { %v9808_v13 = vrot.slane %v8131_v2, %v10445_v28  ;;  %v10467_v2 = vld [vmem:[#allocation22_spill] sm:$0xff] }
 0xa8e   :  { %v3696_v0 = vmul.f32 %v9808_v13, %v3674_v45  ;;  %v3697_v56 = vmul.f32 %v9808_v13, %v3675_v12  ;;  %v3698_v10 = vmul.f32 %v9808_v13, %v3676_v54  ;;  %v3699_v18 = vmul.f32 %v9808_v13, %v3677_v59 }
 0xa8f   :  { %v3700_v58 = vmul.f32 %v9808_v13, %v3678_v20  ;;  %v3701_v39 = vmul.f32 %v9808_v13, %v3679_v36  ;;  %v3702_v35 = vmul.f32 %v9808_v13, %v3680_v52  ;;  %v3703_v62 = vmul.f32 %v9808_v13, %v3681_v3 }
 0xa90   :  { %v3716_v42 = vmul.f32 %v10466_v63, %v3696_v0  ;;  %v3717_v43 = vmul.f32 %v10466_v63, %v3697_v56  ;;  %v3718_v45 = vmul.f32 %v10466_v63, %v3698_v10  ;;  %v3719_v12 = vmul.f32 %v10466_v63, %v3699_v18 }
 0xa91   :  { %v3720_v54 = vmul.f32 %v10466_v63, %v3700_v58  ;;  %v3721_v59 = vmul.f32 %v10466_v63, %v3701_v39  ;;  %v3722_v20 = vmul.f32 %v10466_v63, %v3702_v35  ;;  %v3723_v36 = vmul.f32 %v10466_v63, %v3703_v62 }
 0xa92   :  { %v3736_v52 = vadd.f32 %v10467_v2, %v3716_v42  ;;  %v3737_v3 = vadd.f32 %v10467_v2, %v3717_v43  ;;  %v3738_v0 = vadd.f32 %v10467_v2, %v3718_v45  ;;  %v3739_v56 = vadd.f32 %v10467_v2, %v3719_v12 }
 0xa93   :  { %v3740_v10 = vadd.f32 %v10467_v2, %v3720_v54  ;;  %v3741_v18 = vadd.f32 %v10467_v2, %v3721_v59  ;;  %v3742_v58 = vadd.f32 %v10467_v2, %v3722_v20  ;;  %v3743_v39 = vadd.f32 %v10467_v2, %v3723_v36 }
 0xa94   :  { %v3752_v19 = vmax.f32 %v3736_v52, 0.0  ;;  %v3753_v35 = vmax.f32 %v3737_v3, 0.0  ;;  %v3754_v28 = vmax.f32 %v3738_v0, 0.0  ;;  %v3755_v62 = vmax.f32 %v3739_v56, 0.0 }
 0xa95   :  { %v3756_v51 = vmax.f32 %v3740_v10, 0.0  ;;  %v3757_v42 = vmax.f32 %v3741_v18, 0.0  ;;  %v3758_v46 = vmax.f32 %v3742_v58, 0.0  ;;  %v3759_v43 = vmax.f32 %v3743_v39, 0.0 }
 0xa96   :  { %v9835_v45 = vadd.f32 %v3752_v19, %v9271_v24  ;;  %v9838_v12 = vadd.f32 %v3753_v35, %v9274_v33  ;;  %v9841_v54 = vadd.f32 %v3754_v28, %v9277_v31  ;;  %v9844_v59 = vadd.f32 %v3755_v62, %v9280_v4 }
 0xa97   :  { %v9847_v20 = vadd.f32 %v3756_v51, %v9283_v44  ;;  %v9850_v36 = vadd.f32 %v3757_v42, %v9286_v40  ;;  %v9853_v52 = vadd.f32 %v3758_v46, %v9289_v16  ;;  %v9858_v33 = vadd.f32 %v3759_v43, %v9294_v9 }
 0xa98   :  { %v7825_v24 = vpack.c.bf16 %v9838_v12, %v9835_v45  ;;  %v3704_v28 = vmul.f32 %v9808_v13, %v3682_v53  ;;  %v3705_v31 = vmul.f32 %v9808_v13, %v3683_v7  ;;  %v7829_v51 = vpack.c.bf16 %v9844_v59, %v9841_v54 }
 0xa99   :  { %v7833_v4 = vpack.c.bf16 %v9850_v36, %v9847_v20  ;;  %v3706_v44 = vmul.f32 %v9808_v13, %v3684_v11  ;;  %v3707_v46 = vmul.f32 %v9808_v13, %v3685_v30  ;;  %v10468_v9 = vsub.f32 %v9741_v41, %v9773_v55 }
 0xa9a   :  { %7826 = vmatprep.subr.bf16.mxu0 %v7825_v24  ;;  %7858 = vmatprep.subr.bf16.mxu1 %v7825_v24  ;;  %v3724_v40 = vmul.f32 %v10466_v63, %v3704_v28  ;;  %v3725_v16 = vmul.f32 %v10466_v63, %v3705_v31  ;;  %v10469_v11 = vsub.f32 %v9737_v60, %v9773_v55 }
 0xa9b   :  { %v3708_v53 = vmul.f32 %v9808_v13, %v10468_v9  ;;  %7828 = vmatpush3.bf16.msra.mxu0 %v7825_v24  ;;  %7860 = vmatpush3.bf16.msra.mxu1 %v7825_v24  ;;  %v3726_v7 = vmul.f32 %v10466_v63, %v3706_v44  ;;  %v3727_v19 = vmul.f32 %v10466_v63, %v3707_v46 }
 0xa9c   :  { %v3709_v30 = vmul.f32 %v9808_v13, %v10469_v11  ;;  %7830 = vmatprep.subr.bf16.mxu0 %v7829_v51  ;;  %7862 = vmatprep.subr.bf16.mxu1 %v7829_v51  ;;  %v3744_v3 = vadd.f32 %v10467_v2, %v3724_v40  ;;  %v3745_v0 = vadd.f32 %v10467_v2, %v3725_v16 }
 0xa9d   :  { %v3728_v41 = vmul.f32 %v10466_v63, %v3708_v53  ;;  %v3746_v56 = vadd.f32 %v10467_v2, %v3726_v7  ;;  %v3747_v10 = vadd.f32 %v10467_v2, %v3727_v19  ;;  %v10470_v58 = vsub.f32 %v9752_v14, %v9773_v55  ;;  %v5470_v19 = vld [vmem:[%s10338_s2 + $0x148] sm:$0xff] }
 0xa9e   :  { %v3729_v18 = vmul.f32 %v10466_v63, %v3709_v30  ;;  %v3760_v39 = vmax.f32 %v3744_v3, 0.0  ;;  %v3761_v35 = vmax.f32 %v3745_v0, 0.0  ;;  %v10471_v42 = vsub.f32 %v9748_v21, %v9773_v55  ;;  %v5472_v30 = vld [vmem:[%s10338_s2 + $0x158] sm:$0xff]  ;;  %v10485_v0 = vld [vmem:[#allocation15_spill] sm:$0xff] }
 0xa9f   :  { %v3710_v60 = vmul.f32 %v9808_v13, %v10470_v58  ;;  %v3748_v62 = vadd.f32 %v10467_v2, %v3728_v41  ;;  %7832 = vmatpush3.bf16.msra.mxu0 %v7829_v51  ;;  %7864 = vmatpush3.bf16.msra.mxu1 %v7829_v51  ;;  %v7837_v31 = vpack.c.bf16 %v9858_v33, %v9853_v52  ;;  %v3762_v44 = vmax.f32 %v3746_v56, 0.0  ;;  %v10486_v41 = vld [vmem:[#allocation16_spill] sm:$0xff]  ;;  %v10487_v56 = vld [vmem:[#allocation17_spill] sm:$0xff]  ;;  %v5465_v58 = vld [vmem:[%s10338_s2 + $0x120] sm:$0xff] }
 0xaa0   :  { %v3711_v43 = vmul.f32 %v9808_v13, %v10471_v42  ;;  %v3749_v24 = vadd.f32 %v10467_v2, %v3729_v18  ;;  %7834 = vmatprep.subr.bf16.mxu0 %v7833_v4  ;;  %7866 = vmatprep.subr.bf16.mxu1 %v7833_v4  ;;  %v9902_v21 = vadd.f32 %v3760_v39, %v9338_v1  ;;  %v3763_v13 = vmax.f32 %v3747_v10, 0.0  ;;  %v10488_v10 = vld [vmem:[#allocation19_spill] sm:$0xff] }
 0xaa1   :  { %v3730_v28 = vmul.f32 %v10466_v63, %v3710_v60  ;;  %v9905_v55 = vadd.f32 %v3761_v35, %v9341_v27  ;;  %v9911_v16 = vadd.f32 %v3762_v44, %v9347_v32  ;;  %v10489_v18 = vmov 0.0   ;;  %v5466_v60 = vld [vmem:[%s10338_s2 + $0x128] sm:$0xff]  ;;  %v5467_v35 = vld [vmem:[%s10338_s2 + $0x130] sm:$0xff] }
 0xaa2   :  { %v3731_v14 = vmul.f32 %v10466_v63, %v3711_v43  ;;  %v3764_v63 = vmax.f32 %v3748_v62, 0.0  ;;  %v9914_v1 = vadd.f32 %v3763_v13, %v9350_v17  ;;  %v3765_v9 = vmax.f32 %v3749_v24, 0.0  ;;  %v5468_v62 = vld [vmem:[%s10338_s2 + $0x138] sm:$0xff]  ;;  %v5506_v44 = vld [vmem:[%s10338_s2 + $0x168] sm:$0xff] }
 0xaa3   :  { %v3750_v46 = vadd.f32 %v10467_v2, %v3730_v28  ;;  %7836 = vmatpush3.bf16.msra.mxu0 %v7833_v4  ;;  %7868 = vmatpush3.bf16.msra.mxu1 %v7833_v4  ;;  %v7841_v40 = vpack.c.bf16 %v9905_v55, %v9902_v21  ;;  %v7897_v39 = vpack.c.bf16 %v5466_v60, %v5465_v58 }
 0xaa4   :  { %v3751_v51 = vadd.f32 %v10467_v2, %v3731_v14  ;;  %7838 = vmatprep.subr.bf16.mxu0 %v7837_v31  ;;  %7870 = vmatprep.subr.bf16.mxu1 %v7837_v31  ;;  %v9917_v27 = vadd.f32 %v3764_v63, %v9353_v34  ;;  %v7845_v2 = vpack.c.bf16 %v9914_v1, %v9911_v16 }
 0xaa5   :  { %v9922_v4 = vadd.f32 %v3765_v9, %v9358_v15  ;;  %v3766_v53 = vmax.f32 %v3750_v46, 0.0  ;;  %v5469_v15 = vld [vmem:[%s10338_s2 + $0x140] sm:$0xff]  ;;  %v7901_v28 = vpack.c.bf16 %v5468_v62, %v5467_v35 }
 0xaa6   :  { %v3767_v32 = vmax.f32 %v3751_v51, 0.0 }
 0xaa7   :  { %7840 = vmatpush3.bf16.msra.mxu0 %v7837_v31  ;;  %7872 = vmatpush3.bf16.msra.mxu1 %v7837_v31  ;;  %v7849_v17 = vpack.c.bf16 %v9922_v4, %v9917_v27  ;;  %v9927_v7 = vadd.f32 %v3766_v53, %v9363_v6  ;;  %v7889_v6 = vpack.c.bf16 %v5470_v19, %v5469_v15  ;;  %v5505_v31 = vld [vmem:[%s10338_s2 + $0x160] sm:$0xff] }
 0xaa8   :  { %7842 = vmatprep.subr.bf16.mxu0 %v7841_v40  ;;  %7874 = vmatprep.subr.bf16.mxu1 %v7841_v40  ;;  %v9930_v34 = vadd.f32 %v3767_v32, %v9366_v37  ;;  %v5471_v37 = vld [vmem:[%s10338_s2 + $0x150] sm:$0xff]  ;;  %v7905_v63 = vpack.c.bf16 %v5506_v44, %v5505_v31 }
 0xaa9   :  { %v7893_v3 = vpack.c.bf16 %v5472_v30, %v5471_v37 }
 0xaaa   :  { %v7853_v11 = vpack.c.bf16 %v9930_v34, %v9927_v7 }
 0xaab   :  { %7844 = vmatpush3.bf16.msra.mxu0 %v7841_v40  ;;  %7876 = vmatpush3.bf16.msra.mxu1 %v7841_v40 }
 0xaac   :  { %7846 = vmatprep.subr.bf16.mxu0 %v7845_v2  ;;  %7878 = vmatprep.subr.bf16.mxu1 %v7845_v2 }
 0xaaf   :  { %7848 = vmatpush3.bf16.msra.mxu0 %v7845_v2  ;;  %7880 = vmatpush3.bf16.msra.mxu1 %v7845_v2 }
 0xab0   :  { %7850 = vmatprep.subr.bf16.mxu0 %v7849_v17  ;;  %7882 = vmatprep.subr.bf16.mxu1 %v7849_v17 }
 0xab3   :  { %7852 = vmatpush3.bf16.msra.mxu0 %v7849_v17  ;;  %7884 = vmatpush3.bf16.msra.mxu1 %v7849_v17 }
 0xab4   :  { %7854 = vmatprep.subr.bf16.mxu0 %v7853_v11  ;;  %7886 = vmatprep.subr.bf16.mxu1 %v7853_v11 }
 0xab7   :  { %7856 = vmatpush3.bf16.msra.mxu0 %v7853_v11  ;;  %7888 = vmatpush3.bf16.msra.mxu1 %v7853_v11 }
 0xab8   :  { %7890 = vmatprep.subr.bf16.mxu0 %v7889_v6  ;;  %7913 = vmatprep.subr.bf16.mxu1 %v10426_v38 }
 0xaba   :  { %7106 = vmatmul.mubr.f32.vlgmr.msra.gmra.mrb[88].mxu0 %v9386_v49  ;;  %7162 = vmatmul.mubr.f32.vlgmr.msra.gmra.mrb[84].mxu1 %v9392_v48  ;;  %v10472_v49 = vld [vmem:[#allocation2_spill] sm:$0xff]  ;;  %v10473_v48 = vld [vmem:[#allocation3_spill] sm:$0xff] }
 0xabb   :  { %7108 = vmatprep.mubr.f32.mxu0 %v9398_v25  ;;  %7164 = vmatprep.mubr.f32.mxu1 %v9404_v22  ;;  %v10474_v25 = vld [vmem:[#allocation4_spill] sm:$0xff]  ;;  %v10475_v22 = vld [vmem:[#allocation5_spill] sm:$0xff] }
 0xabc   :  { %7892 = vmatpush3.bf16.msra.mxu0 %v7889_v6 }
 0xabd   :  { %7894 = vmatprep.subr.bf16.mxu0 %v7893_v3 }
 0xabe   :  { %7109 = vmatmul.mubr.f32.gmra.mrb[90].mxu0 %v9410_v26  ;;  %7165 = vmatmul.mubr.f32.gmra.mrb[86].mxu1 %v9416_v23  ;;  %v10476_v26 = vld [vmem:[#allocation6_spill] sm:$0xff]  ;;  %v10477_v23 = vld [vmem:[#allocation7_spill] sm:$0xff] }
 0xabf   :  { %7111 = vmatprep.mubr.f32.mxu0 %v9422_v50  ;;  %7167 = vmatprep.mubr.f32.mxu1 %v9428_v8  ;;  %v10478_v50 = vld [vmem:[#allocation8_spill] sm:$0xff]  ;;  %v10479_v8 = vld [vmem:[#allocation9_spill] sm:$0xff] }
 0xac0   :  { %7896 = vmatpush3.bf16.msra.mxu0 %v7893_v3 }
 0xac1   :  { %7898 = vmatprep.subr.bf16.mxu0 %v7897_v39 }
 0xac2   :  { %7112 = vmatmul.mubr.f32.gmra.mrb[92].mxu0 %v9434_v47  ;;  %7168 = vmatmul.mubr.f32.gmra.mrb[88].mxu1 %v9440_v61  ;;  %v10480_v47 = vld [vmem:[#allocation10_spill] sm:$0xff]  ;;  %v10481_v61 = vld [vmem:[#allocation11_spill] sm:$0xff] }
 0xac3   :  { %7114 = vmatprep.mubr.f32.mxu0 %v9446_v5  ;;  %7170 = vmatprep.mubr.f32.mxu1 %v9452_v29  ;;  %v10482_v5 = vld [vmem:[#allocation12_spill] sm:$0xff]  ;;  %v10483_v29 = vld [vmem:[#allocation13_spill] sm:$0xff] }
 0xac6   :  { %7115 = vmatmul.mubr.f32.gmra.mrb[94].mxu0 %v9458_v57  ;;  %7171 = vmatmul.mubr.f32.gmra.mrb[90].mxu1 %v10472_v49  ;;  %v10484_v57 = vld [vmem:[#allocation14_spill] sm:$0xff] }
 0xac7   :  { %7117 = vmatprep.mubr.f32.mxu0 %v10473_v48  ;;  %7173 = vmatprep.mubr.f32.mxu1 %v10474_v25 }
 0xaca   :  { %7118 = vmatmul.mubr.f32.gmra.mrb[96].mxu0 %v10475_v22  ;;  %7174 = vmatmul.mubr.f32.gmra.mrb[92].mxu1 %v10476_v26 }
 0xacb   :  { %7120 = vmatprep.mubr.f32.mxu0 %v10477_v23  ;;  %7176 = vmatprep.mubr.f32.mxu1 %v10478_v50 }
 0xace   :  { %7121 = vmatmul.mubr.f32.gmra.mrb[98].mxu0 %v10479_v8  ;;  %7177 = vmatmul.mubr.f32.gmra.mrb[94].mxu1 %v10480_v47 }
 0xacf   :  { %7123 = vmatprep.mubr.f32.mxu0 %v10481_v61  ;;  %7179 = vmatprep.mubr.f32.mxu1 %v10482_v5 }
 0xad2   :  { %7124 = vmatmul.mubr.f32.gmra.mrb[100].mxu0 %v10483_v29  ;;  %7180 = vmatmul.mubr.f32.gmra.mrb[96].mxu1 %v10484_v57  ;;  %v5507_v57 = vld [vmem:[%s10338_s2 + $0x170] sm:$0xff] }
 0xad3   :  { %7126 = vmatprep.mubr.f32.mxu0 %v10485_v0  ;;  %7182 = vmatprep.mubr.f32.mxu1 %v10486_v41  ;;  %v5508_v0 = vld [vmem:[%s10338_s2 + $0x178] sm:$0xff] }
 0xad4   :  { %v7909_v41 = vpack.c.bf16 %v5508_v0, %v5507_v57 }
 0xad6   :  { %7127 = vmatmul.mubr.f32.gmra.mrb[102].mxu0 %v10487_v56  ;;  %7183 = vmatmul.mubr.f32.gmra.mrb[98].mxu1 %v10488_v10 }
 0xad7   :  { %7313 = vmatprep.mubr.msk.f32.mxu1 %vm8167_vm1, %v10489_v18 }
 0xb8d   :  { %v7107_v42 = vpop.f32.mrb[88].mxu0  ;;  %v9991_v43 = vpop.f32.mrb[84].mxu1 }
 0xb8e   :  { %v3850_v24 = vpop.f32.mrb[89].mxu0  ;;  %v9993_v14 = vpop.f32.mrb[85].mxu1 }
 0xb8f   :  { %7193 = vmatprep.mubr.msk.f32.mxu0 %vm75_vm0, %v3850_v24 }
 0xb90   :  { %7194 = vmatmul.mubr.msk.f32.vlgmr.msra.gmra.mrb[104].mxu0 %vm75_vm0, %v7107_v42 }
 0xb91   :  { %7900 = vmatpush3.bf16.msra.mxu0 %v7897_v39  ;;  %v7110_v46 = vpop.f32.mrb[90].mxu0  ;;  %v10003_v13 = vpop.f32.mrb[86].mxu1 }
 0xb92   :  { %v3860_v51 = vpop.f32.mrb[91].mxu0  ;;  %7902 = vmatprep.subr.bf16.mxu0 %v7901_v28  ;;  %v10005_v40 = vpop.f32.mrb[87].mxu1 }
 0xb93   :  { %7196 = vmatprep.mubr.msk.f32.mxu0 %vm75_vm0, %v3860_v51 }
 0xb94   :  { %7197 = vmatmul.mubr.msk.f32.gmra.mrb[106].mxu0 %vm75_vm0, %v7110_v46 }
 0xb95   :  { %v7113_v9 = vpop.f32.mrb[92].mxu0  ;;  %7904 = vmatpush3.bf16.msra.mxu0 %v7901_v28  ;;  %v10009_v2 = vpop.f32.mrb[88].mxu1 }
 0xb96   :  { %v3870_v53 = vpop.f32.mrb[93].mxu0  ;;  %7906 = vmatprep.subr.bf16.mxu0 %v7905_v63  ;;  %v4015_v32 = vpop.f32.mrb[89].mxu1 }
 0xb97   :  { %7199 = vmatprep.mubr.msk.f32.mxu0 %vm75_vm0, %v3870_v53 }
 0xb98   :  { %7200 = vmatmul.mubr.msk.f32.gmra.mrb[108].mxu0 %vm75_vm0, %v7113_v9 }
 0xb99   :  { %v7116_v17 = vpop.f32.mrb[94].mxu0  ;;  %v7172_v15 = vpop.f32.mrb[90].mxu1 }
 0xb9a   :  { %v3880_v19 = vpop.f32.mrb[95].mxu0  ;;  %v4025_v11 = vpop.f32.mrb[91].mxu1 }
 0xb9b   :  { %7202 = vmatprep.mubr.msk.f32.mxu0 %vm75_vm0, %v3880_v19 }
 0xb9c   :  { %7203 = vmatmul.mubr.msk.f32.gmra.mrb[110].mxu0 %vm75_vm0, %v7116_v17 }
 0xb9d   :  { %v7119_v6 = vpop.f32.mrb[96].mxu0  ;;  %v7175_v37 = vpop.f32.mrb[92].mxu1 }
 0xb9e   :  { %v3890_v30 = vpop.f32.mrb[97].mxu0  ;;  %v4035_v3 = vpop.f32.mrb[93].mxu1 }
 0xb9f   :  { %7205 = vmatprep.mubr.msk.f32.mxu0 %vm75_vm0, %v3890_v30 }
 0xba0   :  { %7206 = vmatmul.mubr.msk.f32.gmra.mrb[112].mxu0 %vm75_vm0, %v7119_v6 }
 0xba1   :  { %v7122_v49 = vpop.f32.mrb[98].mxu0  ;;  %v7178_v48 = vpop.f32.mrb[94].mxu1 }
 0xba2   :  { %v3900_v25 = vpop.f32.mrb[99].mxu0  ;;  %v4045_v22 = vpop.f32.mrb[95].mxu1 }
 0xba3   :  { %7208 = vmatprep.mubr.msk.f32.mxu0 %vm75_vm0, %v3900_v25 }
 0xba4   :  { %7209 = vmatmul.mubr.msk.f32.gmra.mrb[114].mxu0 %vm75_vm0, %v7122_v49 }
 0xba5   :  { %v7125_v26 = vpop.f32.mrb[100].mxu0  ;;  %v7181_v23 = vpop.f32.mrb[96].mxu1 }
 0xba6   :  { %v3910_v50 = vpop.f32.mrb[101].mxu0  ;;  %v4055_v8 = vpop.f32.mrb[97].mxu1 }
 0xba7   :  { %7211 = vmatprep.mubr.msk.f32.mxu0 %vm75_vm0, %v3910_v50 }
 0xba8   :  { %7212 = vmatmul.mubr.msk.f32.gmra.mrb[116].mxu0 %vm75_vm0, %v7125_v26 }
 0xba9   :  { %v7128_v47 = vpop.f32.mrb[102].mxu0  ;;  %v7184_v61 = vpop.f32.mrb[98].mxu1 }
 0xbaa   :  { %v3920_v5 = vpop.f32.mrb[103].mxu0  ;;  %v4065_v29 = vpop.f32.mrb[99].mxu1 }
 0xbab   :  { %7214 = vmatprep.mubr.msk.f32.mxu0 %vm75_vm0, %v3920_v5 }
 0xbac   :  { %7215 = vmatmul.mubr.msk.f32.gmra.mrb[118].mxu0 %vm75_vm0, %v7128_v47 }
 0xbad   :  { %7225 = vmatprep.mubr.msk.f32.mxu0 %vm75_vm0, %v9835_v45 }
 0xbb0   :  { %7226 = vmatmul.mubr.msk.f32.vlgmr.msra.gmra.mrb[104].mxu0 %vm75_vm0, %v9838_v12 }
 0xbb1   :  { %7908 = vmatpush3.bf16.msra.mxu0 %v7905_v63  ;;  %7228 = vmatprep.mubr.msk.f32.mxu0 %vm75_vm0, %v9841_v54 }
 0xbb2   :  { %7910 = vmatprep.subr.bf16.mxu0 %v7909_v41 }
 0xbb4   :  { %7229 = vmatmul.mubr.msk.f32.gmra.mrb[106].mxu0 %vm75_vm0, %v9844_v59 }
 0xbb5   :  { %7231 = vmatprep.mubr.msk.f32.mxu0 %vm75_vm0, %v9847_v20  ;;  %7912 = vmatpush3.bf16.msra.mxu0 %v7909_v41 }
 0xbb6   :  { %7985 = vmatprep.subr.bf16.mxu0 %v10426_v38 }
 0xbb8   :  { %7232 = vmatmul.mubr.msk.f32.gmra.mrb[108].mxu0 %vm75_vm0, %v9850_v36 }
 0xbb9   :  { %7234 = vmatprep.mubr.msk.f32.mxu0 %vm75_vm0, %v9853_v52 }
 0xbbc   :  { %7235 = vmatmul.mubr.msk.f32.gmra.mrb[110].mxu0 %vm75_vm0, %v9858_v33 }
 0xbbd   :  { %7237 = vmatprep.mubr.msk.f32.mxu0 %vm75_vm0, %v9902_v21 }
 0xbc0   :  { %7238 = vmatmul.mubr.msk.f32.gmra.mrb[112].mxu0 %vm75_vm0, %v9905_v55 }
 0xbc1   :  { %7240 = vmatprep.mubr.msk.f32.mxu0 %vm75_vm0, %v9911_v16 }
 0xbc4   :  { %7241 = vmatmul.mubr.msk.f32.gmra.mrb[114].mxu0 %vm75_vm0, %v9914_v1 }
 0xbc5   :  { %7243 = vmatprep.mubr.msk.f32.mxu0 %vm75_vm0, %v9917_v27 }
 0xbc8   :  { %7244 = vmatmul.mubr.msk.f32.gmra.mrb[116].mxu0 %vm75_vm0, %v9922_v4 }
 0xbc9   :  { %7246 = vmatprep.mubr.msk.f32.mxu0 %vm75_vm0, %v9927_v7 }
 0xbcc   :  { %7247 = vmatmul.mubr.msk.f32.gmra.mrb[118].mxu0 %vm75_vm0, %v9930_v34 }
 0xbcd   :  { %7257 = vmatprep.mubr.msk.f32.mxu0 %vm75_vm0, %v9993_v14 }
 0xbd0   :  { %7258 = vmatmul.mubr.msk.f32.vlgmr.msra.gmra.mrb[104].mxu0 %vm75_vm0, %v9991_v43 }
 0xbd1   :  { %7260 = vmatprep.mubr.msk.f32.mxu0 %vm75_vm0, %v10005_v40 }
 0xbd4   :  { %7261 = vmatmul.mubr.msk.f32.gmra.mrb[106].mxu0 %vm75_vm0, %v10003_v13 }
 0xbd5   :  { %7263 = vmatprep.mubr.msk.f32.mxu0 %vm75_vm0, %v4015_v32 }
 0xbd8   :  { %7264 = vmatmul.mubr.msk.f32.gmra.mrb[108].mxu0 %vm75_vm0, %v10009_v2 }
 0xbd9   :  { %7266 = vmatprep.mubr.msk.f32.mxu0 %vm75_vm0, %v4025_v11 }
 0xbdc   :  { %7267 = vmatmul.mubr.msk.f32.gmra.mrb[110].mxu0 %vm75_vm0, %v7172_v15 }
 0xbdd   :  { %7269 = vmatprep.mubr.msk.f32.mxu0 %vm75_vm0, %v4035_v3 }
 0xbe0   :  { %7270 = vmatmul.mubr.msk.f32.gmra.mrb[112].mxu0 %vm75_vm0, %v7175_v37 }
 0xbe1   :  { %7272 = vmatprep.mubr.msk.f32.mxu0 %vm75_vm0, %v4045_v22 }
 0xbe4   :  { %7273 = vmatmul.mubr.msk.f32.gmra.mrb[114].mxu0 %vm75_vm0, %v7178_v48 }
 0xbe5   :  { %7275 = vmatprep.mubr.msk.f32.mxu0 %vm75_vm0, %v4055_v8 }
 0xbe8   :  { %7276 = vmatmul.mubr.msk.f32.gmra.mrb[116].mxu0 %vm75_vm0, %v7181_v23 }
 0xbe9   :  { %7278 = vmatprep.mubr.msk.f32.mxu0 %vm75_vm0, %v4065_v29 }
 0xbec   :  { %7279 = vmatmul.mubr.msk.f32.gmra.mrb[118].mxu0 %vm75_vm0, %v7184_v61 }
 0xbed   :  { %7394 = vmatprep.mubr.msk.f32.mxu0 %vm8167_vm1, %v10489_v18 }
 0xca3   :  { %v10085_v56 = vpop.f32.mrb[104].mxu0 }
 0xca4   :  { %v10089_v10 = vmul.f32 %v10085_v56, %v10085_v56  ;;  %v10091_v58 = vpop.f32.mrb[105].mxu0 }
 0xca5   :  { %v7914_v60 = vpack.c.bf16 %v10085_v56, %v10091_v58  ;;  %v4754_v39 = vmul.f32 %v10091_v58, %v10091_v58 }
 0xca7   :  { %v7938_v35 = vpack.c.bf16 %v10089_v10, %v4754_v39  ;;  %v10098_v62 = vpop.f32.mrb[106].mxu0  ;;  %7915 = vmatpush3.bf16.msra.mxu1 %v7914_v60  ;;  %v10490_v39 = vmov 0.0078125  }
 0xca8   :  { %v4757_v42 = vmul.f32 %v10098_v62, %v10098_v62  ;;  %v10102_v43 = vpop.f32.mrb[107].mxu0  ;;  %7916 = vmatprep.subr.bf16.mxu1 %v10426_v38 }
 0xca9   :  { %v7917_v24 = vpack.c.bf16 %v10098_v62, %v10102_v43  ;;  %v4756_v28 = vmul.f32 %v10102_v43, %v10102_v43 }
 0xcab   :  { %v7941_v14 = vpack.c.bf16 %v4757_v42, %v4756_v28  ;;  %v10109_v31 = vpop.f32.mrb[108].mxu0  ;;  %7918 = vmatpush3.bf16.msra.mxu1 %v7917_v24  ;;  %v5027_v42 = vld [vmem:[%s10340_s3 + $0x8] sm:$0xff]  ;;  %v5028_v24 = vld [vmem:[%s10340_s3 + $0x10] sm:$0xff] }
 0xcac   :  { %v4759_v44 = vmul.f32 %v10109_v31, %v10109_v31  ;;  %v10113_v46 = vpop.f32.mrb[109].mxu0  ;;  %7919 = vmatprep.subr.bf16.mxu1 %v10426_v38 }
 0xcad   :  { %v7920_v13 = vpack.c.bf16 %v10109_v31, %v10113_v46  ;;  %v4758_v51 = vmul.f32 %v10113_v46, %v10113_v46 }
 0xcaf   :  { %v7944_v63 = vpack.c.bf16 %v4759_v44, %v4758_v51  ;;  %v10120_v40 = vpop.f32.mrb[110].mxu0  ;;  %7921 = vmatpush3.bf16.msra.mxu1 %v7920_v13  ;;  %v10491_v51 = vld [vmem:[#allocation25_spill] sm:$0xff] }
 0xcb0   :  { %v4761_v9 = vmul.f32 %v10120_v40, %v10120_v40  ;;  %v10124_v2 = vpop.f32.mrb[111].mxu0  ;;  %7922 = vmatprep.subr.bf16.mxu1 %v10426_v38 }
 0xcb1   :  { %v7923_v53 = vpack.c.bf16 %v10120_v40, %v10124_v2  ;;  %v4760_v32 = vmul.f32 %v10124_v2, %v10124_v2 }
 0xcb3   :  { %v7947_v17 = vpack.c.bf16 %v4761_v9, %v4760_v32  ;;  %v10131_v15 = vpop.f32.mrb[112].mxu0  ;;  %7924 = vmatpush3.bf16.msra.mxu1 %v7923_v53 }
 0xcb4   :  { %v4763_v19 = vmul.f32 %v10131_v15, %v10131_v15  ;;  %v10135_v11 = vpop.f32.mrb[113].mxu0  ;;  %7925 = vmatprep.subr.bf16.mxu1 %v10426_v38 }
 0xcb5   :  { %v7926_v6 = vpack.c.bf16 %v10131_v15, %v10135_v11  ;;  %v4762_v37 = vmul.f32 %v10135_v11, %v10135_v11 }
 0xcb7   :  { %v7950_v30 = vpack.c.bf16 %v4763_v19, %v4762_v37  ;;  %v10142_v3 = vpop.f32.mrb[114].mxu0  ;;  %7927 = vmatpush3.bf16.msra.mxu1 %v7926_v6 }
 0xcb8   :  { %v4765_v49 = vmul.f32 %v10142_v3, %v10142_v3  ;;  %v10146_v48 = vpop.f32.mrb[115].mxu0  ;;  %7928 = vmatprep.subr.bf16.mxu1 %v10426_v38 }
 0xcb9   :  { %v7929_v25 = vpack.c.bf16 %v10142_v3, %v10146_v48  ;;  %v4764_v22 = vmul.f32 %v10146_v48, %v10146_v48 }
 0xcbb   :  { %v7953_v26 = vpack.c.bf16 %v4765_v49, %v4764_v22  ;;  %v10153_v23 = vpop.f32.mrb[116].mxu0  ;;  %7930 = vmatpush3.bf16.msra.mxu1 %v7929_v25 }
 0xcbc   :  { %v4767_v50 = vmul.f32 %v10153_v23, %v10153_v23  ;;  %v10157_v8 = vpop.f32.mrb[117].mxu0  ;;  %7931 = vmatprep.subr.bf16.mxu1 %v10426_v38 }
 0xcbd   :  { %v7932_v47 = vpack.c.bf16 %v10153_v23, %v10157_v8  ;;  %v4766_v61 = vmul.f32 %v10157_v8, %v10157_v8 }
 0xcbf   :  { %v7956_v5 = vpack.c.bf16 %v4767_v50, %v4766_v61  ;;  %v10164_v29 = vpop.f32.mrb[118].mxu0  ;;  %7933 = vmatpush3.bf16.msra.mxu1 %v7932_v47 }
 0xcc0   :  { %v4769_v57 = vmul.f32 %v10164_v29, %v10164_v29  ;;  %v10168_v0 = vpop.f32.mrb[119].mxu0  ;;  %7934 = vmatprep.subr.bf16.mxu1 %v10426_v38 }
 0xcc1   :  { %v7935_v41 = vpack.c.bf16 %v10164_v29, %v10168_v0  ;;  %v4768_v10 = vmul.f32 %v10168_v0, %v10168_v0 }
 0xcc3   :  { %v7959_v60 = vpack.c.bf16 %v4769_v57, %v4768_v10  ;;  %7936 = vmatpush3.bf16.msra.mxu1 %v7935_v41 }
 0xcc4   :  { %7937 = vmatprep.subr.bf16.mxu1 %v10426_v38 }
 0xcc6   :  { %7314 = vmatmul.mubr.f32.vlgmr.msra.gmra.mrb[100].mxu1 %v10490_v39 }
 0xcc7   :  { %7939 = vmatpush3.bf16.msra.mxu1 %v7938_v35  ;;  %7348 = vmatprep.mubr.msk.f32.mxu1 %vm8167_vm1, %v10489_v18  ;;  %v5026_v35 = vld [vmem:[%s10340_s3] sm:$0xff] }
 0xcc8   :  { %7940 = vmatprep.subr.bf16.mxu1 %v10426_v38  ;;  %v7986_v28 = vpack.c.bf16 %v5027_v42, %v5026_v35 }
 0xcca   :  { %7987 = vmatpush3.bf16.msra.mxu0 %v7986_v28 }
 0xccb   :  { %7942 = vmatpush3.bf16.msra.mxu1 %v7941_v14  ;;  %v5029_v14 = vld [vmem:[%s10340_s3 + $0x18] sm:$0xff]  ;;  %7988 = vmatprep.subr.bf16.mxu0 %v10426_v38 }
 0xccc   :  { %7943 = vmatprep.subr.bf16.mxu1 %v10426_v38  ;;  %v7989_v44 = vpack.c.bf16 %v5029_v14, %v5028_v24 }
 0xcce   :  { %7990 = vmatpush3.bf16.msra.mxu0 %v7989_v44 }
 0xccf   :  { %7945 = vmatpush3.bf16.msra.mxu1 %v7944_v63 }
 0xcd0   :  { %7946 = vmatprep.subr.bf16.mxu1 %v10426_v38 }
 0xcd3   :  { %7948 = vmatpush3.bf16.msra.mxu1 %v7947_v17 }
 0xcd4   :  { %7949 = vmatprep.subr.bf16.mxu1 %v10426_v38 }
 0xcd7   :  { %7951 = vmatpush3.bf16.msra.mxu1 %v7950_v30 }
 0xcd8   :  { %7952 = vmatprep.subr.bf16.mxu1 %v10426_v38 }
 0xcdb   :  { %7954 = vmatpush3.bf16.msra.mxu1 %v7953_v26 }
 0xcdc   :  { %7955 = vmatprep.subr.bf16.mxu1 %v10426_v38 }
 0xcdf   :  { %7957 = vmatpush3.bf16.msra.mxu1 %v7956_v5 }
 0xce0   :  { %7958 = vmatprep.subr.bf16.mxu1 %v10426_v38 }
 0xce3   :  { %7960 = vmatpush3.bf16.msra.mxu1 %v7959_v60 }
 0xce4   :  { %7961 = vmatprep.subr.bf16.mxu1 %v10426_v38 }
 0xce6   :  { %7349 = vmatmul.mubr.f32.vlgmr.msra.gmra.mrb[102].mxu1 %v10490_v39  ;;  %v10492_v39 = vld [vmem:[#allocation23_spill] sm:$0xff] }
 0xce7   :  { %7383 = vmatprep.mubr.msk.f32.mxu1 %vm8167_vm1, %v10489_v18 }
 0xd99   :  { %v4750_v13 = vpop.f32.mrb[100].mxu1 }
 0xd9a   :  { %v10204_v63 = vrot.slane %v4750_v13, %v10491_v51  ;;  %v7315_v9 = vpop.f32.mrb[101].mxu1  ;;  %v4840_v49 = vmul.f32 %v4750_v13, %v4750_v13 }
 0xd9c   :  { %v4846_v53 = vsub.f32 %v10091_v58, %v10204_v63  ;;  %v4847_v32 = vsub.f32 %v10085_v56, %v10204_v63  ;;  %v4848_v17 = vsub.f32 %v10102_v43, %v10204_v63  ;;  %v4849_v19 = vsub.f32 %v10098_v62, %v10204_v63 }
 0xd9d   :  { %v4850_v6 = vsub.f32 %v10113_v46, %v10204_v63  ;;  %v4851_v37 = vsub.f32 %v10109_v31, %v10204_v63  ;;  %v4852_v30 = vsub.f32 %v10124_v2, %v10204_v63  ;;  %v4853_v58 = vsub.f32 %v10120_v40, %v10204_v63 }
 0xd9e   :  { %v4854_v56 = vsub.f32 %v10135_v11, %v10204_v63  ;;  %v4855_v43 = vsub.f32 %v10131_v15, %v10204_v63  ;;  %v4856_v62 = vsub.f32 %v10146_v48, %v10204_v63  ;;  %v4857_v46 = vsub.f32 %v10142_v3, %v10204_v63 }
 0xd9f   :  { %v4858_v31 = vsub.f32 %v10157_v8, %v10204_v63  ;;  %v4859_v2 = vsub.f32 %v10153_v23, %v10204_v63  ;;  %v4860_v40 = vsub.f32 %v10168_v0, %v10204_v63  ;;  %v4861_v11 = vsub.f32 %v10164_v29, %v10204_v63 }
 0xdb9   :  { %v4836_v15 = vpop.f32.mrb[102].mxu1 }
 0xdba   :  { %v4841_v25 = vsub.f32 %v4836_v15, %v4840_v49  ;;  %v7350_v22 = vpop.f32.mrb[103].mxu1 }
 0xdbc   :  { %v4862_v48 = vadd.f32 1e-05, %v4841_v25 }
 0xdbe   :  { %8132 = vrsqrt.f32 %v4862_v48 }
 0xdc8   :  { %v8133_v26 = vpop.eup %8132 }
 0xdc9   :  { %v4867_v3 = vrot.slane %v8133_v26, %v10491_v51 }
 0xdcb   :  { %v4868_v50 = vmul.f32 %v4867_v3, %v4846_v53  ;;  %v4869_v47 = vmul.f32 %v4867_v3, %v4847_v32  ;;  %v4870_v61 = vmul.f32 %v4867_v3, %v4848_v17  ;;  %v4871_v5 = vmul.f32 %v4867_v3, %v4849_v19  ;;  %v10493_v53 = vld [vmem:[#allocation24_spill] sm:$0xff] }
 0xdcc   :  { %v4872_v57 = vmul.f32 %v4867_v3, %v4850_v6  ;;  %v4873_v41 = vmul.f32 %v4867_v3, %v4851_v37  ;;  %v4874_v10 = vmul.f32 %v4867_v3, %v4852_v30  ;;  %v4875_v60 = vmul.f32 %v4867_v3, %v4853_v58 }
 0xdcd   :  { %v4888_v35 = vmul.f32 %v10492_v39, %v4868_v50  ;;  %v4889_v42 = vmul.f32 %v10492_v39, %v4869_v47  ;;  %v4890_v24 = vmul.f32 %v10492_v39, %v4870_v61  ;;  %v4891_v28 = vmul.f32 %v10492_v39, %v4871_v5 }
 0xdce   :  { %v4892_v14 = vmul.f32 %v10492_v39, %v4872_v57  ;;  %v4893_v44 = vmul.f32 %v10492_v39, %v4873_v41  ;;  %v4894_v13 = vmul.f32 %v10492_v39, %v4874_v10  ;;  %v4895_v9 = vmul.f32 %v10492_v39, %v4875_v60 }
 0xdcf   :  { %v4908_v32 = vadd.f32 %v10493_v53, %v4888_v35  ;;  %v4909_v17 = vadd.f32 %v10493_v53, %v4889_v42  ;;  %v4910_v19 = vadd.f32 %v10493_v53, %v4890_v24  ;;  %v4911_v6 = vadd.f32 %v10493_v53, %v4891_v28 }
 0xdd0   :  { %v4912_v37 = vadd.f32 %v10493_v53, %v4892_v14  ;;  %v4913_v30 = vadd.f32 %v10493_v53, %v4893_v44  ;;  %v4914_v58 = vadd.f32 %v10493_v53, %v4894_v13  ;;  %v4915_v49 = vadd.f32 %v10493_v53, %v4895_v9 }
 0xdd1   :  { %v4924_v15 = vmax.f32 %v4908_v32, 0.0  ;;  %v4925_v25 = vmax.f32 %v4909_v17, 0.0  ;;  %v4926_v22 = vmax.f32 %v4910_v19, 0.0  ;;  %v4927_v48 = vmax.f32 %v4911_v6, 0.0 }
 0xdd2   :  { %v4928_v26 = vmax.f32 %v4912_v37, 0.0  ;;  %v4929_v50 = vmax.f32 %v4913_v30, 0.0  ;;  %v4930_v47 = vmax.f32 %v4914_v58, 0.0  ;;  %v4931_v61 = vmax.f32 %v4915_v49, 0.0 }
 0xdd3   :  { %v4940_v5 = vadd.f32 %v4924_v15, %v9835_v45  ;;  %v4941_v57 = vadd.f32 %v4925_v25, %v9838_v12  ;;  %v4942_v41 = vadd.f32 %v4926_v22, %v9841_v54  ;;  %v4943_v10 = vadd.f32 %v4927_v48, %v9844_v59 }
 0xdd4   :  { %v4944_v60 = vadd.f32 %v4928_v26, %v9847_v20  ;;  %v4945_v35 = vadd.f32 %v4929_v50, %v9850_v36  ;;  %v4946_v42 = vadd.f32 %v4930_v47, %v9853_v52  ;;  %v4947_v24 = vadd.f32 %v4931_v61, %v9858_v33 }
 0xdd5   :  { %v7962_v28 = vpack.c.bf16 %v4941_v57, %v4940_v5  ;;  %v7965_v14 = vpack.c.bf16 %v4943_v10, %v4942_v41  ;;  %v4876_v44 = vmul.f32 %v4867_v3, %v4854_v56  ;;  %v4877_v13 = vmul.f32 %v4867_v3, %v4855_v43 }
 0xdd6   :  { %v7968_v9 = vpack.c.bf16 %v4945_v35, %v4944_v60  ;;  %v7971_v45 = vpack.c.bf16 %v4947_v24, %v4946_v42  ;;  %v4878_v32 = vmul.f32 %v4867_v3, %v4856_v62  ;;  %v4879_v12 = vmul.f32 %v4867_v3, %v4857_v46  ;;  %v5189_v42 = vld [vmem:[%s10340_s3 + $0x30] sm:$0xff]  ;;  %v10494_v24 = vld [vmem:[#allocation18_spill] sm:$0xff] }
 0xdd7   :  { %7963 = vmatpush3.bf16.msra.mxu1 %v7962_v28  ;;  %v4896_v54 = vmul.f32 %v10492_v39, %v4876_v44  ;;  %v4897_v59 = vmul.f32 %v10492_v39, %v4877_v13  ;;  %v4880_v20 = vmul.f32 %v4867_v3, %v4858_v31  ;;  %v4881_v36 = vmul.f32 %v4867_v3, %v4859_v2 }
 0xdd8   :  { %7964 = vmatprep.subr.bf16.mxu1 %v10426_v38  ;;  %v4898_v52 = vmul.f32 %v10492_v39, %v4878_v32  ;;  %v4899_v33 = vmul.f32 %v10492_v39, %v4879_v12  ;;  %v4882_v56 = vmul.f32 %v4867_v3, %v4860_v40  ;;  %v4883_v43 = vmul.f32 %v4867_v3, %v4861_v11 }
 0xdd9   :  { %v4916_v8 = vadd.f32 %v10493_v53, %v4896_v54  ;;  %v4917_v62 = vadd.f32 %v10493_v53, %v4897_v59  ;;  %v4900_v23 = vmul.f32 %v10492_v39, %v4880_v20  ;;  %v4901_v46 = vmul.f32 %v10492_v39, %v4881_v36 }
 0xdda   :  { %v4918_v31 = vadd.f32 %v10493_v53, %v4898_v52  ;;  %v4919_v2 = vadd.f32 %v10493_v53, %v4899_v33  ;;  %v4902_v17 = vmul.f32 %v10492_v39, %v4882_v56  ;;  %v4903_v0 = vmul.f32 %v10492_v39, %v4883_v43 }
 0xddb   :  { %7966 = vmatpush3.bf16.msra.mxu1 %v7965_v14  ;;  %v4932_v40 = vmax.f32 %v4916_v8, 0.0  ;;  %v4933_v29 = vmax.f32 %v4917_v62, 0.0  ;;  %v4920_v63 = vadd.f32 %v10493_v53, %v4900_v23  ;;  %v4921_v11 = vadd.f32 %v10493_v53, %v4901_v46 }
 0xddc   :  { %7967 = vmatprep.subr.bf16.mxu1 %v10426_v38  ;;  %v4934_v3 = vmax.f32 %v4918_v31, 0.0  ;;  %v4935_v19 = vmax.f32 %v4919_v2, 0.0  ;;  %v4922_v6 = vadd.f32 %v10493_v53, %v4902_v17  ;;  %v4923_v37 = vadd.f32 %v10493_v53, %v4903_v0 }
 0xddd   :  { %v4948_v30 = vadd.f32 %v4932_v40, %v9902_v21  ;;  %v4949_v58 = vadd.f32 %v4933_v29, %v9905_v55  ;;  %v4936_v39 = vmax.f32 %v4920_v63, 0.0  ;;  %v4937_v49 = vmax.f32 %v4921_v11, 0.0 }
 0xdde   :  { %v4950_v15 = vadd.f32 %v4934_v3, %v9911_v16  ;;  %v4951_v25 = vadd.f32 %v4935_v19, %v9914_v1  ;;  %v4938_v22 = vmax.f32 %v4922_v6, 0.0  ;;  %v4939_v48 = vmax.f32 %v4923_v37, 0.0  ;;  %v52_v16 = vld [vmem:[%s10337_s1 + $0x100] sm:$0xff] }
 0xddf   :  { %7969 = vmatpush3.bf16.msra.mxu1 %v7968_v9  ;;  %v7974_v26 = vpack.c.bf16 %v4949_v58, %v4948_v30  ;;  %v4952_v50 = vadd.f32 %v4936_v39, %v9917_v27  ;;  %v4953_v47 = vadd.f32 %v4937_v49, %v9922_v4  ;;  %v5108_v4 = vld [vmem:[%s10340_s3 + $0x20] sm:$0xff]  ;;  %v10495_v28 = vsub.s32 1, %v10494_v24 }
 0xde0   :  { %7970 = vmatprep.subr.bf16.mxu1 %v10426_v38  ;;  %v7977_v53 = vpack.c.bf16 %v4951_v25, %v4950_v15  ;;  %v4954_v21 = vadd.f32 %v4938_v22, %v9927_v7  ;;  %v4955_v55 = vadd.f32 %v4939_v48, %v9930_v34  ;;  %v5109_v7 = vld [vmem:[%s10340_s3 + $0x28] sm:$0xff] }
 0xde1   :  { %v7980_v61 = vpack.c.bf16 %v4953_v47, %v4952_v50  ;;  %v7992_v34 = vpack.c.bf16 %v5109_v7, %v5108_v4 }
 0xde2   :  { %v7983_v5 = vpack.c.bf16 %v4955_v55, %v4954_v21 }
 0xde3   :  { %7972 = vmatpush3.bf16.msra.mxu1 %v7971_v45  ;;  %v10496_v45 = vsub.s32 2, %v10494_v24 }
 0xde4   :  { %7973 = vmatprep.subr.bf16.mxu1 %v10426_v38 }
 0xde7   :  { %7975 = vmatpush3.bf16.msra.mxu1 %v7974_v26 }
 0xde8   :  { %7976 = vmatprep.subr.bf16.mxu1 %v10426_v38 }
 0xdeb   :  { %7978 = vmatpush3.bf16.msra.mxu1 %v7977_v53 }
 0xdec   :  { %7979 = vmatprep.subr.bf16.mxu1 %v10426_v38 }
 0xdef   :  { %7981 = vmatpush3.bf16.msra.mxu1 %v7980_v61 }
 0xdf0   :  { %7982 = vmatprep.subr.bf16.mxu1 %v10426_v38 }
 0xdf3   :  { %7984 = vmatpush3.bf16.msra.mxu1 %v7983_v5 }
 0xdf4   :  { %7991 = vmatprep.subr.bf16.mxu1 %v10426_v38  ;;  %v74_v38 = vld [vmem:[%s10339_s4 + $0x8] sm:$0x7] }
 0xdf5   :  { %v5033_v57 = vrot.slane %v74_v38, %v10491_v51  ;;  %v5113_v14 = vrot.slane %v74_v38, %v10495_v28  ;;  %v5193_v32 = vrot.slane %v74_v38, %v10496_v45 }
 0xdf6   :  { %7384 = vmatmul.mubr.f32.vlgmr.msra.gmra.mrb[104].mxu1 %v52_v16 }
 0xdf7   :  { %7401 = vmatprep.mubr.msk.f32.mxu1 %vm8167_vm1, %v10489_v18  ;;  %7993 = vmatpush3.bf16.msra.mxu1 %v7992_v34 }
 0xdf8   :  { %7404 = vmatprep.subr.mxu1 %v10489_v18 }
 0xec9   :  { %v5022_v1 = vpop.f32.mrb[104].mxu1 }
 0xeca   :  { %v7385_v27 = vpop.f32.mrb[105].mxu1  ;;  %7395 = vmatmul.mubr.msk.f32.vlgmr.msra.gmra.mrb[120].mxu0 %vm75_vm0, %v5022_v1 }
 0xf9d   :  { %v5103_v41 = vpop.f32.mrb[120].mxu0 }
 0xf9e   :  { %v5104_v10 = vadd.f32 %v5103_v41, %v5033_v57  ;;  %v7396_v60 = vpop.f32.mrb[121].mxu0 }
 0xfa0   :  { %v5107_v35 = vmax.f32 %v5104_v10, 0.0 }
 0xfa2   :  { %7402 = vmatmul.mubr.msk.f32.vlgmr.msra.gmra.mrb[106].mxu1 %vm5114_vm2, %v5107_v35 }
 0xfa3   :  { %7406 = vmatprep.mubr.msk.f32.mxu1 %vm8167_vm1, %v10489_v18  ;;  %7405 = vmatpush3.msra.mxu1 %v5189_v42 }
0x1075   :  { %v5184_v44 = vpop.f32.mrb[106].mxu1 }
0x1076   :  { %v5185_v13 = vadd.f32 %v5184_v44, %v5113_v14  ;;  %v7403_v51 = vpop.f32.mrb[107].mxu1 }
0x1078   :  { %v5188_v9 = vmax.f32 %v5185_v13, 0.0 }
0x107a   :  { %7407 = vmatmul.mubr.msk.f32.vlgmr.msra.gmra.mrb[108].mxu1 %vm5194_vm3, %v5188_v9 }
0x114d   :  { %v5264_v12 = vpop.f32.mrb[108].mxu1 }
0x114e   :  { %v5265_v54 = vadd.f32 %v5264_v12, %v5193_v32  ;;  %v7408_v18 = vpop.f32.mrb[109].mxu1 }
0x1150   :  { %5268 = vst [vmem:[%s10341_s5] sm:$0xff] %v5265_v54 }

</bundles_post_ra>
